<compile_context>
chip_gen: v5e
topology: v5e:2x2
jax: 0.10.0
libtpu: 0.0.40
codegen_flags: <defaults>
</compile_context>

<pallas_src>
import math

import numpy as np
import jax
import jax.numpy as jnp
from jax.experimental import pallas as pl
from jax.experimental.pallas import tpu as pltpu

# ---------------- configuration (small shapes) ----------------
B = 2            # batch
S = 4            # max_segments
L = 8            # max_segment_length
H = 32           # hidden size
NH = 4           # attention heads
DH = H // NH     # head dim
FF = 64          # feed-forward dim
VOCAB = 50
NUM_CLASSES = 2
EPS = 1e-5
SCALE = 1.0 / math.sqrt(DH)

SEG_BLOCK = 4    # segments handled per grid step in the token-encoder kernel


# ---------------- sinusoidal segment-position init (matches torch version) ----
def sinusoidal_init(num_embeddings: int, embedding_dim: int) -> jnp.ndarray:
    position_enc = np.array(
        [[pos / np.power(10000, 2 * i / embedding_dim) for i in range(embedding_dim)]
         if pos != 0 else np.zeros(embedding_dim)
         for pos in range(num_embeddings)])
    position_enc[1:, 0::2] = np.sin(position_enc[1:, 0::2])
    position_enc[1:, 1::2] = np.cos(position_enc[1:, 1::2])
    return jnp.asarray(position_enc, dtype=jnp.float32)


# ---------------- in-kernel building blocks (operate on VMEM-resident jnp values) ----
def _layernorm(x, g, b):
    mu = jnp.mean(x, axis=-1, keepdims=True)
    var = jnp.mean((x - mu) ** 2, axis=-1, keepdims=True)
    return (x - mu) * jax.lax.rsqrt(var + EPS) * g + b


def _mha(qkv, mask_bias, n_seg, seq_len):
    """qkv: (n_seg*seq_len, 3H) f32.  mask_bias: (n_seg, 1, seq_len) f32 or None."""
    qkv3 = qkv.reshape(n_seg, seq_len, 3 * H)
    head_outs = []
    for h in range(NH):
        q = qkv3[:, :, h * DH:(h + 1) * DH]                    # (n_seg, T, DH)
        k = qkv3[:, :, H + h * DH:H + (h + 1) * DH]
        v = qkv3[:, :, 2 * H + h * DH:2 * H + (h + 1) * DH]
        s = jnp.einsum("bqd,bkd->bqk",
                       q.astype(jnp.bfloat16), k.astype(jnp.bfloat16),
                       preferred_element_type=jnp.float32) * SCALE
        if mask_bias is not None:
            s = s + mask_bias                                  # f32 additive mask
        s = s - jnp.max(s, axis=-1, keepdims=True)
        p = jnp.exp(s)
        p = p * pl.reciprocal(jnp.sum(p, axis=-1, keepdims=True), approx=True)
        o = jnp.einsum("bqk,bkd->bqd",
                       p.astype(jnp.bfloat16), v.astype(jnp.bfloat16),
                       preferred_element_type=jnp.float32)     # (n_seg, T, DH)
        head_outs.append(o)
    # merge heads on the lane axis, back to (tokens, H)
    return jnp.concatenate(head_outs, axis=-1).reshape(n_seg * seq_len, H)


def _encoder_layer(x, mask_bias, lw, n_seg, seq_len):
    """One post-LN transformer layer on VMEM-resident activations.  x: (tokens, H) f32."""
    qkv = jnp.dot(x.astype(jnp.bfloat16), lw["wqkv"],
                  preferred_element_type=jnp.float32) + lw["bqkv"]
    attn = _mha(qkv, mask_bias, n_seg, seq_len)
    attn_out = jnp.dot(attn.astype(jnp.bfloat16), lw["wo"],
                       preferred_element_type=jnp.float32) + lw["bo"]
    h1 = _layernorm(attn_out + x, lw["g1"], lw["be1"])
    # TODO(synk): tanh-approx GELU (PyTorch/HF RoBERTa default is exact erf GELU).
    ff = jax.nn.gelu(jnp.dot(h1.astype(jnp.bfloat16), lw["w1"],
                             preferred_element_type=jnp.float32) + lw["bb1"],
                     approximate=True)
    ff2 = jnp.dot(ff.astype(jnp.bfloat16), lw["w2"],
                  preferred_element_type=jnp.float32) + lw["bb2"]
    return _layernorm(ff2 + h1, lw["g2"], lw["be2"])


def _load_layer_weights(wqkv_ref, bqkv_ref, wo_ref, bo_ref, g1_ref, be1_ref,
                        w1_ref, bb1_ref, w2_ref, bb2_ref, g2_ref, be2_ref):
    return dict(
        wqkv=wqkv_ref[...], bqkv=bqkv_ref[...],
        wo=wo_ref[...], bo=bo_ref[...],
        g1=g1_ref[...], be1=be1_ref[...],
        w1=w1_ref[...], bb1=bb1_ref[...],
        w2=w2_ref[...], bb2=bb2_ref[...],
        g2=g2_ref[...], be2=be2_ref[...])


# ---------------- fused token-encoder kernel ----------------
def _token_encoder_kernel(emb_ref, mask_ref, pos_ref, eg_ref, eb_ref,
                          wqkv_ref, bqkv_ref, wo_ref, bo_ref, g1_ref, be1_ref,
                          w1_ref, bb1_ref, w2_ref, bb2_ref, g2_ref, be2_ref,
                          cls_ref):
    sb, seq, _ = emb_ref.shape
    x = emb_ref[...] + pos_ref[...][None]                      # (sb, L, H)
    x = _layernorm(x.reshape(sb * seq, H), eg_ref[...], eb_ref[...])
    mask_bias = (1.0 - mask_ref[...]) * (-1e9)                 # (sb, 1, L) f32
    lw = _load_layer_weights(wqkv_ref, bqkv_ref, wo_ref, bo_ref, g1_ref, be1_ref,
                             w1_ref, bb1_ref, w2_ref, bb2_ref, g2_ref, be2_ref)
    h2 = _encoder_layer(x, mask_bias, lw, sb, seq)             # (sb*L, H)
    cls_ref[...] = h2.reshape(sb, seq, H)[:, 0:1, :]           # CLS per segment


def token_encoder_cls(tok_emb, mask3, enc_p):
    """tok_emb: (N, L, H) f32, mask3: (N, 1, L) f32 -> CLS hidden states (N, H)."""
    N = tok_emb.shape[0]
    assert N % SEG_BLOCK == 0
    n_blocks = N // SEG_BLOCK

    wspec = lambda shape: pl.BlockSpec(shape, lambda i: (0, 0))
    out = pl.pallas_call(
        _token_encoder_kernel,
        out_shape=jax.ShapeDtypeStruct((N, 1, H), jnp.float32),
        grid=(n_blocks,),
        in_specs=[
            pl.BlockSpec((SEG_BLOCK, L, H), lambda i: (i, 0, 0)),
            pl.BlockSpec((SEG_BLOCK, 1, L), lambda i: (i, 0, 0)),
            wspec((L, H)),                 # pos_emb
            wspec((1, H)), wspec((1, H)),  # emb LN
            wspec((H, 3 * H)), wspec((1, 3 * H)),
            wspec((H, H)), wspec((1, H)),
            wspec((1, H)), wspec((1, H)),
            wspec((H, FF)), wspec((1, FF)),
            wspec((FF, H)), wspec((1, H)),
            wspec((1, H)), wspec((1, H)),
        ],
        out_specs=pl.BlockSpec((SEG_BLOCK, 1, H), lambda i: (i, 0, 0)),
        compiler_params=pltpu.CompilerParams(dimension_semantics=("parallel",)),
    )(tok_emb, mask3, enc_p["pos_emb"], enc_p["emb_ln_g"], enc_p["emb_ln_b"],
      enc_p["wqkv"], enc_p["bqkv"], enc_p["wo"], enc_p["bo"],
      enc_p["ln1_g"], enc_p["ln1_b"], enc_p["w1"], enc_p["b1"],
      enc_p["w2"], enc_p["b2"], enc_p["ln2_g"], enc_p["ln2_b"])
    return out[:, 0, :]


# ---------------- fused segment-encoder + classifier-head kernel ----------------
def _segment_encoder_head_kernel(cls_ref, pos_ref, eg_ref, eb_ref,
                                 wqkv_ref, bqkv_ref, wo_ref, bo_ref, g1_ref, be1_ref,
                                 w1_ref, bb1_ref, w2_ref, bb2_ref, g2_ref, be2_ref,
                                 fcw_ref, fcb_ref, onehot_ref,
                                 logits_ref, probs_ref, pooled_ref, nll_ref):
    b, s, _ = cls_ref.shape
    x = cls_ref[...] + pos_ref[...][None]                      # (B, S, H)
    x = _layernorm(x.reshape(b * s, H), eg_ref[...], eb_ref[...])
    lw = _load_layer_weights(wqkv_ref, bqkv_ref, wo_ref, bo_ref, g1_ref, be1_ref,
                             w1_ref, bb1_ref, w2_ref, bb2_ref, g2_ref, be2_ref)
    # inputs_embeds path of the segment encoder: no attention mask (all ones)
    h2 = _encoder_layer(x, None, lw, b, s)                     # (B*S, H)
    pooled = h2.reshape(b, s, H)[:, 0, :]                      # (B, H)
    pooled_ref[...] = pooled

    logits = jnp.dot(pooled, fcw_ref[...],
                     preferred_element_type=jnp.float32) + fcb_ref[...]
    logits_ref[...] = logits
    # softmax over classes (dim=1)
    m = jnp.max(logits, axis=-1, keepdims=True)
    e = jnp.exp(logits - m)
    probs = e / jnp.sum(e, axis=-1, keepdims=True)
    probs_ref[...] = probs
    # CrossEntropyLoss applied to the *probabilities* (mirrors the torch module)
    m2 = jnp.max(probs, axis=-1, keepdims=True)
    lse = jnp.log(jnp.sum(jnp.exp(probs - m2), axis=-1, keepdims=True)) + m2
    logp = probs - lse
    nll_ref[...] = -jnp.sum(onehot_ref[...] * logp, axis=-1, keepdims=True)


def segment_encoder_head(cls_emb, onehot, seg_p, fc_w, fc_b):
    """cls_emb: (B, S, H) f32 -> (logits (B,C), probs (B,C), pooled (B,H), nll (B,1))."""
    Bn = cls_emb.shape[0]
    wspec = lambda shape: pl.BlockSpec(shape, lambda i: (0, 0))
    return pl.pallas_call(
        _segment_encoder_head_kernel,
        out_shape=(jax.ShapeDtypeStruct((Bn, NUM_CLASSES), jnp.float32),
                   jax.ShapeDtypeStruct((Bn, NUM_CLASSES), jnp.float32),
                   jax.ShapeDtypeStruct((Bn, H), jnp.float32),
                   jax.ShapeDtypeStruct((Bn, 1), jnp.float32)),
        grid=(1,),
        in_specs=[
            pl.BlockSpec((Bn, S, H), lambda i: (0, 0, 0)),
            wspec((S, H)),                 # pos_emb
            wspec((1, H)), wspec((1, H)),  # emb LN
            wspec((H, 3 * H)), wspec((1, 3 * H)),
            wspec((H, H)), wspec((1, H)),
            wspec((1, H)), wspec((1, H)),
            wspec((H, FF)), wspec((1, FF)),
            wspec((FF, H)), wspec((1, H)),
            wspec((1, H)), wspec((1, H)),
            wspec((H, NUM_CLASSES)), wspec((1, NUM_CLASSES)),
            wspec((Bn, NUM_CLASSES)),      # one-hot labels
        ],
        out_specs=(wspec((Bn, NUM_CLASSES)),
                   wspec((Bn, NUM_CLASSES)),
                   wspec((Bn, H)),
                   wspec((Bn, 1))),
        compiler_params=pltpu.CompilerParams(dimension_semantics=("arbitrary",)),
    )(cls_emb, seg_p["pos_emb"], seg_p["emb_ln_g"], seg_p["emb_ln_b"],
      seg_p["wqkv"], seg_p["bqkv"], seg_p["wo"], seg_p["bo"],
      seg_p["ln1_g"], seg_p["ln1_b"], seg_p["w1"], seg_p["b1"],
      seg_p["w2"], seg_p["b2"], seg_p["ln2_g"], seg_p["ln2_b"],
      fc_w, fc_b, onehot)


# ---------------- HierarchicalBert forward ----------------
def hierarchical_bert_forward(params, input_ids, attention_mask, labels):
    Bb, Ss, Ll = input_ids.shape
    ids_flat = input_ids.reshape(-1, Ll)                                      # (B*S, L)
    mask3 = attention_mask.reshape(-1, 1, Ll).astype(jnp.float32)             # (B*S, 1, L)

    # word-embedding gather stays a JAX-level take (tiny XLA gather)
    tok_emb = jnp.take(params["encoder"]["word_emb"], ids_flat, axis=0)       # (B*S, L, H)

    cls_tokens = token_encoder_cls(tok_emb, mask3, params["encoder"])         # (B*S, H)
    cls_tokens = cls_tokens.reshape(Bb, Ss, H)

    seg_mask = (jnp.sum(input_ids, axis=2) != 0).astype(input_ids.dtype)      # (B, S)
    seg_positions = jnp.arange(1, Ss + 1, dtype=input_ids.dtype) * seg_mask   # (B, S)
    seg_pos_emb = jnp.take(params["seg_pos_emb"], seg_positions, axis=0)      # (B, S, H)
    cls_tokens = cls_tokens + seg_pos_emb

    onehot = jax.nn.one_hot(labels, NUM_CLASSES, dtype=jnp.float32)
    logits, probs, pooled, nll = segment_encoder_head(
        cls_tokens, onehot, params["seg_encoder"], params["fc_w"], params["fc_b"])
    loss = jnp.mean(nll)
    # SimpleOutput(last_hidden_state=logits, hidden_states=pooled, loss=loss)
    return logits, pooled, loss, probs


# ---------------- deterministic parameter initialization ----------------
def _normal(key, shape):
    return 0.02 * jax.random.normal(key, shape, jnp.float32)


def init_encoder_params(key, max_pos, vocab=None):
    keys = jax.random.split(key, 6)
    params = {}
    if vocab is not None:
        params["word_emb"] = _normal(keys[0], (vocab, H))
    params["pos_emb"] = _normal(keys[1], (max_pos, H))
    params["emb_ln_g"] = jnp.ones((1, H), jnp.float32)
    params["emb_ln_b"] = jnp.zeros((1, H), jnp.float32)
    # merged QKV projection; matmul weights stored in bf16 (f32 accumulation in-kernel)
    params["wqkv"] = _normal(keys[2], (H, 3 * H)).astype(jnp.bfloat16)
    params["bqkv"] = jnp.zeros((1, 3 * H), jnp.float32)
    params["wo"] = _normal(keys[3], (H, H)).astype(jnp.bfloat16)
    params["bo"] = jnp.zeros((1, H), jnp.float32)
    params["ln1_g"] = jnp.ones((1, H), jnp.float32)
    params["ln1_b"] = jnp.zeros((1, H), jnp.float32)
    params["w1"] = _normal(keys[4], (H, FF)).astype(jnp.bfloat16)
    params["b1"] = jnp.zeros((1, FF), jnp.float32)
    params["w2"] = _normal(keys[5], (FF, H)).astype(jnp.bfloat16)
    params["b2"] = jnp.zeros((1, H), jnp.float32)
    params["ln2_g"] = jnp.ones((1, H), jnp.float32)
    params["ln2_b"] = jnp.zeros((1, H), jnp.float32)
    return params


if __name__ == "__main__":
    key = jax.random.PRNGKey(0)
    k_enc, k_seg, k_fc, k_ids = jax.random.split(key, 4)

    params = {
        "encoder": init_encoder_params(k_enc, max_pos=L, vocab=VOCAB),
        "seg_encoder": init_encoder_params(k_seg, max_pos=S),
        "seg_pos_emb": sinusoidal_init(S + 1, H),   # padding_idx=0 row is zeros
        "fc_w": _normal(k_fc, (H, NUM_CLASSES)),
        "fc_b": jnp.zeros((1, NUM_CLASSES), jnp.float32),
    }

    input_ids = jax.random.randint(k_ids, (B, S, L), 0, VOCAB, dtype=jnp.int32)
    # make the last segment of each document empty to exercise the
    # seg_mask / padding_idx=0 path of the segment-position embedding
    input_ids = input_ids.at[:, -1, :].set(0)
    attention_mask = (input_ids != 0).astype(jnp.int32)
    labels = jnp.array([0, 1], dtype=jnp.int32)

    fwd = jax.jit(hierarchical_bert_forward)
    logits, hidden, loss, probs = fwd(params, input_ids, attention_mask, labels)
    jax.block_until_ready((logits, hidden, loss, probs))
    assert logits.shape == (B, NUM_CLASSES)
    assert hidden.shape == (B, H)
    assert loss.shape == ()
    print("KERNEL_OK")
</pallas_src>

<mosaic_0001>
module attributes {stable_mosaic.version = 11 : i64} {
  func.func @_token_encoder_kernel(%arg0: i32, %arg1: memref<4x8x32xf32, #tpu.memory_space<vmem>>, %arg2: memref<4x1x8xf32, #tpu.memory_space<vmem>>, %arg3: memref<8x32xf32, #tpu.memory_space<vmem>>, %arg4: memref<1x32xf32, #tpu.memory_space<vmem>>, %arg5: memref<1x32xf32, #tpu.memory_space<vmem>>, %arg6: memref<32x96xbf16, #tpu.memory_space<vmem>>, %arg7: memref<1x96xf32, #tpu.memory_space<vmem>>, %arg8: memref<32x32xbf16, #tpu.memory_space<vmem>>, %arg9: memref<1x32xf32, #tpu.memory_space<vmem>>, %arg10: memref<1x32xf32, #tpu.memory_space<vmem>>, %arg11: memref<1x32xf32, #tpu.memory_space<vmem>>, %arg12: memref<32x64xbf16, #tpu.memory_space<vmem>>, %arg13: memref<1x64xf32, #tpu.memory_space<vmem>>, %arg14: memref<64x32xbf16, #tpu.memory_space<vmem>>, %arg15: memref<1x32xf32, #tpu.memory_space<vmem>>, %arg16: memref<1x32xf32, #tpu.memory_space<vmem>>, %arg17: memref<1x32xf32, #tpu.memory_space<vmem>>, %arg18: memref<4x1x32xf32, #tpu.memory_space<vmem>>) attributes {dimension_semantics = [#tpu.dimension_semantics<parallel>], iteration_bounds = array<i64: 2>, scalar_prefetch = 0 : i64, scratch_operands = 0 : i64, tpu.core_type = #tpu.core_type<tc>, window_params = [{transform_indices = @transform_0, window_bounds = array<i64: 4, 8, 32>}, {transform_indices = @transform_1, window_bounds = array<i64: 4, 1, 8>}, {pipeline_mode = #tpu.pipeline_mode<synchronous>, transform_indices = @transform_2, window_bounds = array<i64: 8, 32>}, {pipeline_mode = #tpu.pipeline_mode<synchronous>, transform_indices = @transform_3, window_bounds = array<i64: 1, 32>}, {pipeline_mode = #tpu.pipeline_mode<synchronous>, transform_indices = @transform_4, window_bounds = array<i64: 1, 32>}, {pipeline_mode = #tpu.pipeline_mode<synchronous>, transform_indices = @transform_5, window_bounds = array<i64: 32, 96>}, {pipeline_mode = #tpu.pipeline_mode<synchronous>, transform_indices = @transform_6, window_bounds = array<i64: 1, 96>}, {pipeline_mode = #tpu.pipeline_mode<synchronous>, transform_indices = @transform_7, window_bounds = array<i64: 32, 32>}, {pipeline_mode = #tpu.pipeline_mode<synchronous>, transform_indices = @transform_8, window_bounds = array<i64: 1, 32>}, {pipeline_mode = #tpu.pipeline_mode<synchronous>, transform_indices = @transform_9, window_bounds = array<i64: 1, 32>}, {pipeline_mode = #tpu.pipeline_mode<synchronous>, transform_indices = @transform_10, window_bounds = array<i64: 1, 32>}, {pipeline_mode = #tpu.pipeline_mode<synchronous>, transform_indices = @transform_11, window_bounds = array<i64: 32, 64>}, {pipeline_mode = #tpu.pipeline_mode<synchronous>, transform_indices = @transform_12, window_bounds = array<i64: 1, 64>}, {pipeline_mode = #tpu.pipeline_mode<synchronous>, transform_indices = @transform_13, window_bounds = array<i64: 64, 32>}, {pipeline_mode = #tpu.pipeline_mode<synchronous>, transform_indices = @transform_14, window_bounds = array<i64: 1, 32>}, {pipeline_mode = #tpu.pipeline_mode<synchronous>, transform_indices = @transform_15, window_bounds = array<i64: 1, 32>}, {pipeline_mode = #tpu.pipeline_mode<synchronous>, transform_indices = @transform_16, window_bounds = array<i64: 1, 32>}, {transform_indices = @transform_17, window_bounds = array<i64: 4, 1, 32>}]} {
    %c0 = arith.constant 0 : index
    %c0_0 = arith.constant 0 : index
    %c0_1 = arith.constant 0 : index
    %0 = vector.load %arg1[%c0, %c0_0, %c0_1] : memref<4x8x32xf32, #tpu.memory_space<vmem>>, vector<4x8x32xf32>
    %c0_2 = arith.constant 0 : index
    %c0_3 = arith.constant 0 : index
    %1 = vector.load %arg3[%c0_2, %c0_3] : memref<8x32xf32, #tpu.memory_space<vmem>>, vector<8x32xf32>
    %2 = vector.shape_cast %1 : vector<8x32xf32> to vector<1x8x32xf32>
    %3 = vector.broadcast %2 : vector<1x8x32xf32> to vector<4x8x32xf32>
    %4 = arith.addf %0, %3 : vector<4x8x32xf32>
    %5 = vector.shape_cast %4 : vector<4x8x32xf32> to vector<32x32xf32>
    %c0_4 = arith.constant 0 : index
    %c0_5 = arith.constant 0 : index
    %6 = vector.load %arg4[%c0_4, %c0_5] : memref<1x32xf32, #tpu.memory_space<vmem>>, vector<1x32xf32>
    %c0_6 = arith.constant 0 : index
    %c0_7 = arith.constant 0 : index
    %7 = vector.load %arg5[%c0_6, %c0_7] : memref<1x32xf32, #tpu.memory_space<vmem>>, vector<1x32xf32>
    %cst = arith.constant dense<0.000000e+00> : vector<32xf32>
    %8 = vector.multi_reduction <add>, %5, %cst [1] : vector<32x32xf32> to vector<32xf32>
    %9 = vector.shape_cast %8 : vector<32xf32> to vector<32x1xf32>
    %cst_8 = arith.constant 3.200000e+01 : f32
    %10 = vector.broadcast %cst_8 : f32 to vector<32x1xf32>
    %11 = arith.divf %9, %10 : vector<32x1xf32>
    %12 = vector.broadcast %11 : vector<32x1xf32> to vector<32x32xf32>
    %13 = arith.subf %5, %12 : vector<32x32xf32>
    %14 = arith.mulf %13, %13 : vector<32x32xf32>
    %cst_9 = arith.constant dense<0.000000e+00> : vector<32xf32>
    %15 = vector.multi_reduction <add>, %14, %cst_9 [1] : vector<32x32xf32> to vector<32xf32>
    %16 = vector.shape_cast %15 : vector<32xf32> to vector<32x1xf32>
    %cst_10 = arith.constant 3.200000e+01 : f32
    %17 = vector.broadcast %cst_10 : f32 to vector<32x1xf32>
    %18 = arith.divf %16, %17 : vector<32x1xf32>
    %19 = vector.broadcast %11 : vector<32x1xf32> to vector<32x32xf32>
    %20 = arith.subf %5, %19 : vector<32x32xf32>
    %cst_11 = arith.constant 9.99999974E-6 : f32
    %21 = vector.broadcast %cst_11 : f32 to vector<32x1xf32>
    %22 = arith.addf %18, %21 : vector<32x1xf32>
    %23 = math.rsqrt %22 : vector<32x1xf32>
    %24 = vector.broadcast %23 : vector<32x1xf32> to vector<32x32xf32>
    %25 = arith.mulf %20, %24 : vector<32x32xf32>
    %26 = vector.broadcast %6 : vector<1x32xf32> to vector<32x32xf32>
    %27 = arith.mulf %25, %26 : vector<32x32xf32>
    %28 = vector.broadcast %7 : vector<1x32xf32> to vector<32x32xf32>
    %29 = arith.addf %27, %28 : vector<32x32xf32>
    %c0_12 = arith.constant 0 : index
    %c0_13 = arith.constant 0 : index
    %c0_14 = arith.constant 0 : index
    %30 = vector.load %arg2[%c0_12, %c0_13, %c0_14] : memref<4x1x8xf32, #tpu.memory_space<vmem>>, vector<4x1x8xf32>
    %cst_15 = arith.constant 1.000000e+00 : f32
    %31 = vector.broadcast %cst_15 : f32 to vector<4x1x8xf32>
    %32 = arith.subf %31, %30 : vector<4x1x8xf32>
    %cst_16 = arith.constant -1.000000e+09 : f32
    %33 = vector.broadcast %cst_16 : f32 to vector<4x1x8xf32>
    %34 = arith.mulf %32, %33 : vector<4x1x8xf32>
    %c0_17 = arith.constant 0 : index
    %c0_18 = arith.constant 0 : index
    %35 = vector.load %arg6[%c0_17, %c0_18] : memref<32x96xbf16, #tpu.memory_space<vmem>>, vector<32x96xbf16>
    %c0_19 = arith.constant 0 : index
    %c0_20 = arith.constant 0 : index
    %36 = vector.load %arg7[%c0_19, %c0_20] : memref<1x96xf32, #tpu.memory_space<vmem>>, vector<1x96xf32>
    %c0_21 = arith.constant 0 : index
    %c0_22 = arith.constant 0 : index
    %37 = vector.load %arg8[%c0_21, %c0_22] : memref<32x32xbf16, #tpu.memory_space<vmem>>, vector<32x32xbf16>
    %c0_23 = arith.constant 0 : index
    %c0_24 = arith.constant 0 : index
    %38 = vector.load %arg9[%c0_23, %c0_24] : memref<1x32xf32, #tpu.memory_space<vmem>>, vector<1x32xf32>
    %c0_25 = arith.constant 0 : index
    %c0_26 = arith.constant 0 : index
    %39 = vector.load %arg10[%c0_25, %c0_26] : memref<1x32xf32, #tpu.memory_space<vmem>>, vector<1x32xf32>
    %c0_27 = arith.constant 0 : index
    %c0_28 = arith.constant 0 : index
    %40 = vector.load %arg11[%c0_27, %c0_28] : memref<1x32xf32, #tpu.memory_space<vmem>>, vector<1x32xf32>
    %c0_29 = arith.constant 0 : index
    %c0_30 = arith.constant 0 : index
    %41 = vector.load %arg12[%c0_29, %c0_30] : memref<32x64xbf16, #tpu.memory_space<vmem>>, vector<32x64xbf16>
    %c0_31 = arith.constant 0 : index
    %c0_32 = arith.constant 0 : index
    %42 = vector.load %arg13[%c0_31, %c0_32] : memref<1x64xf32, #tpu.memory_space<vmem>>, vector<1x64xf32>
    %c0_33 = arith.constant 0 : index
    %c0_34 = arith.constant 0 : index
    %43 = vector.load %arg14[%c0_33, %c0_34] : memref<64x32xbf16, #tpu.memory_space<vmem>>, vector<64x32xbf16>
    %c0_35 = arith.constant 0 : index
    %c0_36 = arith.constant 0 : index
    %44 = vector.load %arg15[%c0_35, %c0_36] : memref<1x32xf32, #tpu.memory_space<vmem>>, vector<1x32xf32>
    %c0_37 = arith.constant 0 : index
    %c0_38 = arith.constant 0 : index
    %45 = vector.load %arg16[%c0_37, %c0_38] : memref<1x32xf32, #tpu.memory_space<vmem>>, vector<1x32xf32>
    %c0_39 = arith.constant 0 : index
    %c0_40 = arith.constant 0 : index
    %46 = vector.load %arg17[%c0_39, %c0_40] : memref<1x32xf32, #tpu.memory_space<vmem>>, vector<1x32xf32>
    %47 = arith.truncf %29 : vector<32x32xf32> to vector<32x32xbf16>
    %cst_41 = arith.constant dense<0.000000e+00> : vector<32x96xf32>
    %48 = tpu.matmul %47, %35, %cst_41 {dimension_numbers = #tpu.dot_dimension_numbers<[1], [0], [0], [1], [0, 0, 1, 1], [], []>} : vector<32x32xbf16>, vector<32x96xbf16>, vector<32x96xf32> -> vector<32x96xf32>
    %49 = vector.broadcast %36 : vector<1x96xf32> to vector<32x96xf32>
    %50 = arith.addf %48, %49 : vector<32x96xf32>
    %51 = vector.shape_cast %50 : vector<32x96xf32> to vector<4x8x96xf32>
    %52 = vector.extract_strided_slice %51 {offsets = [0, 0, 0], sizes = [4, 8, 8], strides = [1, 1, 1]} : vector<4x8x96xf32> to vector<4x8x8xf32>
    %53 = vector.extract_strided_slice %51 {offsets = [0, 0, 32], sizes = [4, 8, 8], strides = [1, 1, 1]} : vector<4x8x96xf32> to vector<4x8x8xf32>
    %54 = vector.extract_strided_slice %51 {offsets = [0, 0, 64], sizes = [4, 8, 8], strides = [1, 1, 1]} : vector<4x8x96xf32> to vector<4x8x8xf32>
    %55 = arith.truncf %52 : vector<4x8x8xf32> to vector<4x8x8xbf16>
    %56 = arith.truncf %53 : vector<4x8x8xf32> to vector<4x8x8xbf16>
    "tpu.trace_start"() <{level = 10 : i32, message = "bqd,bkd->bqk"}> : () -> ()
    %cst_42 = arith.constant dense<0.000000e+00> : vector<4x8x8xf32>
    %57 = tpu.matmul %55, %56, %cst_42 {dimension_numbers = #tpu.dot_dimension_numbers<[2], [2], [1], [1], [0, 0, 0, 1, 1, 1], [0], [0]>} : vector<4x8x8xbf16>, vector<4x8x8xbf16>, vector<4x8x8xf32> -> vector<4x8x8xf32>
    "tpu.trace_stop"() : () -> ()
    %cst_43 = arith.constant 0.353553385 : f32
    %58 = vector.broadcast %cst_43 : f32 to vector<4x8x8xf32>
    %59 = arith.mulf %57, %58 : vector<4x8x8xf32>
    %60 = vector.broadcast %34 : vector<4x1x8xf32> to vector<4x8x8xf32>
    %61 = arith.addf %59, %60 : vector<4x8x8xf32>
    %cst_44 = arith.constant dense<0xFF800000> : vector<4x8xf32>
    %62 = vector.multi_reduction <maximumf>, %61, %cst_44 [2] : vector<4x8x8xf32> to vector<4x8xf32>
    %63 = vector.shape_cast %62 : vector<4x8xf32> to vector<4x8x1xf32>
    %64 = vector.broadcast %63 : vector<4x8x1xf32> to vector<4x8x8xf32>
    %65 = arith.subf %61, %64 : vector<4x8x8xf32>
    %66 = math.exp %65 : vector<4x8x8xf32>
    %cst_45 = arith.constant dense<0.000000e+00> : vector<4x8xf32>
    %67 = vector.multi_reduction <add>, %66, %cst_45 [2] : vector<4x8x8xf32> to vector<4x8xf32>
    %68 = vector.shape_cast %67 : vector<4x8xf32> to vector<4x8x1xf32>
    %69 = tpu.reciprocal %68 {approx = true} : vector<4x8x1xf32> -> vector<4x8x1xf32>
    %70 = vector.broadcast %69 : vector<4x8x1xf32> to vector<4x8x8xf32>
    %71 = arith.mulf %66, %70 : vector<4x8x8xf32>
    %72 = arith.truncf %71 : vector<4x8x8xf32> to vector<4x8x8xbf16>
    %73 = arith.truncf %54 : vector<4x8x8xf32> to vector<4x8x8xbf16>
    "tpu.trace_start"() <{level = 10 : i32, message = "bqk,bkd->bqd"}> : () -> ()
    %cst_46 = arith.constant dense<0.000000e+00> : vector<4x8x8xf32>
    %74 = tpu.matmul %72, %73, %cst_46 {dimension_numbers = #tpu.dot_dimension_numbers<[2], [1], [1], [2], [0, 0, 0, 1, 1, 2], [0], [0]>} : vector<4x8x8xbf16>, vector<4x8x8xbf16>, vector<4x8x8xf32> -> vector<4x8x8xf32>
    "tpu.trace_stop"() : () -> ()
    %75 = vector.extract_strided_slice %51 {offsets = [0, 0, 8], sizes = [4, 8, 8], strides = [1, 1, 1]} : vector<4x8x96xf32> to vector<4x8x8xf32>
    %76 = vector.extract_strided_slice %51 {offsets = [0, 0, 40], sizes = [4, 8, 8], strides = [1, 1, 1]} : vector<4x8x96xf32> to vector<4x8x8xf32>
    %77 = vector.extract_strided_slice %51 {offsets = [0, 0, 72], sizes = [4, 8, 8], strides = [1, 1, 1]} : vector<4x8x96xf32> to vector<4x8x8xf32>
    %78 = arith.truncf %75 : vector<4x8x8xf32> to vector<4x8x8xbf16>
    %79 = arith.truncf %76 : vector<4x8x8xf32> to vector<4x8x8xbf16>
    "tpu.trace_start"() <{level = 10 : i32, message = "bqd,bkd->bqk"}> : () -> ()
    %cst_47 = arith.constant dense<0.000000e+00> : vector<4x8x8xf32>
    %80 = tpu.matmul %78, %79, %cst_47 {dimension_numbers = #tpu.dot_dimension_numbers<[2], [2], [1], [1], [0, 0, 0, 1, 1, 1], [0], [0]>} : vector<4x8x8xbf16>, vector<4x8x8xbf16>, vector<4x8x8xf32> -> vector<4x8x8xf32>
    "tpu.trace_stop"() : () -> ()
    %cst_48 = arith.constant 0.353553385 : f32
    %81 = vector.broadcast %cst_48 : f32 to vector<4x8x8xf32>
    %82 = arith.mulf %80, %81 : vector<4x8x8xf32>
    %83 = vector.broadcast %34 : vector<4x1x8xf32> to vector<4x8x8xf32>
    %84 = arith.addf %82, %83 : vector<4x8x8xf32>
    %cst_49 = arith.constant dense<0xFF800000> : vector<4x8xf32>
    %85 = vector.multi_reduction <maximumf>, %84, %cst_49 [2] : vector<4x8x8xf32> to vector<4x8xf32>
    %86 = vector.shape_cast %85 : vector<4x8xf32> to vector<4x8x1xf32>
    %87 = vector.broadcast %86 : vector<4x8x1xf32> to vector<4x8x8xf32>
    %88 = arith.subf %84, %87 : vector<4x8x8xf32>
    %89 = math.exp %88 : vector<4x8x8xf32>
    %cst_50 = arith.constant dense<0.000000e+00> : vector<4x8xf32>
    %90 = vector.multi_reduction <add>, %89, %cst_50 [2] : vector<4x8x8xf32> to vector<4x8xf32>
    %91 = vector.shape_cast %90 : vector<4x8xf32> to vector<4x8x1xf32>
    %92 = tpu.reciprocal %91 {approx = true} : vector<4x8x1xf32> -> vector<4x8x1xf32>
    %93 = vector.broadcast %92 : vector<4x8x1xf32> to vector<4x8x8xf32>
    %94 = arith.mulf %89, %93 : vector<4x8x8xf32>
    %95 = arith.truncf %94 : vector<4x8x8xf32> to vector<4x8x8xbf16>
    %96 = arith.truncf %77 : vector<4x8x8xf32> to vector<4x8x8xbf16>
    "tpu.trace_start"() <{level = 10 : i32, message = "bqk,bkd->bqd"}> : () -> ()
    %cst_51 = arith.constant dense<0.000000e+00> : vector<4x8x8xf32>
    %97 = tpu.matmul %95, %96, %cst_51 {dimension_numbers = #tpu.dot_dimension_numbers<[2], [1], [1], [2], [0, 0, 0, 1, 1, 2], [0], [0]>} : vector<4x8x8xbf16>, vector<4x8x8xbf16>, vector<4x8x8xf32> -> vector<4x8x8xf32>
    "tpu.trace_stop"() : () -> ()
    %98 = vector.extract_strided_slice %51 {offsets = [0, 0, 16], sizes = [4, 8, 8], strides = [1, 1, 1]} : vector<4x8x96xf32> to vector<4x8x8xf32>
    %99 = vector.extract_strided_slice %51 {offsets = [0, 0, 48], sizes = [4, 8, 8], strides = [1, 1, 1]} : vector<4x8x96xf32> to vector<4x8x8xf32>
    %100 = vector.extract_strided_slice %51 {offsets = [0, 0, 80], sizes = [4, 8, 8], strides = [1, 1, 1]} : vector<4x8x96xf32> to vector<4x8x8xf32>
    %101 = arith.truncf %98 : vector<4x8x8xf32> to vector<4x8x8xbf16>
    %102 = arith.truncf %99 : vector<4x8x8xf32> to vector<4x8x8xbf16>
    "tpu.trace_start"() <{level = 10 : i32, message = "bqd,bkd->bqk"}> : () -> ()
    %cst_52 = arith.constant dense<0.000000e+00> : vector<4x8x8xf32>
    %103 = tpu.matmul %101, %102, %cst_52 {dimension_numbers = #tpu.dot_dimension_numbers<[2], [2], [1], [1], [0, 0, 0, 1, 1, 1], [0], [0]>} : vector<4x8x8xbf16>, vector<4x8x8xbf16>, vector<4x8x8xf32> -> vector<4x8x8xf32>
    "tpu.trace_stop"() : () -> ()
    %cst_53 = arith.constant 0.353553385 : f32
    %104 = vector.broadcast %cst_53 : f32 to vector<4x8x8xf32>
    %105 = arith.mulf %103, %104 : vector<4x8x8xf32>
    %106 = vector.broadcast %34 : vector<4x1x8xf32> to vector<4x8x8xf32>
    %107 = arith.addf %105, %106 : vector<4x8x8xf32>
    %cst_54 = arith.constant dense<0xFF800000> : vector<4x8xf32>
    %108 = vector.multi_reduction <maximumf>, %107, %cst_54 [2] : vector<4x8x8xf32> to vector<4x8xf32>
    %109 = vector.shape_cast %108 : vector<4x8xf32> to vector<4x8x1xf32>
    %110 = vector.broadcast %109 : vector<4x8x1xf32> to vector<4x8x8xf32>
    %111 = arith.subf %107, %110 : vector<4x8x8xf32>
    %112 = math.exp %111 : vector<4x8x8xf32>
    %cst_55 = arith.constant dense<0.000000e+00> : vector<4x8xf32>
    %113 = vector.multi_reduction <add>, %112, %cst_55 [2] : vector<4x8x8xf32> to vector<4x8xf32>
    %114 = vector.shape_cast %113 : vector<4x8xf32> to vector<4x8x1xf32>
    %115 = tpu.reciprocal %114 {approx = true} : vector<4x8x1xf32> -> vector<4x8x1xf32>
    %116 = vector.broadcast %115 : vector<4x8x1xf32> to vector<4x8x8xf32>
    %117 = arith.mulf %112, %116 : vector<4x8x8xf32>
    %118 = arith.truncf %117 : vector<4x8x8xf32> to vector<4x8x8xbf16>
    %119 = arith.truncf %100 : vector<4x8x8xf32> to vector<4x8x8xbf16>
    "tpu.trace_start"() <{level = 10 : i32, message = "bqk,bkd->bqd"}> : () -> ()
    %cst_56 = arith.constant dense<0.000000e+00> : vector<4x8x8xf32>
    %120 = tpu.matmul %118, %119, %cst_56 {dimension_numbers = #tpu.dot_dimension_numbers<[2], [1], [1], [2], [0, 0, 0, 1, 1, 2], [0], [0]>} : vector<4x8x8xbf16>, vector<4x8x8xbf16>, vector<4x8x8xf32> -> vector<4x8x8xf32>
    "tpu.trace_stop"() : () -> ()
    %121 = vector.extract_strided_slice %51 {offsets = [0, 0, 24], sizes = [4, 8, 8], strides = [1, 1, 1]} : vector<4x8x96xf32> to vector<4x8x8xf32>
    %122 = vector.extract_strided_slice %51 {offsets = [0, 0, 56], sizes = [4, 8, 8], strides = [1, 1, 1]} : vector<4x8x96xf32> to vector<4x8x8xf32>
    %123 = vector.extract_strided_slice %51 {offsets = [0, 0, 88], sizes = [4, 8, 8], strides = [1, 1, 1]} : vector<4x8x96xf32> to vector<4x8x8xf32>
    %124 = arith.truncf %121 : vector<4x8x8xf32> to vector<4x8x8xbf16>
    %125 = arith.truncf %122 : vector<4x8x8xf32> to vector<4x8x8xbf16>
    "tpu.trace_start"() <{level = 10 : i32, message = "bqd,bkd->bqk"}> : () -> ()
    %cst_57 = arith.constant dense<0.000000e+00> : vector<4x8x8xf32>
    %126 = tpu.matmul %124, %125, %cst_57 {dimension_numbers = #tpu.dot_dimension_numbers<[2], [2], [1], [1], [0, 0, 0, 1, 1, 1], [0], [0]>} : vector<4x8x8xbf16>, vector<4x8x8xbf16>, vector<4x8x8xf32> -> vector<4x8x8xf32>
    "tpu.trace_stop"() : () -> ()
    %cst_58 = arith.constant 0.353553385 : f32
    %127 = vector.broadcast %cst_58 : f32 to vector<4x8x8xf32>
    %128 = arith.mulf %126, %127 : vector<4x8x8xf32>
    %129 = vector.broadcast %34 : vector<4x1x8xf32> to vector<4x8x8xf32>
    %130 = arith.addf %128, %129 : vector<4x8x8xf32>
    %cst_59 = arith.constant dense<0xFF800000> : vector<4x8xf32>
    %131 = vector.multi_reduction <maximumf>, %130, %cst_59 [2] : vector<4x8x8xf32> to vector<4x8xf32>
    %132 = vector.shape_cast %131 : vector<4x8xf32> to vector<4x8x1xf32>
    %133 = vector.broadcast %132 : vector<4x8x1xf32> to vector<4x8x8xf32>
    %134 = arith.subf %130, %133 : vector<4x8x8xf32>
    %135 = math.exp %134 : vector<4x8x8xf32>
    %cst_60 = arith.constant dense<0.000000e+00> : vector<4x8xf32>
    %136 = vector.multi_reduction <add>, %135, %cst_60 [2] : vector<4x8x8xf32> to vector<4x8xf32>
    %137 = vector.shape_cast %136 : vector<4x8xf32> to vector<4x8x1xf32>
    %138 = tpu.reciprocal %137 {approx = true} : vector<4x8x1xf32> -> vector<4x8x1xf32>
    %139 = vector.broadcast %138 : vector<4x8x1xf32> to vector<4x8x8xf32>
    %140 = arith.mulf %135, %139 : vector<4x8x8xf32>
    %141 = arith.truncf %140 : vector<4x8x8xf32> to vector<4x8x8xbf16>
    %142 = arith.truncf %123 : vector<4x8x8xf32> to vector<4x8x8xbf16>
    "tpu.trace_start"() <{level = 10 : i32, message = "bqk,bkd->bqd"}> : () -> ()
    %cst_61 = arith.constant dense<0.000000e+00> : vector<4x8x8xf32>
    %143 = tpu.matmul %141, %142, %cst_61 {dimension_numbers = #tpu.dot_dimension_numbers<[2], [1], [1], [2], [0, 0, 0, 1, 1, 2], [0], [0]>} : vector<4x8x8xbf16>, vector<4x8x8xbf16>, vector<4x8x8xf32> -> vector<4x8x8xf32>
    "tpu.trace_stop"() : () -> ()
    %144 = tpu.concatenate %74, %97, %120, %143 in 2 : vector<4x8x8xf32>, vector<4x8x8xf32>, vector<4x8x8xf32>, vector<4x8x8xf32> -> vector<4x8x32xf32>
    %145 = vector.shape_cast %144 : vector<4x8x32xf32> to vector<32x32xf32>
    %146 = arith.truncf %145 : vector<32x32xf32> to vector<32x32xbf16>
    %cst_62 = arith.constant dense<0.000000e+00> : vector<32x32xf32>
    %147 = tpu.matmul %146, %37, %cst_62 {dimension_numbers = #tpu.dot_dimension_numbers<[1], [0], [0], [1], [0, 0, 1, 1], [], []>} : vector<32x32xbf16>, vector<32x32xbf16>, vector<32x32xf32> -> vector<32x32xf32>
    %148 = vector.broadcast %38 : vector<1x32xf32> to vector<32x32xf32>
    %149 = arith.addf %147, %148 : vector<32x32xf32>
    %150 = arith.addf %149, %29 : vector<32x32xf32>
    %cst_63 = arith.constant dense<0.000000e+00> : vector<32xf32>
    %151 = vector.multi_reduction <add>, %150, %cst_63 [1] : vector<32x32xf32> to vector<32xf32>
    %152 = vector.shape_cast %151 : vector<32xf32> to vector<32x1xf32>
    %cst_64 = arith.constant 3.200000e+01 : f32
    %153 = vector.broadcast %cst_64 : f32 to vector<32x1xf32>
    %154 = arith.divf %152, %153 : vector<32x1xf32>
    %155 = vector.broadcast %154 : vector<32x1xf32> to vector<32x32xf32>
    %156 = arith.subf %150, %155 : vector<32x32xf32>
    %157 = arith.mulf %156, %156 : vector<32x32xf32>
    %cst_65 = arith.constant dense<0.000000e+00> : vector<32xf32>
    %158 = vector.multi_reduction <add>, %157, %cst_65 [1] : vector<32x32xf32> to vector<32xf32>
    %159 = vector.shape_cast %158 : vector<32xf32> to vector<32x1xf32>
    %cst_66 = arith.constant 3.200000e+01 : f32
    %160 = vector.broadcast %cst_66 : f32 to vector<32x1xf32>
    %161 = arith.divf %159, %160 : vector<32x1xf32>
    %162 = vector.broadcast %154 : vector<32x1xf32> to vector<32x32xf32>
    %163 = arith.subf %150, %162 : vector<32x32xf32>
    %cst_67 = arith.constant 9.99999974E-6 : f32
    %164 = vector.broadcast %cst_67 : f32 to vector<32x1xf32>
    %165 = arith.addf %161, %164 : vector<32x1xf32>
    %166 = math.rsqrt %165 : vector<32x1xf32>
    %167 = vector.broadcast %166 : vector<32x1xf32> to vector<32x32xf32>
    %168 = arith.mulf %163, %167 : vector<32x32xf32>
    %169 = vector.broadcast %39 : vector<1x32xf32> to vector<32x32xf32>
    %170 = arith.mulf %168, %169 : vector<32x32xf32>
    %171 = vector.broadcast %40 : vector<1x32xf32> to vector<32x32xf32>
    %172 = arith.addf %170, %171 : vector<32x32xf32>
    %173 = arith.truncf %172 : vector<32x32xf32> to vector<32x32xbf16>
    %cst_68 = arith.constant dense<0.000000e+00> : vector<32x64xf32>
    %174 = tpu.matmul %173, %41, %cst_68 {dimension_numbers = #tpu.dot_dimension_numbers<[1], [0], [0], [1], [0, 0, 1, 1], [], []>} : vector<32x32xbf16>, vector<32x64xbf16>, vector<32x64xf32> -> vector<32x64xf32>
    %175 = vector.broadcast %42 : vector<1x64xf32> to vector<32x64xf32>
    %176 = arith.addf %174, %175 : vector<32x64xf32>
    %177 = arith.mulf %176, %176 : vector<32x64xf32>
    %178 = arith.mulf %176, %177 : vector<32x64xf32>
    %cst_69 = arith.constant 4.471500e-02 : f32
    %179 = vector.broadcast %cst_69 : f32 to vector<32x64xf32>
    %180 = arith.mulf %179, %178 : vector<32x64xf32>
    %181 = arith.addf %176, %180 : vector<32x64xf32>
    %cst_70 = arith.constant 0.797884583 : f32
    %182 = vector.broadcast %cst_70 : f32 to vector<32x64xf32>
    %183 = arith.mulf %182, %181 : vector<32x64xf32>
    %184 = math.tanh %183 : vector<32x64xf32>
    %cst_71 = arith.constant 1.000000e+00 : f32
    %185 = vector.broadcast %cst_71 : f32 to vector<32x64xf32>
    %186 = arith.addf %185, %184 : vector<32x64xf32>
    %cst_72 = arith.constant 5.000000e-01 : f32
    %187 = vector.broadcast %cst_72 : f32 to vector<32x64xf32>
    %188 = arith.mulf %187, %186 : vector<32x64xf32>
    %189 = arith.mulf %176, %188 : vector<32x64xf32>
    %190 = arith.truncf %189 : vector<32x64xf32> to vector<32x64xbf16>
    %cst_73 = arith.constant dense<0.000000e+00> : vector<32x32xf32>
    %191 = tpu.matmul %190, %43, %cst_73 {dimension_numbers = #tpu.dot_dimension_numbers<[1], [0], [0], [1], [0, 0, 1, 1], [], []>} : vector<32x64xbf16>, vector<64x32xbf16>, vector<32x32xf32> -> vector<32x32xf32>
    %192 = vector.broadcast %44 : vector<1x32xf32> to vector<32x32xf32>
    %193 = arith.addf %191, %192 : vector<32x32xf32>
    %194 = arith.addf %193, %172 : vector<32x32xf32>
    %cst_74 = arith.constant dense<0.000000e+00> : vector<32xf32>
    %195 = vector.multi_reduction <add>, %194, %cst_74 [1] : vector<32x32xf32> to vector<32xf32>
    %196 = vector.shape_cast %195 : vector<32xf32> to vector<32x1xf32>
    %cst_75 = arith.constant 3.200000e+01 : f32
    %197 = vector.broadcast %cst_75 : f32 to vector<32x1xf32>
    %198 = arith.divf %196, %197 : vector<32x1xf32>
    %199 = vector.broadcast %198 : vector<32x1xf32> to vector<32x32xf32>
    %200 = arith.subf %194, %199 : vector<32x32xf32>
    %201 = arith.mulf %200, %200 : vector<32x32xf32>
    %cst_76 = arith.constant dense<0.000000e+00> : vector<32xf32>
    %202 = vector.multi_reduction <add>, %201, %cst_76 [1] : vector<32x32xf32> to vector<32xf32>
    %203 = vector.shape_cast %202 : vector<32xf32> to vector<32x1xf32>
    %cst_77 = arith.constant 3.200000e+01 : f32
    %204 = vector.broadcast %cst_77 : f32 to vector<32x1xf32>
    %205 = arith.divf %203, %204 : vector<32x1xf32>
    %206 = vector.broadcast %198 : vector<32x1xf32> to vector<32x32xf32>
    %207 = arith.subf %194, %206 : vector<32x32xf32>
    %cst_78 = arith.constant 9.99999974E-6 : f32
    %208 = vector.broadcast %cst_78 : f32 to vector<32x1xf32>
    %209 = arith.addf %205, %208 : vector<32x1xf32>
    %210 = math.rsqrt %209 : vector<32x1xf32>
    %211 = vector.broadcast %210 : vector<32x1xf32> to vector<32x32xf32>
    %212 = arith.mulf %207, %211 : vector<32x32xf32>
    %213 = vector.broadcast %45 : vector<1x32xf32> to vector<32x32xf32>
    %214 = arith.mulf %212, %213 : vector<32x32xf32>
    %215 = vector.broadcast %46 : vector<1x32xf32> to vector<32x32xf32>
    %216 = arith.addf %214, %215 : vector<32x32xf32>
    %217 = vector.shape_cast %216 : vector<32x32xf32> to vector<4x8x32xf32>
    %218 = vector.extract_strided_slice %217 {offsets = [0, 0, 0], sizes = [4, 1, 32], strides = [1, 1, 1]} : vector<4x8x32xf32> to vector<4x1x32xf32>
    %c0_79 = arith.constant 0 : index
    %c0_80 = arith.constant 0 : index
    %c0_81 = arith.constant 0 : index
    %219 = vector.load %arg18[%c0_79, %c0_80, %c0_81] : memref<4x1x32xf32, #tpu.memory_space<vmem>>, vector<4x1x32xf32>
    tpu.vector_store %arg18[%c0_79, %c0_80, %c0_81], %218 {strides = array<i32>} : memref<4x1x32xf32, #tpu.memory_space<vmem>>, vector<4x1x32xf32>,
    return
  }
  func.func @transform_0(%arg0: i32) -> (i32, i32, i32) {
    %c0_i32 = arith.constant 0 : i32
    %c0_i32_0 = arith.constant 0 : i32
    %c0_i32_1 = arith.constant 0 : i32
    return %arg0, %c0_i32, %c0_i32_0 : i32, i32, i32
  }
  func.func @transform_1(%arg0: i32) -> (i32, i32, i32) {
    %c0_i32 = arith.constant 0 : i32
    %c0_i32_0 = arith.constant 0 : i32
    %c0_i32_1 = arith.constant 0 : i32
    return %arg0, %c0_i32, %c0_i32_0 : i32, i32, i32
  }
  func.func @transform_2(%arg0: i32) -> (i32, i32) {
    %c0_i32 = arith.constant 0 : i32
    %c0_i32_0 = arith.constant 0 : i32
    %c0_i32_1 = arith.constant 0 : i32
    return %c0_i32, %c0_i32_0 : i32, i32
  }
  func.func @transform_3(%arg0: i32) -> (i32, i32) {
    %c0_i32 = arith.constant 0 : i32
    %c0_i32_0 = arith.constant 0 : i32
    %c0_i32_1 = arith.constant 0 : i32
    return %c0_i32, %c0_i32_0 : i32, i32
  }
  func.func @transform_4(%arg0: i32) -> (i32, i32) {
    %c0_i32 = arith.constant 0 : i32
    %c0_i32_0 = arith.constant 0 : i32
    %c0_i32_1 = arith.constant 0 : i32
    return %c0_i32, %c0_i32_0 : i32, i32
  }
  func.func @transform_5(%arg0: i32) -> (i32, i32) {
    %c0_i32 = arith.constant 0 : i32
    %c0_i32_0 = arith.constant 0 : i32
    %c0_i32_1 = arith.constant 0 : i32
    return %c0_i32, %c0_i32_0 : i32, i32
  }
  func.func @transform_6(%arg0: i32) -> (i32, i32) {
    %c0_i32 = arith.constant 0 : i32
    %c0_i32_0 = arith.constant 0 : i32
    %c0_i32_1 = arith.constant 0 : i32
    return %c0_i32, %c0_i32_0 : i32, i32
  }
  func.func @transform_7(%arg0: i32) -> (i32, i32) {
    %c0_i32 = arith.constant 0 : i32
    %c0_i32_0 = arith.constant 0 : i32
    %c0_i32_1 = arith.constant 0 : i32
    return %c0_i32, %c0_i32_0 : i32, i32
  }
  func.func @transform_8(%arg0: i32) -> (i32, i32) {
    %c0_i32 = arith.constant 0 : i32
    %c0_i32_0 = arith.constant 0 : i32
    %c0_i32_1 = arith.constant 0 : i32
    return %c0_i32, %c0_i32_0 : i32, i32
  }
  func.func @transform_9(%arg0: i32) -> (i32, i32) {
    %c0_i32 = arith.constant 0 : i32
    %c0_i32_0 = arith.constant 0 : i32
    %c0_i32_1 = arith.constant 0 : i32
    return %c0_i32, %c0_i32_0 : i32, i32
  }
  func.func @transform_10(%arg0: i32) -> (i32, i32) {
    %c0_i32 = arith.constant 0 : i32
    %c0_i32_0 = arith.constant 0 : i32
    %c0_i32_1 = arith.constant 0 : i32
    return %c0_i32, %c0_i32_0 : i32, i32
  }
  func.func @transform_11(%arg0: i32) -> (i32, i32) {
    %c0_i32 = arith.constant 0 : i32
    %c0_i32_0 = arith.constant 0 : i32
    %c0_i32_1 = arith.constant 0 : i32
    return %c0_i32, %c0_i32_0 : i32, i32
  }
  func.func @transform_12(%arg0: i32) -> (i32, i32) {
    %c0_i32 = arith.constant 0 : i32
    %c0_i32_0 = arith.constant 0 : i32
    %c0_i32_1 = arith.constant 0 : i32
    return %c0_i32, %c0_i32_0 : i32, i32
  }
  func.func @transform_13(%arg0: i32) -> (i32, i32) {
    %c0_i32 = arith.constant 0 : i32
    %c0_i32_0 = arith.constant 0 : i32
    %c0_i32_1 = arith.constant 0 : i32
    return %c0_i32, %c0_i32_0 : i32, i32
  }
  func.func @transform_14(%arg0: i32) -> (i32, i32) {
    %c0_i32 = arith.constant 0 : i32
    %c0_i32_0 = arith.constant 0 : i32
    %c0_i32_1 = arith.constant 0 : i32
    return %c0_i32, %c0_i32_0 : i32, i32
  }
  func.func @transform_15(%arg0: i32) -> (i32, i32) {
    %c0_i32 = arith.constant 0 : i32
    %c0_i32_0 = arith.constant 0 : i32
    %c0_i32_1 = arith.constant 0 : i32
    return %c0_i32, %c0_i32_0 : i32, i32
  }
  func.func @transform_16(%arg0: i32) -> (i32, i32) {
    %c0_i32 = arith.constant 0 : i32
    %c0_i32_0 = arith.constant 0 : i32
    %c0_i32_1 = arith.constant 0 : i32
    return %c0_i32, %c0_i32_0 : i32, i32
  }
  func.func @transform_17(%arg0: i32) -> (i32, i32, i32) {
    %c0_i32 = arith.constant 0 : i32
    %c0_i32_0 = arith.constant 0 : i32
    %c0_i32_1 = arith.constant 0 : i32
    return %arg0, %c0_i32, %c0_i32_0 : i32, i32, i32
  }
}

module attributes {stable_mosaic.version = 11 : i64} {
  func.func @_segment_encoder_head_kernel(%arg0: i32, %arg1: memref<2x4x32xf32, #tpu.memory_space<vmem>>, %arg2: memref<4x32xf32, #tpu.memory_space<vmem>>, %arg3: memref<1x32xf32, #tpu.memory_space<vmem>>, %arg4: memref<1x32xf32, #tpu.memory_space<vmem>>, %arg5: memref<32x96xbf16, #tpu.memory_space<vmem>>, %arg6: memref<1x96xf32, #tpu.memory_space<vmem>>, %arg7: memref<32x32xbf16, #tpu.memory_space<vmem>>, %arg8: memref<1x32xf32, #tpu.memory_space<vmem>>, %arg9: memref<1x32xf32, #tpu.memory_space<vmem>>, %arg10: memref<1x32xf32, #tpu.memory_space<vmem>>, %arg11: memref<32x64xbf16, #tpu.memory_space<vmem>>, %arg12: memref<1x64xf32, #tpu.memory_space<vmem>>, %arg13: memref<64x32xbf16, #tpu.memory_space<vmem>>, %arg14: memref<1x32xf32, #tpu.memory_space<vmem>>, %arg15: memref<1x32xf32, #tpu.memory_space<vmem>>, %arg16: memref<1x32xf32, #tpu.memory_space<vmem>>, %arg17: memref<32x2xf32, #tpu.memory_space<vmem>>, %arg18: memref<1x2xf32, #tpu.memory_space<vmem>>, %arg19: memref<2x2xf32, #tpu.memory_space<vmem>>, %arg20: memref<2x2xf32, #tpu.memory_space<vmem>>, %arg21: memref<2x2xf32, #tpu.memory_space<vmem>>, %arg22: memref<2x32xf32, #tpu.memory_space<vmem>>, %arg23: memref<2x1xf32, #tpu.memory_space<vmem>>) attributes {dimension_semantics = [#tpu.dimension_semantics<arbitrary>], iteration_bounds = array<i64: 1>, scalar_prefetch = 0 : i64, scratch_operands = 0 : i64, tpu.core_type = #tpu.core_type<tc>, window_params = [{pipeline_mode = #tpu.pipeline_mode<synchronous>, transform_indices = @transform_0, window_bounds = array<i64: 2, 4, 32>}, {pipeline_mode = #tpu.pipeline_mode<synchronous>, transform_indices = @transform_1, window_bounds = array<i64: 4, 32>}, {pipeline_mode = #tpu.pipeline_mode<synchronous>, transform_indices = @transform_2, window_bounds = array<i64: 1, 32>}, {pipeline_mode = #tpu.pipeline_mode<synchronous>, transform_indices = @transform_3, window_bounds = array<i64: 1, 32>}, {pipeline_mode = #tpu.pipeline_mode<synchronous>, transform_indices = @transform_4, window_bounds = array<i64: 32, 96>}, {pipeline_mode = #tpu.pipeline_mode<synchronous>, transform_indices = @transform_5, window_bounds = array<i64: 1, 96>}, {pipeline_mode = #tpu.pipeline_mode<synchronous>, transform_indices = @transform_6, window_bounds = array<i64: 32, 32>}, {pipeline_mode = #tpu.pipeline_mode<synchronous>, transform_indices = @transform_7, window_bounds = array<i64: 1, 32>}, {pipeline_mode = #tpu.pipeline_mode<synchronous>, transform_indices = @transform_8, window_bounds = array<i64: 1, 32>}, {pipeline_mode = #tpu.pipeline_mode<synchronous>, transform_indices = @transform_9, window_bounds = array<i64: 1, 32>}, {pipeline_mode = #tpu.pipeline_mode<synchronous>, transform_indices = @transform_10, window_bounds = array<i64: 32, 64>}, {pipeline_mode = #tpu.pipeline_mode<synchronous>, transform_indices = @transform_11, window_bounds = array<i64: 1, 64>}, {pipeline_mode = #tpu.pipeline_mode<synchronous>, transform_indices = @transform_12, window_bounds = array<i64: 64, 32>}, {pipeline_mode = #tpu.pipeline_mode<synchronous>, transform_indices = @transform_13, window_bounds = array<i64: 1, 32>}, {pipeline_mode = #tpu.pipeline_mode<synchronous>, transform_indices = @transform_14, window_bounds = array<i64: 1, 32>}, {pipeline_mode = #tpu.pipeline_mode<synchronous>, transform_indices = @transform_15, window_bounds = array<i64: 1, 32>}, {pipeline_mode = #tpu.pipeline_mode<synchronous>, transform_indices = @transform_16, window_bounds = array<i64: 32, 2>}, {pipeline_mode = #tpu.pipeline_mode<synchronous>, transform_indices = @transform_17, window_bounds = array<i64: 1, 2>}, {pipeline_mode = #tpu.pipeline_mode<synchronous>, transform_indices = @transform_18, window_bounds = array<i64: 2, 2>}, {pipeline_mode = #tpu.pipeline_mode<synchronous>, transform_indices = @transform_19, window_bounds = array<i64: 2, 2>}, {pipeline_mode = #tpu.pipeline_mode<synchronous>, transform_indices = @transform_20, window_bounds = array<i64: 2, 2>}, {pipeline_mode = #tpu.pipeline_mode<synchronous>, transform_indices = @transform_21, window_bounds = array<i64: 2, 32>}, {pipeline_mode = #tpu.pipeline_mode<synchronous>, transform_indices = @transform_22, window_bounds = array<i64: 2, 1>}]} {
    %c0 = arith.constant 0 : index
    %c0_0 = arith.constant 0 : index
    %c0_1 = arith.constant 0 : index
    %0 = vector.load %arg1[%c0, %c0_0, %c0_1] : memref<2x4x32xf32, #tpu.memory_space<vmem>>, vector<2x4x32xf32>
    %c0_2 = arith.constant 0 : index
    %c0_3 = arith.constant 0 : index
    %1 = vector.load %arg2[%c0_2, %c0_3] : memref<4x32xf32, #tpu.memory_space<vmem>>, vector<4x32xf32>
    %2 = vector.shape_cast %1 : vector<4x32xf32> to vector<1x4x32xf32>
    %3 = vector.broadcast %2 : vector<1x4x32xf32> to vector<2x4x32xf32>
    %4 = arith.addf %0, %3 : vector<2x4x32xf32>
    %5 = vector.shape_cast %4 : vector<2x4x32xf32> to vector<8x32xf32>
    %c0_4 = arith.constant 0 : index
    %c0_5 = arith.constant 0 : index
    %6 = vector.load %arg3[%c0_4, %c0_5] : memref<1x32xf32, #tpu.memory_space<vmem>>, vector<1x32xf32>
    %c0_6 = arith.constant 0 : index
    %c0_7 = arith.constant 0 : index
    %7 = vector.load %arg4[%c0_6, %c0_7] : memref<1x32xf32, #tpu.memory_space<vmem>>, vector<1x32xf32>
    %cst = arith.constant dense<0.000000e+00> : vector<8xf32>
    %8 = vector.multi_reduction <add>, %5, %cst [1] : vector<8x32xf32> to vector<8xf32>
    %9 = vector.shape_cast %8 : vector<8xf32> to vector<8x1xf32>
    %cst_8 = arith.constant 3.200000e+01 : f32
    %10 = vector.broadcast %cst_8 : f32 to vector<8x1xf32>
    %11 = arith.divf %9, %10 : vector<8x1xf32>
    %12 = vector.broadcast %11 : vector<8x1xf32> to vector<8x32xf32>
    %13 = arith.subf %5, %12 : vector<8x32xf32>
    %14 = arith.mulf %13, %13 : vector<8x32xf32>
    %cst_9 = arith.constant dense<0.000000e+00> : vector<8xf32>
    %15 = vector.multi_reduction <add>, %14, %cst_9 [1] : vector<8x32xf32> to vector<8xf32>
    %16 = vector.shape_cast %15 : vector<8xf32> to vector<8x1xf32>
    %cst_10 = arith.constant 3.200000e+01 : f32
    %17 = vector.broadcast %cst_10 : f32 to vector<8x1xf32>
    %18 = arith.divf %16, %17 : vector<8x1xf32>
    %19 = vector.broadcast %11 : vector<8x1xf32> to vector<8x32xf32>
    %20 = arith.subf %5, %19 : vector<8x32xf32>
    %cst_11 = arith.constant 9.99999974E-6 : f32
    %21 = vector.broadcast %cst_11 : f32 to vector<8x1xf32>
    %22 = arith.addf %18, %21 : vector<8x1xf32>
    %23 = math.rsqrt %22 : vector<8x1xf32>
    %24 = vector.broadcast %23 : vector<8x1xf32> to vector<8x32xf32>
    %25 = arith.mulf %20, %24 : vector<8x32xf32>
    %26 = vector.broadcast %6 : vector<1x32xf32> to vector<8x32xf32>
    %27 = arith.mulf %25, %26 : vector<8x32xf32>
    %28 = vector.broadcast %7 : vector<1x32xf32> to vector<8x32xf32>
    %29 = arith.addf %27, %28 : vector<8x32xf32>
    %c0_12 = arith.constant 0 : index
    %c0_13 = arith.constant 0 : index
    %30 = vector.load %arg5[%c0_12, %c0_13] : memref<32x96xbf16, #tpu.memory_space<vmem>>, vector<32x96xbf16>
    %c0_14 = arith.constant 0 : index
    %c0_15 = arith.constant 0 : index
    %31 = vector.load %arg6[%c0_14, %c0_15] : memref<1x96xf32, #tpu.memory_space<vmem>>, vector<1x96xf32>
    %c0_16 = arith.constant 0 : index
    %c0_17 = arith.constant 0 : index
    %32 = vector.load %arg7[%c0_16, %c0_17] : memref<32x32xbf16, #tpu.memory_space<vmem>>, vector<32x32xbf16>
    %c0_18 = arith.constant 0 : index
    %c0_19 = arith.constant 0 : index
    %33 = vector.load %arg8[%c0_18, %c0_19] : memref<1x32xf32, #tpu.memory_space<vmem>>, vector<1x32xf32>
    %c0_20 = arith.constant 0 : index
    %c0_21 = arith.constant 0 : index
    %34 = vector.load %arg9[%c0_20, %c0_21] : memref<1x32xf32, #tpu.memory_space<vmem>>, vector<1x32xf32>
    %c0_22 = arith.constant 0 : index
    %c0_23 = arith.constant 0 : index
    %35 = vector.load %arg10[%c0_22, %c0_23] : memref<1x32xf32, #tpu.memory_space<vmem>>, vector<1x32xf32>
    %c0_24 = arith.constant 0 : index
    %c0_25 = arith.constant 0 : index
    %36 = vector.load %arg11[%c0_24, %c0_25] : memref<32x64xbf16, #tpu.memory_space<vmem>>, vector<32x64xbf16>
    %c0_26 = arith.constant 0 : index
    %c0_27 = arith.constant 0 : index
    %37 = vector.load %arg12[%c0_26, %c0_27] : memref<1x64xf32, #tpu.memory_space<vmem>>, vector<1x64xf32>
    %c0_28 = arith.constant 0 : index
    %c0_29 = arith.constant 0 : index
    %38 = vector.load %arg13[%c0_28, %c0_29] : memref<64x32xbf16, #tpu.memory_space<vmem>>, vector<64x32xbf16>
    %c0_30 = arith.constant 0 : index
    %c0_31 = arith.constant 0 : index
    %39 = vector.load %arg14[%c0_30, %c0_31] : memref<1x32xf32, #tpu.memory_space<vmem>>, vector<1x32xf32>
    %c0_32 = arith.constant 0 : index
    %c0_33 = arith.constant 0 : index
    %40 = vector.load %arg15[%c0_32, %c0_33] : memref<1x32xf32, #tpu.memory_space<vmem>>, vector<1x32xf32>
    %c0_34 = arith.constant 0 : index
    %c0_35 = arith.constant 0 : index
    %41 = vector.load %arg16[%c0_34, %c0_35] : memref<1x32xf32, #tpu.memory_space<vmem>>, vector<1x32xf32>
    %42 = arith.truncf %29 : vector<8x32xf32> to vector<8x32xbf16>
    %cst_36 = arith.constant dense<0.000000e+00> : vector<8x96xf32>
    %43 = tpu.matmul %42, %30, %cst_36 {dimension_numbers = #tpu.dot_dimension_numbers<[1], [0], [0], [1], [0, 0, 1, 1], [], []>} : vector<8x32xbf16>, vector<32x96xbf16>, vector<8x96xf32> -> vector<8x96xf32>
    %44 = vector.broadcast %31 : vector<1x96xf32> to vector<8x96xf32>
    %45 = arith.addf %43, %44 : vector<8x96xf32>
    %46 = vector.shape_cast %45 : vector<8x96xf32> to vector<2x4x96xf32>
    %47 = vector.extract_strided_slice %46 {offsets = [0, 0, 0], sizes = [2, 4, 8], strides = [1, 1, 1]} : vector<2x4x96xf32> to vector<2x4x8xf32>
    %48 = vector.extract_strided_slice %46 {offsets = [0, 0, 32], sizes = [2, 4, 8], strides = [1, 1, 1]} : vector<2x4x96xf32> to vector<2x4x8xf32>
    %49 = vector.extract_strided_slice %46 {offsets = [0, 0, 64], sizes = [2, 4, 8], strides = [1, 1, 1]} : vector<2x4x96xf32> to vector<2x4x8xf32>
    %50 = arith.truncf %47 : vector<2x4x8xf32> to vector<2x4x8xbf16>
    %51 = arith.truncf %48 : vector<2x4x8xf32> to vector<2x4x8xbf16>
    "tpu.trace_start"() <{level = 10 : i32, message = "bqd,bkd->bqk"}> : () -> ()
    %cst_37 = arith.constant dense<0.000000e+00> : vector<2x4x4xf32>
    %52 = tpu.matmul %50, %51, %cst_37 {dimension_numbers = #tpu.dot_dimension_numbers<[2], [2], [1], [1], [0, 0, 0, 1, 1, 1], [0], [0]>} : vector<2x4x8xbf16>, vector<2x4x8xbf16>, vector<2x4x4xf32> -> vector<2x4x4xf32>
    "tpu.trace_stop"() : () -> ()
    %cst_38 = arith.constant 0.353553385 : f32
    %53 = vector.broadcast %cst_38 : f32 to vector<2x4x4xf32>
    %54 = arith.mulf %52, %53 : vector<2x4x4xf32>
    %cst_39 = arith.constant dense<0xFF800000> : vector<2x4xf32>
    %55 = vector.multi_reduction <maximumf>, %54, %cst_39 [2] : vector<2x4x4xf32> to vector<2x4xf32>
    %56 = vector.shape_cast %55 : vector<2x4xf32> to vector<2x4x1xf32>
    %57 = vector.broadcast %56 : vector<2x4x1xf32> to vector<2x4x4xf32>
    %58 = arith.subf %54, %57 : vector<2x4x4xf32>
    %59 = math.exp %58 : vector<2x4x4xf32>
    %cst_40 = arith.constant dense<0.000000e+00> : vector<2x4xf32>
    %60 = vector.multi_reduction <add>, %59, %cst_40 [2] : vector<2x4x4xf32> to vector<2x4xf32>
    %61 = vector.shape_cast %60 : vector<2x4xf32> to vector<2x4x1xf32>
    %62 = tpu.reciprocal %61 {approx = true} : vector<2x4x1xf32> -> vector<2x4x1xf32>
    %63 = vector.broadcast %62 : vector<2x4x1xf32> to vector<2x4x4xf32>
    %64 = arith.mulf %59, %63 : vector<2x4x4xf32>
    %65 = arith.truncf %64 : vector<2x4x4xf32> to vector<2x4x4xbf16>
    %66 = arith.truncf %49 : vector<2x4x8xf32> to vector<2x4x8xbf16>
    "tpu.trace_start"() <{level = 10 : i32, message = "bqk,bkd->bqd"}> : () -> ()
    %cst_41 = arith.constant dense<0.000000e+00> : vector<2x4x8xf32>
    %67 = tpu.matmul %65, %66, %cst_41 {dimension_numbers = #tpu.dot_dimension_numbers<[2], [1], [1], [2], [0, 0, 0, 1, 1, 2], [0], [0]>} : vector<2x4x4xbf16>, vector<2x4x8xbf16>, vector<2x4x8xf32> -> vector<2x4x8xf32>
    "tpu.trace_stop"() : () -> ()
    %68 = vector.extract_strided_slice %46 {offsets = [0, 0, 8], sizes = [2, 4, 8], strides = [1, 1, 1]} : vector<2x4x96xf32> to vector<2x4x8xf32>
    %69 = vector.extract_strided_slice %46 {offsets = [0, 0, 40], sizes = [2, 4, 8], strides = [1, 1, 1]} : vector<2x4x96xf32> to vector<2x4x8xf32>
    %70 = vector.extract_strided_slice %46 {offsets = [0, 0, 72], sizes = [2, 4, 8], strides = [1, 1, 1]} : vector<2x4x96xf32> to vector<2x4x8xf32>
    %71 = arith.truncf %68 : vector<2x4x8xf32> to vector<2x4x8xbf16>
    %72 = arith.truncf %69 : vector<2x4x8xf32> to vector<2x4x8xbf16>
    "tpu.trace_start"() <{level = 10 : i32, message = "bqd,bkd->bqk"}> : () -> ()
    %cst_42 = arith.constant dense<0.000000e+00> : vector<2x4x4xf32>
    %73 = tpu.matmul %71, %72, %cst_42 {dimension_numbers = #tpu.dot_dimension_numbers<[2], [2], [1], [1], [0, 0, 0, 1, 1, 1], [0], [0]>} : vector<2x4x8xbf16>, vector<2x4x8xbf16>, vector<2x4x4xf32> -> vector<2x4x4xf32>
    "tpu.trace_stop"() : () -> ()
    %cst_43 = arith.constant 0.353553385 : f32
    %74 = vector.broadcast %cst_43 : f32 to vector<2x4x4xf32>
    %75 = arith.mulf %73, %74 : vector<2x4x4xf32>
    %cst_44 = arith.constant dense<0xFF800000> : vector<2x4xf32>
    %76 = vector.multi_reduction <maximumf>, %75, %cst_44 [2] : vector<2x4x4xf32> to vector<2x4xf32>
    %77 = vector.shape_cast %76 : vector<2x4xf32> to vector<2x4x1xf32>
    %78 = vector.broadcast %77 : vector<2x4x1xf32> to vector<2x4x4xf32>
    %79 = arith.subf %75, %78 : vector<2x4x4xf32>
    %80 = math.exp %79 : vector<2x4x4xf32>
    %cst_45 = arith.constant dense<0.000000e+00> : vector<2x4xf32>
    %81 = vector.multi_reduction <add>, %80, %cst_45 [2] : vector<2x4x4xf32> to vector<2x4xf32>
    %82 = vector.shape_cast %81 : vector<2x4xf32> to vector<2x4x1xf32>
    %83 = tpu.reciprocal %82 {approx = true} : vector<2x4x1xf32> -> vector<2x4x1xf32>
    %84 = vector.broadcast %83 : vector<2x4x1xf32> to vector<2x4x4xf32>
    %85 = arith.mulf %80, %84 : vector<2x4x4xf32>
    %86 = arith.truncf %85 : vector<2x4x4xf32> to vector<2x4x4xbf16>
    %87 = arith.truncf %70 : vector<2x4x8xf32> to vector<2x4x8xbf16>
    "tpu.trace_start"() <{level = 10 : i32, message = "bqk,bkd->bqd"}> : () -> ()
    %cst_46 = arith.constant dense<0.000000e+00> : vector<2x4x8xf32>
    %88 = tpu.matmul %86, %87, %cst_46 {dimension_numbers = #tpu.dot_dimension_numbers<[2], [1], [1], [2], [0, 0, 0, 1, 1, 2], [0], [0]>} : vector<2x4x4xbf16>, vector<2x4x8xbf16>, vector<2x4x8xf32> -> vector<2x4x8xf32>
    "tpu.trace_stop"() : () -> ()
    %89 = vector.extract_strided_slice %46 {offsets = [0, 0, 16], sizes = [2, 4, 8], strides = [1, 1, 1]} : vector<2x4x96xf32> to vector<2x4x8xf32>
    %90 = vector.extract_strided_slice %46 {offsets = [0, 0, 48], sizes = [2, 4, 8], strides = [1, 1, 1]} : vector<2x4x96xf32> to vector<2x4x8xf32>
    %91 = vector.extract_strided_slice %46 {offsets = [0, 0, 80], sizes = [2, 4, 8], strides = [1, 1, 1]} : vector<2x4x96xf32> to vector<2x4x8xf32>
    %92 = arith.truncf %89 : vector<2x4x8xf32> to vector<2x4x8xbf16>
    %93 = arith.truncf %90 : vector<2x4x8xf32> to vector<2x4x8xbf16>
    "tpu.trace_start"() <{level = 10 : i32, message = "bqd,bkd->bqk"}> : () -> ()
    %cst_47 = arith.constant dense<0.000000e+00> : vector<2x4x4xf32>
    %94 = tpu.matmul %92, %93, %cst_47 {dimension_numbers = #tpu.dot_dimension_numbers<[2], [2], [1], [1], [0, 0, 0, 1, 1, 1], [0], [0]>} : vector<2x4x8xbf16>, vector<2x4x8xbf16>, vector<2x4x4xf32> -> vector<2x4x4xf32>
    "tpu.trace_stop"() : () -> ()
    %cst_48 = arith.constant 0.353553385 : f32
    %95 = vector.broadcast %cst_48 : f32 to vector<2x4x4xf32>
    %96 = arith.mulf %94, %95 : vector<2x4x4xf32>
    %cst_49 = arith.constant dense<0xFF800000> : vector<2x4xf32>
    %97 = vector.multi_reduction <maximumf>, %96, %cst_49 [2] : vector<2x4x4xf32> to vector<2x4xf32>
    %98 = vector.shape_cast %97 : vector<2x4xf32> to vector<2x4x1xf32>
    %99 = vector.broadcast %98 : vector<2x4x1xf32> to vector<2x4x4xf32>
    %100 = arith.subf %96, %99 : vector<2x4x4xf32>
    %101 = math.exp %100 : vector<2x4x4xf32>
    %cst_50 = arith.constant dense<0.000000e+00> : vector<2x4xf32>
    %102 = vector.multi_reduction <add>, %101, %cst_50 [2] : vector<2x4x4xf32> to vector<2x4xf32>
    %103 = vector.shape_cast %102 : vector<2x4xf32> to vector<2x4x1xf32>
    %104 = tpu.reciprocal %103 {approx = true} : vector<2x4x1xf32> -> vector<2x4x1xf32>
    %105 = vector.broadcast %104 : vector<2x4x1xf32> to vector<2x4x4xf32>
    %106 = arith.mulf %101, %105 : vector<2x4x4xf32>
    %107 = arith.truncf %106 : vector<2x4x4xf32> to vector<2x4x4xbf16>
    %108 = arith.truncf %91 : vector<2x4x8xf32> to vector<2x4x8xbf16>
    "tpu.trace_start"() <{level = 10 : i32, message = "bqk,bkd->bqd"}> : () -> ()
    %cst_51 = arith.constant dense<0.000000e+00> : vector<2x4x8xf32>
    %109 = tpu.matmul %107, %108, %cst_51 {dimension_numbers = #tpu.dot_dimension_numbers<[2], [1], [1], [2], [0, 0, 0, 1, 1, 2], [0], [0]>} : vector<2x4x4xbf16>, vector<2x4x8xbf16>, vector<2x4x8xf32> -> vector<2x4x8xf32>
    "tpu.trace_stop"() : () -> ()
    %110 = vector.extract_strided_slice %46 {offsets = [0, 0, 24], sizes = [2, 4, 8], strides = [1, 1, 1]} : vector<2x4x96xf32> to vector<2x4x8xf32>
    %111 = vector.extract_strided_slice %46 {offsets = [0, 0, 56], sizes = [2, 4, 8], strides = [1, 1, 1]} : vector<2x4x96xf32> to vector<2x4x8xf32>
    %112 = vector.extract_strided_slice %46 {offsets = [0, 0, 88], sizes = [2, 4, 8], strides = [1, 1, 1]} : vector<2x4x96xf32> to vector<2x4x8xf32>
    %113 = arith.truncf %110 : vector<2x4x8xf32> to vector<2x4x8xbf16>
    %114 = arith.truncf %111 : vector<2x4x8xf32> to vector<2x4x8xbf16>
    "tpu.trace_start"() <{level = 10 : i32, message = "bqd,bkd->bqk"}> : () -> ()
    %cst_52 = arith.constant dense<0.000000e+00> : vector<2x4x4xf32>
    %115 = tpu.matmul %113, %114, %cst_52 {dimension_numbers = #tpu.dot_dimension_numbers<[2], [2], [1], [1], [0, 0, 0, 1, 1, 1], [0], [0]>} : vector<2x4x8xbf16>, vector<2x4x8xbf16>, vector<2x4x4xf32> -> vector<2x4x4xf32>
    "tpu.trace_stop"() : () -> ()
    %cst_53 = arith.constant 0.353553385 : f32
    %116 = vector.broadcast %cst_53 : f32 to vector<2x4x4xf32>
    %117 = arith.mulf %115, %116 : vector<2x4x4xf32>
    %cst_54 = arith.constant dense<0xFF800000> : vector<2x4xf32>
    %118 = vector.multi_reduction <maximumf>, %117, %cst_54 [2] : vector<2x4x4xf32> to vector<2x4xf32>
    %119 = vector.shape_cast %118 : vector<2x4xf32> to vector<2x4x1xf32>
    %120 = vector.broadcast %119 : vector<2x4x1xf32> to vector<2x4x4xf32>
    %121 = arith.subf %117, %120 : vector<2x4x4xf32>
    %122 = math.exp %121 : vector<2x4x4xf32>
    %cst_55 = arith.constant dense<0.000000e+00> : vector<2x4xf32>
    %123 = vector.multi_reduction <add>, %122, %cst_55 [2] : vector<2x4x4xf32> to vector<2x4xf32>
    %124 = vector.shape_cast %123 : vector<2x4xf32> to vector<2x4x1xf32>
    %125 = tpu.reciprocal %124 {approx = true} : vector<2x4x1xf32> -> vector<2x4x1xf32>
    %126 = vector.broadcast %125 : vector<2x4x1xf32> to vector<2x4x4xf32>
    %127 = arith.mulf %122, %126 : vector<2x4x4xf32>
    %128 = arith.truncf %127 : vector<2x4x4xf32> to vector<2x4x4xbf16>
    %129 = arith.truncf %112 : vector<2x4x8xf32> to vector<2x4x8xbf16>
    "tpu.trace_start"() <{level = 10 : i32, message = "bqk,bkd->bqd"}> : () -> ()
    %cst_56 = arith.constant dense<0.000000e+00> : vector<2x4x8xf32>
    %130 = tpu.matmul %128, %129, %cst_56 {dimension_numbers = #tpu.dot_dimension_numbers<[2], [1], [1], [2], [0, 0, 0, 1, 1, 2], [0], [0]>} : vector<2x4x4xbf16>, vector<2x4x8xbf16>, vector<2x4x8xf32> -> vector<2x4x8xf32>
    "tpu.trace_stop"() : () -> ()
    %131 = tpu.concatenate %67, %88, %109, %130 in 2 : vector<2x4x8xf32>, vector<2x4x8xf32>, vector<2x4x8xf32>, vector<2x4x8xf32> -> vector<2x4x32xf32>
    %132 = vector.shape_cast %131 : vector<2x4x32xf32> to vector<8x32xf32>
    %133 = arith.truncf %132 : vector<8x32xf32> to vector<8x32xbf16>
    %cst_57 = arith.constant dense<0.000000e+00> : vector<8x32xf32>
    %134 = tpu.matmul %133, %32, %cst_57 {dimension_numbers = #tpu.dot_dimension_numbers<[1], [0], [0], [1], [0, 0, 1, 1], [], []>} : vector<8x32xbf16>, vector<32x32xbf16>, vector<8x32xf32> -> vector<8x32xf32>
    %135 = vector.broadcast %33 : vector<1x32xf32> to vector<8x32xf32>
    %136 = arith.addf %134, %135 : vector<8x32xf32>
    %137 = arith.addf %136, %29 : vector<8x32xf32>
    %cst_58 = arith.constant dense<0.000000e+00> : vector<8xf32>
    %138 = vector.multi_reduction <add>, %137, %cst_58 [1] : vector<8x32xf32> to vector<8xf32>
    %139 = vector.shape_cast %138 : vector<8xf32> to vector<8x1xf32>
    %cst_59 = arith.constant 3.200000e+01 : f32
    %140 = vector.broadcast %cst_59 : f32 to vector<8x1xf32>
    %141 = arith.divf %139, %140 : vector<8x1xf32>
    %142 = vector.broadcast %141 : vector<8x1xf32> to vector<8x32xf32>
    %143 = arith.subf %137, %142 : vector<8x32xf32>
    %144 = arith.mulf %143, %143 : vector<8x32xf32>
    %cst_60 = arith.constant dense<0.000000e+00> : vector<8xf32>
    %145 = vector.multi_reduction <add>, %144, %cst_60 [1] : vector<8x32xf32> to vector<8xf32>
    %146 = vector.shape_cast %145 : vector<8xf32> to vector<8x1xf32>
    %cst_61 = arith.constant 3.200000e+01 : f32
    %147 = vector.broadcast %cst_61 : f32 to vector<8x1xf32>
    %148 = arith.divf %146, %147 : vector<8x1xf32>
    %149 = vector.broadcast %141 : vector<8x1xf32> to vector<8x32xf32>
    %150 = arith.subf %137, %149 : vector<8x32xf32>
    %cst_62 = arith.constant 9.99999974E-6 : f32
    %151 = vector.broadcast %cst_62 : f32 to vector<8x1xf32>
    %152 = arith.addf %148, %151 : vector<8x1xf32>
    %153 = math.rsqrt %152 : vector<8x1xf32>
    %154 = vector.broadcast %153 : vector<8x1xf32> to vector<8x32xf32>
    %155 = arith.mulf %150, %154 : vector<8x32xf32>
    %156 = vector.broadcast %34 : vector<1x32xf32> to vector<8x32xf32>
    %157 = arith.mulf %155, %156 : vector<8x32xf32>
    %158 = vector.broadcast %35 : vector<1x32xf32> to vector<8x32xf32>
    %159 = arith.addf %157, %158 : vector<8x32xf32>
    %160 = arith.truncf %159 : vector<8x32xf32> to vector<8x32xbf16>
    %cst_63 = arith.constant dense<0.000000e+00> : vector<8x64xf32>
    %161 = tpu.matmul %160, %36, %cst_63 {dimension_numbers = #tpu.dot_dimension_numbers<[1], [0], [0], [1], [0, 0, 1, 1], [], []>} : vector<8x32xbf16>, vector<32x64xbf16>, vector<8x64xf32> -> vector<8x64xf32>
    %162 = vector.broadcast %37 : vector<1x64xf32> to vector<8x64xf32>
    %163 = arith.addf %161, %162 : vector<8x64xf32>
    %164 = arith.mulf %163, %163 : vector<8x64xf32>
    %165 = arith.mulf %163, %164 : vector<8x64xf32>
    %cst_64 = arith.constant 4.471500e-02 : f32
    %166 = vector.broadcast %cst_64 : f32 to vector<8x64xf32>
    %167 = arith.mulf %166, %165 : vector<8x64xf32>
    %168 = arith.addf %163, %167 : vector<8x64xf32>
    %cst_65 = arith.constant 0.797884583 : f32
    %169 = vector.broadcast %cst_65 : f32 to vector<8x64xf32>
    %170 = arith.mulf %169, %168 : vector<8x64xf32>
    %171 = math.tanh %170 : vector<8x64xf32>
    %cst_66 = arith.constant 1.000000e+00 : f32
    %172 = vector.broadcast %cst_66 : f32 to vector<8x64xf32>
    %173 = arith.addf %172, %171 : vector<8x64xf32>
    %cst_67 = arith.constant 5.000000e-01 : f32
    %174 = vector.broadcast %cst_67 : f32 to vector<8x64xf32>
    %175 = arith.mulf %174, %173 : vector<8x64xf32>
    %176 = arith.mulf %163, %175 : vector<8x64xf32>
    %177 = arith.truncf %176 : vector<8x64xf32> to vector<8x64xbf16>
    %cst_68 = arith.constant dense<0.000000e+00> : vector<8x32xf32>
    %178 = tpu.matmul %177, %38, %cst_68 {dimension_numbers = #tpu.dot_dimension_numbers<[1], [0], [0], [1], [0, 0, 1, 1], [], []>} : vector<8x64xbf16>, vector<64x32xbf16>, vector<8x32xf32> -> vector<8x32xf32>
    %179 = vector.broadcast %39 : vector<1x32xf32> to vector<8x32xf32>
    %180 = arith.addf %178, %179 : vector<8x32xf32>
    %181 = arith.addf %180, %159 : vector<8x32xf32>
    %cst_69 = arith.constant dense<0.000000e+00> : vector<8xf32>
    %182 = vector.multi_reduction <add>, %181, %cst_69 [1] : vector<8x32xf32> to vector<8xf32>
    %183 = vector.shape_cast %182 : vector<8xf32> to vector<8x1xf32>
    %cst_70 = arith.constant 3.200000e+01 : f32
    %184 = vector.broadcast %cst_70 : f32 to vector<8x1xf32>
    %185 = arith.divf %183, %184 : vector<8x1xf32>
    %186 = vector.broadcast %185 : vector<8x1xf32> to vector<8x32xf32>
    %187 = arith.subf %181, %186 : vector<8x32xf32>
    %188 = arith.mulf %187, %187 : vector<8x32xf32>
    %cst_71 = arith.constant dense<0.000000e+00> : vector<8xf32>
    %189 = vector.multi_reduction <add>, %188, %cst_71 [1] : vector<8x32xf32> to vector<8xf32>
    %190 = vector.shape_cast %189 : vector<8xf32> to vector<8x1xf32>
    %cst_72 = arith.constant 3.200000e+01 : f32
    %191 = vector.broadcast %cst_72 : f32 to vector<8x1xf32>
    %192 = arith.divf %190, %191 : vector<8x1xf32>
    %193 = vector.broadcast %185 : vector<8x1xf32> to vector<8x32xf32>
    %194 = arith.subf %181, %193 : vector<8x32xf32>
    %cst_73 = arith.constant 9.99999974E-6 : f32
    %195 = vector.broadcast %cst_73 : f32 to vector<8x1xf32>
    %196 = arith.addf %192, %195 : vector<8x1xf32>
    %197 = math.rsqrt %196 : vector<8x1xf32>
    %198 = vector.broadcast %197 : vector<8x1xf32> to vector<8x32xf32>
    %199 = arith.mulf %194, %198 : vector<8x32xf32>
    %200 = vector.broadcast %40 : vector<1x32xf32> to vector<8x32xf32>
    %201 = arith.mulf %199, %200 : vector<8x32xf32>
    %202 = vector.broadcast %41 : vector<1x32xf32> to vector<8x32xf32>
    %203 = arith.addf %201, %202 : vector<8x32xf32>
    %204 = vector.shape_cast %203 : vector<8x32xf32> to vector<2x4x32xf32>
    %205 = vector.extract_strided_slice %204 {offsets = [0, 0, 0], sizes = [2, 1, 32], strides = [1, 1, 1]} : vector<2x4x32xf32> to vector<2x1x32xf32>
    %206 = vector.shape_cast %205 : vector<2x1x32xf32> to vector<2x32xf32>
    %c0_74 = arith.constant 0 : index
    %c0_75 = arith.constant 0 : index
    %207 = vector.load %arg22[%c0_74, %c0_75] : memref<2x32xf32, #tpu.memory_space<vmem>>, vector<2x32xf32>
    tpu.vector_store %arg22[%c0_74, %c0_75], %206 {strides = array<i32>} : memref<2x32xf32, #tpu.memory_space<vmem>>, vector<2x32xf32>,
    %c0_76 = arith.constant 0 : index
    %c0_77 = arith.constant 0 : index
    %208 = vector.load %arg17[%c0_76, %c0_77] : memref<32x2xf32, #tpu.memory_space<vmem>>, vector<32x2xf32>
    %cst_78 = arith.constant dense<0.000000e+00> : vector<2x2xf32>
    %209 = tpu.matmul %206, %208, %cst_78 {dimension_numbers = #tpu.dot_dimension_numbers<[1], [0], [0], [1], [0, 0, 1, 1], [], []>} : vector<2x32xf32>, vector<32x2xf32>, vector<2x2xf32> -> vector<2x2xf32>
    %c0_79 = arith.constant 0 : index
    %c0_80 = arith.constant 0 : index
    %210 = vector.load %arg18[%c0_79, %c0_80] : memref<1x2xf32, #tpu.memory_space<vmem>>, vector<1x2xf32>
    %211 = vector.broadcast %210 : vector<1x2xf32> to vector<2x2xf32>
    %212 = arith.addf %209, %211 : vector<2x2xf32>
    %c0_81 = arith.constant 0 : index
    %c0_82 = arith.constant 0 : index
    %213 = vector.load %arg20[%c0_81, %c0_82] : memref<2x2xf32, #tpu.memory_space<vmem>>, vector<2x2xf32>
    tpu.vector_store %arg20[%c0_81, %c0_82], %212 {strides = array<i32>} : memref<2x2xf32, #tpu.memory_space<vmem>>, vector<2x2xf32>,
    %cst_83 = arith.constant dense<0xFF800000> : vector<2xf32>
    %214 = vector.multi_reduction <maximumf>, %212, %cst_83 [1] : vector<2x2xf32> to vector<2xf32>
    %215 = vector.shape_cast %214 : vector<2xf32> to vector<2x1xf32>
    %216 = vector.broadcast %215 : vector<2x1xf32> to vector<2x2xf32>
    %217 = arith.subf %212, %216 : vector<2x2xf32>
    %218 = math.exp %217 : vector<2x2xf32>
    %cst_84 = arith.constant dense<0.000000e+00> : vector<2xf32>
    %219 = vector.multi_reduction <add>, %218, %cst_84 [1] : vector<2x2xf32> to vector<2xf32>
    %220 = vector.shape_cast %219 : vector<2xf32> to vector<2x1xf32>
    %221 = vector.broadcast %220 : vector<2x1xf32> to vector<2x2xf32>
    %222 = arith.divf %218, %221 : vector<2x2xf32>
    %c0_85 = arith.constant 0 : index
    %c0_86 = arith.constant 0 : index
    %223 = vector.load %arg21[%c0_85, %c0_86] : memref<2x2xf32, #tpu.memory_space<vmem>>, vector<2x2xf32>
    tpu.vector_store %arg21[%c0_85, %c0_86], %222 {strides = array<i32>} : memref<2x2xf32, #tpu.memory_space<vmem>>, vector<2x2xf32>,
    %cst_87 = arith.constant dense<0xFF800000> : vector<2xf32>
    %224 = vector.multi_reduction <maximumf>, %222, %cst_87 [1] : vector<2x2xf32> to vector<2xf32>
    %225 = vector.shape_cast %224 : vector<2xf32> to vector<2x1xf32>
    %226 = vector.broadcast %225 : vector<2x1xf32> to vector<2x2xf32>
    %227 = arith.subf %222, %226 : vector<2x2xf32>
    %228 = math.exp %227 : vector<2x2xf32>
    %cst_88 = arith.constant dense<0.000000e+00> : vector<2xf32>
    %229 = vector.multi_reduction <add>, %228, %cst_88 [1] : vector<2x2xf32> to vector<2xf32>
    %230 = vector.shape_cast %229 : vector<2xf32> to vector<2x1xf32>
    %231 = math.log %230 : vector<2x1xf32>
    %232 = arith.addf %231, %225 : vector<2x1xf32>
    %233 = vector.broadcast %232 : vector<2x1xf32> to vector<2x2xf32>
    %234 = arith.subf %222, %233 : vector<2x2xf32>
    %c0_89 = arith.constant 0 : index
    %c0_90 = arith.constant 0 : index
    %235 = vector.load %arg19[%c0_89, %c0_90] : memref<2x2xf32, #tpu.memory_space<vmem>>, vector<2x2xf32>
    %236 = arith.mulf %235, %234 : vector<2x2xf32>
    %cst_91 = arith.constant dense<0.000000e+00> : vector<2xf32>
    %237 = vector.multi_reduction <add>, %236, %cst_91 [1] : vector<2x2xf32> to vector<2xf32>
    %238 = vector.shape_cast %237 : vector<2xf32> to vector<2x1xf32>
    %cst_92 = arith.constant 0.000000e+00 : f32
    %239 = vector.broadcast %cst_92 : f32 to vector<2x1xf32>
    %240 = arith.subf %239, %238 : vector<2x1xf32>
    %c0_93 = arith.constant 0 : index
    %c0_94 = arith.constant 0 : index
    %241 = vector.load %arg23[%c0_93, %c0_94] : memref<2x1xf32, #tpu.memory_space<vmem>>, vector<2x1xf32>
    tpu.vector_store %arg23[%c0_93, %c0_94], %240 {strides = array<i32>} : memref<2x1xf32, #tpu.memory_space<vmem>>, vector<2x1xf32>,
    return
  }
  func.func @transform_0(%arg0: i32) -> (i32, i32, i32) {
    %c0_i32 = arith.constant 0 : i32
    %c0_i32_0 = arith.constant 0 : i32
    %c0_i32_1 = arith.constant 0 : i32
    %c0_i32_2 = arith.constant 0 : i32
    return %c0_i32, %c0_i32_0, %c0_i32_1 : i32, i32, i32
  }
  func.func @transform_1(%arg0: i32) -> (i32, i32) {
    %c0_i32 = arith.constant 0 : i32
    %c0_i32_0 = arith.constant 0 : i32
    %c0_i32_1 = arith.constant 0 : i32
    return %c0_i32, %c0_i32_0 : i32, i32
  }
  func.func @transform_2(%arg0: i32) -> (i32, i32) {
    %c0_i32 = arith.constant 0 : i32
    %c0_i32_0 = arith.constant 0 : i32
    %c0_i32_1 = arith.constant 0 : i32
    return %c0_i32, %c0_i32_0 : i32, i32
  }
  func.func @transform_3(%arg0: i32) -> (i32, i32) {
    %c0_i32 = arith.constant 0 : i32
    %c0_i32_0 = arith.constant 0 : i32
    %c0_i32_1 = arith.constant 0 : i32
    return %c0_i32, %c0_i32_0 : i32, i32
  }
  func.func @transform_4(%arg0: i32) -> (i32, i32) {
    %c0_i32 = arith.constant 0 : i32
    %c0_i32_0 = arith.constant 0 : i32
    %c0_i32_1 = arith.constant 0 : i32
    return %c0_i32, %c0_i32_0 : i32, i32
  }
  func.func @transform_5(%arg0: i32) -> (i32, i32) {
    %c0_i32 = arith.constant 0 : i32
    %c0_i32_0 = arith.constant 0 : i32
    %c0_i32_1 = arith.constant 0 : i32
    return %c0_i32, %c0_i32_0 : i32, i32
  }
  func.func @transform_6(%arg0: i32) -> (i32, i32) {
    %c0_i32 = arith.constant 0 : i32
    %c0_i32_0 = arith.constant 0 : i32
    %c0_i32_1 = arith.constant 0 : i32
    return %c0_i32, %c0_i32_0 : i32, i32
  }
  func.func @transform_7(%arg0: i32) -> (i32, i32) {
    %c0_i32 = arith.constant 0 : i32
    %c0_i32_0 = arith.constant 0 : i32
    %c0_i32_1 = arith.constant 0 : i32
    return %c0_i32, %c0_i32_0 : i32, i32
  }
  func.func @transform_8(%arg0: i32) -> (i32, i32) {
    %c0_i32 = arith.constant 0 : i32
    %c0_i32_0 = arith.constant 0 : i32
    %c0_i32_1 = arith.constant 0 : i32
    return %c0_i32, %c0_i32_0 : i32, i32
  }
  func.func @transform_9(%arg0: i32) -> (i32, i32) {
    %c0_i32 = arith.constant 0 : i32
    %c0_i32_0 = arith.constant 0 : i32
    %c0_i32_1 = arith.constant 0 : i32
    return %c0_i32, %c0_i32_0 : i32, i32
  }
  func.func @transform_10(%arg0: i32) -> (i32, i32) {
    %c0_i32 = arith.constant 0 : i32
    %c0_i32_0 = arith.constant 0 : i32
    %c0_i32_1 = arith.constant 0 : i32
    return %c0_i32, %c0_i32_0 : i32, i32
  }
  func.func @transform_11(%arg0: i32) -> (i32, i32) {
    %c0_i32 = arith.constant 0 : i32
    %c0_i32_0 = arith.constant 0 : i32
    %c0_i32_1 = arith.constant 0 : i32
    return %c0_i32, %c0_i32_0 : i32, i32
  }
  func.func @transform_12(%arg0: i32) -> (i32, i32) {
    %c0_i32 = arith.constant 0 : i32
    %c0_i32_0 = arith.constant 0 : i32
    %c0_i32_1 = arith.constant 0 : i32
    return %c0_i32, %c0_i32_0 : i32, i32
  }
  func.func @transform_13(%arg0: i32) -> (i32, i32) {
    %c0_i32 = arith.constant 0 : i32
    %c0_i32_0 = arith.constant 0 : i32
    %c0_i32_1 = arith.constant 0 : i32
    return %c0_i32, %c0_i32_0 : i32, i32
  }
  func.func @transform_14(%arg0: i32) -> (i32, i32) {
    %c0_i32 = arith.constant 0 : i32
    %c0_i32_0 = arith.constant 0 : i32
    %c0_i32_1 = arith.constant 0 : i32
    return %c0_i32, %c0_i32_0 : i32, i32
  }
  func.func @transform_15(%arg0: i32) -> (i32, i32) {
    %c0_i32 = arith.constant 0 : i32
    %c0_i32_0 = arith.constant 0 : i32
    %c0_i32_1 = arith.constant 0 : i32
    return %c0_i32, %c0_i32_0 : i32, i32
  }
  func.func @transform_16(%arg0: i32) -> (i32, i32) {
    %c0_i32 = arith.constant 0 : i32
    %c0_i32_0 = arith.constant 0 : i32
    %c0_i32_1 = arith.constant 0 : i32
    return %c0_i32, %c0_i32_0 : i32, i32
  }
  func.func @transform_17(%arg0: i32) -> (i32, i32) {
    %c0_i32 = arith.constant 0 : i32
    %c0_i32_0 = arith.constant 0 : i32
    %c0_i32_1 = arith.constant 0 : i32
    return %c0_i32, %c0_i32_0 : i32, i32
  }
  func.func @transform_18(%arg0: i32) -> (i32, i32) {
    %c0_i32 = arith.constant 0 : i32
    %c0_i32_0 = arith.constant 0 : i32
    %c0_i32_1 = arith.constant 0 : i32
    return %c0_i32, %c0_i32_0 : i32, i32
  }
  func.func @transform_19(%arg0: i32) -> (i32, i32) {
    %c0_i32 = arith.constant 0 : i32
    %c0_i32_0 = arith.constant 0 : i32
    %c0_i32_1 = arith.constant 0 : i32
    return %c0_i32, %c0_i32_0 : i32, i32
  }
  func.func @transform_20(%arg0: i32) -> (i32, i32) {
    %c0_i32 = arith.constant 0 : i32
    %c0_i32_0 = arith.constant 0 : i32
    %c0_i32_1 = arith.constant 0 : i32
    return %c0_i32, %c0_i32_0 : i32, i32
  }
  func.func @transform_21(%arg0: i32) -> (i32, i32) {
    %c0_i32 = arith.constant 0 : i32
    %c0_i32_0 = arith.constant 0 : i32
    %c0_i32_1 = arith.constant 0 : i32
    return %c0_i32, %c0_i32_0 : i32, i32
  }
  func.func @transform_22(%arg0: i32) -> (i32, i32) {
    %c0_i32 = arith.constant 0 : i32
    %c0_i32_0 = arith.constant 0 : i32
    %c0_i32_1 = arith.constant 0 : i32
    return %c0_i32, %c0_i32_0 : i32, i32
  }
}

</mosaic_0001>

<bundles_post_ra>
// kernel: hierarchical_bert_forward.3
= control target key start
LH: loop header
LB: loop body
LE: loop exit
PB: predicated region body
PF: predicated region fallthrough
CT: control target
= control target key end

     0   :  { %s1656_s0 = inlined_call_operand.vmem [shape: f32[2,4,32], index: 0, kind: input, shape index: {}]   ;;  %s1657_s1 = inlined_call_operand.vmem [shape: f32[4,32], index: 1, kind: input, shape index: {}]   ;;  %s1658_s2 = inlined_call_operand.vmem [shape: f32[1,32], index: 2, kind: input, shape index: {}]   ;;  %s1659_s3 = inlined_call_operand.vmem [shape: f32[1,32], index: 3, kind: input, shape index: {}]   ;;  %s1660_s4 = inlined_call_operand.vmem [shape: bf16[32,96], index: 4, kind: input, shape index: {}]   ;;  %s1661_s5 = inlined_call_operand.vmem [shape: f32[1,96], index: 5, kind: input, shape index: {}]   ;;  %s1662_s6 = inlined_call_operand.vmem [shape: bf16[32,32], index: 6, kind: input, shape index: {}]   ;;  %s1663_s7 = inlined_call_operand.vmem [shape: f32[1,32], index: 7, kind: input, shape index: {}]   ;;  %s1664_s8 = inlined_call_operand.vmem [shape: f32[1,32], index: 8, kind: input, shape index: {}]   ;;  %s1665_s9 = inlined_call_operand.vmem [shape: f32[1,32], index: 9, kind: input, shape index: {}]   ;;  %s1666_s10 = inlined_call_operand.vmem [shape: bf16[32,64], index: 10, kind: input, shape index: {}]   ;;  %s1667_s11 = inlined_call_operand.vmem [shape: f32[1,64], index: 11, kind: input, shape index: {}]   ;;  %s1668_s12 = inlined_call_operand.vmem [shape: bf16[64,32], index: 12, kind: input, shape index: {}]   ;;  %s1669_s13 = inlined_call_operand.vmem [shape: f32[1,32], index: 13, kind: input, shape index: {}]   ;;  %s1670_s14 = inlined_call_operand.vmem [shape: f32[1,32], index: 14, kind: input, shape index: {}]   ;;  %s1671_s15 = inlined_call_operand.vmem [shape: f32[1,32], index: 15, kind: input, shape index: {}]   ;;  %s1672_s16 = inlined_call_operand.vmem [shape: f32[32,2], index: 16, kind: input, shape index: {}]   ;;  %s1673_s17 = inlined_call_operand.vmem [shape: f32[1,2], index: 17, kind: input, shape index: {}]   ;;  %s1674_s18 = inlined_call_operand.vmem [shape: f32[2,2], index: 18, kind: input, shape index: {}]   ;;  %s1675_s19 = inlined_call_operand.hbm [shape: f32[2,2], index: 19, kind: output, shape index: {0}]   ;;  %s1676_s20 = inlined_call_operand.hbm [shape: f32[2,2], index: 20, kind: output, shape index: {1}]   ;;  %s1677_s21 = inlined_call_operand.hbm [shape: f32[2,32], index: 21, kind: output, shape index: {2}]   ;;  %s1678_s22 = inlined_call_operand.vmem [shape: f32[2,1], index: 22, kind: output, shape index: {3}]  }
   0x1   :  { %1682 = sst [smem:[#allocation9_spill]] %s1656_s0 }
   0x2   :  { %1683 = sst [smem:[#allocation10_spill]] %s1657_s1 }
   0x3   :  { %1684 = sst [smem:[#allocation11_spill]] %s1658_s2 }
   0x4   :  { %1685 = sst [smem:[#allocation12_spill]] %s1659_s3 }
   0x5   :  { %1686 = sst [smem:[#allocation13_spill]] %s1660_s4 }
   0x6   :  { %1687 = sst [smem:[#allocation14_spill]] %s1661_s5 }
   0x7   :  { %1688 = sst [smem:[#allocation15_spill]] %s1662_s6 }
   0x8   :  { %28 = vsyncpa [#allocation3], 0  ;;  %s1689_s29 = sld [smem:[#allocation9_spill]] }
   0x9   :  { %s1690_s1 = sld [smem:[#allocation10_spill]] }
   0xe   :  { %v69_v0 = vld [vmem:[%s1689_s29] sm:$0xf]  ;;  %v70_v1 = vld [vmem:[%s1689_s29 + $0x4] sm:$0xf] }
   0xf   :  { %v71_v2 = vld [vmem:[%s1690_s1] sm:$0xf] }
  0x10   :  { %v72_v3 = vadd.f32 %v71_v2, %v69_v0  ;;  %v73_v4 = vadd.f32 %v71_v2, %v70_v1 }
  0x12   :  { %78 = vst [vmem:[#allocation1] ss:$2 sm:$0xff] %v72_v3 }
  0x13   :  { %80 = vst [vmem:[#allocation1 + $0x1] ss:$2 sm:$0xff] %v73_v4 }
  0x14   :  { %29 = vsyncpa [#allocation5], 0  ;;  %vm83_vm0 = vcmask 261120   ;;  %v1283_v7 = vmov 32.0   ;;  %v1284_v13 = vmov 839922192  }
  0x15   :  { %1157 = vrcp.f32 %v1283_v7  ;;  %v97_v14 = vunpack.c.l.s4 %v1284_v13  ;;  %v1285_v15 = vmov 1985246804   ;;  %s1691_s6 = sld [smem:[#allocation13_spill]]  ;;  %s1286_s1 = smov 120   ;;  %vm236_vm5 = vcmask 64512  }
  0x16   :  { %v101_v16 = vunpack.c.l.s4 %v1285_v15  ;;  %s1692_s3 = sld [smem:[#allocation11_spill]]  ;;  %s1287_s5 = smov 88   ;;  %vm282_vm6 = vcmask 27648   ;;  %vm313_vm7 = vcmask 1041408   ;;  %vm309_vm8 = vcmask 31744  }
  0x17   :  { %v98_v18 = vunpack.c.0.s8 %v97_v14  ;;  %s1693_s30 = sld [smem:[#allocation12_spill]]  ;;  %s1288_s24 = smov 96   ;;  %vm722_vm9 = vcmask 195584   ;;  %vm719_vm10 = vcmask 130048   ;;  %vm869_vm14 = vcmask 523264  }
  0x18   :  { %v102_v19 = vunpack.c.0.s8 %v101_v16  ;;  %s1694_s23 = sld [smem:[#allocation14_spill]]  ;;  %s1290_s25 = smov 80  }
  0x19   :  { %s1291_s26 = smov 112   ;;  %s1292_s2 = smov 104  }
  0x1a   :  { %v81_v5 = vld.sshfl [vmem:[#allocation1] sm:$0xff pattern:$0x75316420]  ;;  %s1293_s27 = smov 64   ;;  %s1295_s28 = smov 48  }
  0x1b   :  { %v84_v6 = vsel %vm83_vm0, %v81_v5, 0.0  ;;  %v1158_v8 = vpop.eup %1157  ;;  %v1117_v31 = vld [vmem:[%s1691_s6 + $0x8] sm:$0xff]  ;;  %v1116_v33 = vld [vmem:[%s1691_s6] sm:$0xff]  ;;  %s1289_s6 = smov 72   ;;  %s1296_s29 = smov 40  }
  0x1c   :  { %85 = vadd.xlane.f32.xlu0 %v84_v6  ;;  %v88_v9 = vmul.f32 32.0, %v1158_v8  ;;  %vm92_vm1 = vweird.f32 %v1158_v8  ;;  %219 = vmatpush.bf16.msra.mxu0 %v1117_v31  ;;  %v1146_v40 = vld [vmem:[%s1692_s3] ss:$0 sm:$0xff]  ;;  %s1294_s3 = smov 56   ;;  %s1298_s4 = smov 16  }
  0x1d   :  { %v1147_v42 = vld [vmem:[%s1693_s30] ss:$0 sm:$0xff]  ;;  %v148_v44 = vrot.slane %v1146_v40, 4  ;;  %s1297_s30 = smov 8   ;;  %s1299_s0 = smov 24  }
  0x1e   :  { %v89_v10 = vsub.f32 1.0, %v88_v9  ;;  %v155_v47 = vrot.slane %v1147_v42, 4  ;;  %v1148_v56 = vld [vmem:[%s1694_s23] ss:$0 sm:$0xff] }
  0x20   :  { %v90_v11 = vmul.f32 %v1158_v8, %v89_v10  ;;  %220 = vmatpush.bf16.msra.mxu0 %v1116_v33 }
  0x22   :  { %v91_v12 = vadd.f32 %v1158_v8, %v90_v11 }
  0x24   :  { %v1428_v17 = vsel %vm92_vm1, %v1158_v8, %v91_v12 }
  0x8f   :  { %v86_v20 = vpop.xlane.xlu0 %85 }
  0x90   :  { %v94_v21 = vmul.f32 %v1428_v17, %v86_v20 }
  0x92   :  { %v99_v22 = vperm.slane %v94_v21, %v98_v18  ;;  %v103_v23 = vperm.slane %v94_v21, %v102_v19 }
  0x94   :  { %v106_v24 = vsub.f32 %v72_v3, %v99_v22  ;;  %v107_v25 = vsub.f32 %v73_v4, %v103_v23 }
  0x96   :  { %v108_v26 = vmul.f32 %v106_v24, %v106_v24  ;;  %v109_v27 = vmul.f32 %v107_v25, %v107_v25 }
  0x98   :  { %112 = vst [vmem:[#allocation1] ss:$2 sm:$0xff] %v108_v26 }
  0x99   :  { %114 = vst [vmem:[#allocation1 + $0x1] ss:$2 sm:$0xff] %v109_v27 }
  0xa0   :  { %v115_v28 = vld.sshfl [vmem:[#allocation1] sm:$0xff pattern:$0x75316420] }
  0xa1   :  { %v117_v29 = vsel %vm83_vm0, %v115_v28, 0.0 }
  0xa2   :  { %118 = vadd.xlane.f32.xlu0 %v117_v29 }
 0x115   :  { %v119_v30 = vpop.xlane.xlu0 %118 }
 0x116   :  { %v120_v32 = vmul.f32 %v119_v30, %v1428_v17 }
 0x118   :  { %v121_v34 = vadd.f32 1e-05, %v120_v32 }
 0x11a   :  { %1159 = vrsqrt.f32 %v121_v34  ;;  %vm128_vm3 = vweird.f32 %v121_v34 }
 0x120   :  { %v1160_v35 = vpop.eup %1159 }
 0x121   :  { %v123_v36 = vmul.f32 %v1160_v35, %v121_v34  ;;  %vm129_vm2 = vweird.f32 %v1160_v35 }
 0x122   :  { %vm130_vm4 = vmor %vm128_vm3, %vm129_vm2  ;;  %vm921_vm3 = vcmask 1041409  }
 0x123   :  { %v124_v37 = vmul.f32 %v1160_v35, %v123_v36 }
 0x125   :  { %v125_v38 = vmul.f32 0.5, %v124_v37 }
 0x127   :  { %v126_v39 = vsub.f32 1.5, %v125_v38 }
 0x129   :  { %v127_v41 = vmul.f32 %v1160_v35, %v126_v39 }
 0x12b   :  { %v131_v43 = vsel %vm130_vm4, %v1160_v35, %v127_v41  ;;  %vm924_vm4 = vcmask 254976  }
 0x12c   :  { %v136_v45 = vperm.slane %v131_v43, %v98_v18  ;;  %v140_v46 = vperm.slane %v131_v43, %v102_v19 }
 0x12e   :  { %v143_v48 = vmul.f32 %v136_v45, %v106_v24  ;;  %v144_v49 = vmul.f32 %v140_v46, %v107_v25 }
 0x130   :  { %v150_v50 = vmul.f32 %v1146_v40, %v143_v48  ;;  %v151_v51 = vmul.f32 %v148_v44, %v144_v49 }
 0x132   :  { %v1445_v52 = vadd.f32 %v1147_v42, %v150_v50  ;;  %v1447_v53 = vadd.f32 %v155_v47, %v151_v51 }
 0x134   :  { %189 = vst [vmem:[#allocation1] ss:$2 sm:$0xff] %v1445_v52 }
 0x135   :  { %191 = vst [vmem:[#allocation1 + $0x1] ss:$2 sm:$0xff] %v1447_v53 }
 0x13c   :  { %v192_v54 = vld.sshfl [vmem:[#allocation1] sm:$0xff pattern:$0x75316420] }
 0x13d   :  { %v194_v55 = vpack.c.bf16 %v192_v54, %v192_v54 }
 0x13f   :  { %1063 = vmatmul.msk.bf16.vlgmr.msra.gmra.mxu0 %vm83_vm0, %v194_v55 }
 0x1bc   :  { %v222_v57 = vpop.f32.mrf.mxu0 }
 0x1bd   :  { %v223_v58 = vadd.f32 %v1148_v56, %v222_v57 }
 0x1bf   :  { %v227_v59 = vrot.slane %v223_v58, 4  ;;  %v229_v60 = vpack.c.bf16 %v223_v58, %v223_v58 }
 0x1c1   :  { %v232_v61 = vunpack.c.l.b16 %v229_v60  ;;  %v230_v62 = vpack.c.bf16 %v227_v59, %v227_v59 }
 0x1c3   :  { %v1455_v63 = vpack.c.b16 %v232_v61, %v232_v61  ;;  %v257_v1 = vunpack.c.l.b16 %v230_v62 }
 0x1c4   :  { %v224_v0 = vpop.f32.mrf.mxu0 }
 0x1c5   :  { %351 = vrot.lane.b32.xlu0 %v1455_v63, %s1286_s1  ;;  %353 = vrot.lane.b32.xlu2 %v1455_v63, %s1287_s5  ;;  %v1460_v2 = vpack.c.b16 %v257_v1, %v257_v1 }
 0x1c6   :  { %234 = vrot.lane.b32.xlu1 %v1455_v63, %s1288_s24 }
 0x1cd   :  { %604 = vrot.lane.b32.xlu0 %v1460_v2, %s1289_s6  ;;  %376 = vrot.lane.b32.xlu2 %v1460_v2, %s1287_s5  ;;  %s1695_s5 = sld [smem:[#allocation15_spill]] }
 0x1ce   :  { %259 = vrot.lane.b32.xlu1 %v1460_v2, %s1288_s24  ;;  %s1011_s24 = sshll.u32 %s1675_s19, 4  ;;  %s1012_s24 = int_to_ptr.hbm [resolvable:$true] %s1011_s24 }
 0x1d5   :  { %467 = vrot.lane.b32.xlu2 %v1455_v63, %s1290_s25 }
 0x1d6   :  { %374 = vrot.lane.b32.xlu1 %v1460_v2, %s1286_s1 }
 0x1dd   :  { %465 = vrot.lane.b32.xlu2 %v1455_v63, %s1291_s26 }
 0x1de   :  { %490 = vrot.lane.b32.xlu1 %v1460_v2, %s1290_s25 }
 0x1e5   :  { %581 = vrot.lane.b32.xlu2 %v1455_v63, %s1289_s6  ;;  %s1301_s6 = smov [#allocation2]  }
 0x1e6   :  { %488 = vrot.lane.b32.xlu1 %v1460_v2, %s1291_s26  ;;  %s1009_s25 = sshll.u32 %s1301_s6, 4  ;;  %s1010_s25 = int_to_ptr.vmem [resolvable:$true] %s1009_s25 }
 0x1ed   :  { %602 = vrot.lane.b32.xlu2 %v1460_v2, %s1292_s2 }
 0x1ee   :  { %579 = vrot.lane.b32.xlu1 %v1455_v63, %s1292_s2 }
 0x21f   :  { %v354_v3 = vpop.permute.xlu2 %353 }
 0x220   :  { %v359_v4 = vsel %vm236_vm5, %v354_v3, 0 }
 0x221   :  { %368 = vmatpush.bf16.xpose.msrb.mxu0 %v359_v4 }
 0x227   :  { %v377_v5 = vpop.permute.xlu2 %376 }
 0x228   :  { %v382_v12 = vsel %vm236_vm5, %v377_v5, 0 }
 0x22f   :  { %v468_v6 = vpop.permute.xlu2 %467 }
 0x230   :  { %v473_v7 = vsel %vm236_vm5, %v468_v6, 0 }
 0x231   :  { %482 = vmatpush.bf16.xpose.msra.mxu0 %v473_v7 }
 0x237   :  { %v352_v8 = vpop.permute.xlu0 %351  ;;  %v466_v9 = vpop.permute.xlu2 %465 }
 0x238   :  { %v235_v10 = vpop.permute.xlu1 %234  ;;  %1068 = vmatmul.msk.bf16.vlgmr.msrb.gmra.mxu0 %vm236_vm5, %v352_v8 }
 0x239   :  { %v241_v11 = vsel %vm236_vm5, %v235_v10, 0 }
 0x23a   :  { %250 = vmatpush.bf16.xpose.msra.mxu1 %v241_v11 }
 0x23f   :  { %v582_v13 = vpop.permute.xlu2 %581  ;;  %v605_v19 = vpop.permute.xlu0 %604 }
 0x240   :  { %v587_v14 = vsel %vm236_vm5, %v582_v13, 0  ;;  %v260_v15 = vpop.permute.xlu1 %259  ;;  %v610_v22 = vsel %vm236_vm5, %v605_v19, 0 }
 0x241   :  { %1064 = vmatmul.msk.bf16.vlgmr.msra.gmra.mxu1 %vm236_vm5, %v229_v60  ;;  %v265_v16 = vsel %vm236_vm5, %v260_v15, 0  ;;  %596 = vmatpush.bf16.xpose.msrb.mxu0 %v587_v14 }
 0x242   :  { %391 = vmatpush.bf16.xpose.msrb.mxu1 %v382_v12  ;;  %274 = vmatpush.bf16.xpose.msra.mxu2 %v265_v16 }
 0x247   :  { %v603_v25 = vpop.permute.xlu2 %602 }
 0x248   :  { %v375_v18 = vpop.permute.xlu1 %374  ;;  %1072 = vmatmul.msk.bf16.vlgmr.msra.gmra.mxu0 %vm236_vm5, %v466_v9 }
 0x249   :  { %1065 = vmatmul.msk.bf16.vlgmr.msra.gmra.mxu2 %vm236_vm5, %v230_v62 }
 0x250   :  { %v491_v20 = vpop.permute.xlu1 %490 }
 0x251   :  { %v496_v21 = vsel %vm236_vm5, %v491_v20, 0  ;;  %1069 = vmatmul.msk.bf16.vlgmr.msrb.gmra.mxu1 %vm236_vm5, %v375_v18 }
 0x252   :  { %505 = vmatpush.bf16.xpose.msra.mxu1 %v496_v21 }
 0x258   :  { %v489_v23 = vpop.permute.xlu1 %488 }
 0x25a   :  { %619 = vmatpush.bf16.xpose.msrb.mxu1 %v610_v22 }
 0x260   :  { %v580_v24 = vpop.permute.xlu1 %579 }
 0x261   :  { %1073 = vmatmul.msk.bf16.vlgmr.msra.gmra.mxu1 %vm236_vm5, %v489_v23  ;;  %1076 = vmatmul.msk.bf16.vlgmr.msrb.gmra.mxu0 %vm236_vm5, %v580_v24 }
 0x271   :  { %1077 = vmatmul.msk.bf16.vlgmr.msrb.gmra.mxu1 %vm236_vm5, %v603_v25 }
 0x2b5   :  { %v370_v26 = vpop.f32.mrf.mxu0 }
 0x2b6   :  { %v397_v27 = vmul.f32 0.35355338, %v370_v26 }
 0x2b8   :  { %v399_v28 = vsel %vm282_vm6, %v397_v27, -inf }
 0x2b9   :  { %400 = vmax.xlane.f32.xlu2 %v399_v28 }
 0x2bd   :  { %v372_v29 = vpop.f32.mrf.mxu0 }
 0x2be   :  { %v252_v30 = vpop.f32.mrf.mxu1 }
 0x2bf   :  { %v280_v31 = vmul.f32 0.35355338, %v252_v30 }
 0x2c1   :  { %v283_v32 = vsel %vm282_vm6, %v280_v31, -inf }
 0x2c2   :  { %284 = vmax.xlane.f32.xlu0 %v283_v32 }
 0x2c5   :  { %v484_v33 = vpop.f32.mrf.mxu0 }
 0x2c6   :  { %v254_v34 = vpop.f32.mrf.mxu1  ;;  %v511_v47 = vmul.f32 0.35355338, %v484_v33 }
 0x2c8   :  { %v513_v49 = vsel %vm282_vm6, %v511_v47, -inf }
 0x2cc   :  { %v276_v35 = vpop.f32.mrf.mxu2 }
 0x2cd   :  { %v281_v36 = vmul.f32 0.35355338, %v276_v35  ;;  %v486_v37 = vpop.f32.mrf.mxu0 }
 0x2ce   :  { %v393_v38 = vpop.f32.mrf.mxu1 }
 0x2cf   :  { %v286_v39 = vsel %vm282_vm6, %v281_v36, -inf  ;;  %v398_v50 = vmul.f32 0.35355338, %v393_v38 }
 0x2d0   :  { %287 = vmax.xlane.f32.xlu1 %v286_v39 }
 0x2d1   :  { %307 = vrot.lane.b32.xlu2 %v1455_v63, %s1293_s27  ;;  %v402_v51 = vsel %vm282_vm6, %v398_v50, -inf }
 0x2d4   :  { %v278_v40 = vpop.f32.mrf.mxu2 }
 0x2d6   :  { %330 = vrot.lane.b32.xlu0 %v1460_v2, %s1293_s27  ;;  %v395_v41 = vpop.f32.mrf.mxu1  ;;  %s1033_s27 = sshll.u32 %s1677_s21, 4  ;;  %s1034_s27 = int_to_ptr.hbm [resolvable:$true] %s1033_s27 }
 0x2de   :  { %444 = vrot.lane.b32.xlu0 %v1460_v2, %s1294_s3  ;;  %v507_v42 = vpop.f32.mrf.mxu1  ;;  %v598_v43 = vpop.f32.mrf.mxu0 }
 0x2df   :  { %v512_v55 = vmul.f32 0.35355338, %v507_v42  ;;  %v1503_v58 = vmul.f32 0.35355338, %v598_v43 }
 0x2e1   :  { %v516_v57 = vsel %vm282_vm6, %v512_v55, -inf  ;;  %v627_v59 = vsel %vm282_vm6, %v1503_v58, -inf }
 0x2e6   :  { %v509_v44 = vpop.f32.mrf.mxu1  ;;  %v600_v45 = vpop.f32.mrf.mxu0 }
 0x2e9   :  { %423 = vrot.lane.b32.xlu1 %v1455_v63, %s1294_s3 }
 0x2ee   :  { %v621_v46 = vpop.f32.mrf.mxu1 }
 0x2ef   :  { %v1498_v54 = vmul.f32 0.35355338, %v621_v46 }
 0x2f1   :  { %v630_v56 = vsel %vm282_vm6, %v1498_v54, -inf }
 0x2f6   :  { %v623_v48 = vpop.f32.mrf.mxu1 }
 0x2fa   :  { %514 = vmax.xlane.f32.xlu2 %v513_v49 }
 0x308   :  { %403 = vmax.xlane.f32.xlu0 %v402_v51 }
 0x310   :  { %631 = vmax.xlane.f32.xlu0 %v630_v56 }
 0x313   :  { %517 = vmax.xlane.f32.xlu1 %v516_v57 }
 0x31b   :  { %628 = vmax.xlane.f32.xlu1 %v627_v59 }
 0x32c   :  { %v401_v60 = vpop.xlane.xlu2 %400 }
 0x32d   :  { %v405_v61 = vsub.f32 %v397_v27, %v401_v60 }
 0x32f   :  { %v407_v62 = vmul.f32 1.442695, %v405_v61 }
 0x331   :  { %1161 = vpow2.f32 %v407_v62 }
 0x334   :  { %v308_v0 = vpop.permute.xlu2 %307 }
 0x335   :  { %v285_v1 = vpop.xlane.xlu0 %284  ;;  %v315_v3 = vsel %vm313_vm7, %v308_v0, 0 }
 0x336   :  { %v289_v4 = vsub.f32 %v280_v31, %v285_v1  ;;  %324 = vmatpush.bf16.msra.mxu3 %v315_v3 }
 0x337   :  { %v1162_v5 = vpop.eup %1161 }
 0x338   :  { %v291_v6 = vmul.f32 1.442695, %v289_v4  ;;  %v411_v7 = vsel %vm282_vm6, %v1162_v5, 0.0 }
 0x339   :  { %412 = vadd.xlane.f32.xlu1 %v411_v7 }
 0x33a   :  { %1163 = vpow2.f32 %v291_v6 }
 0x340   :  { %v1509_v8 = vpop.eup %1163 }
 0x341   :  { %v295_v9 = vsel %vm282_vm6, %v1509_v8, 0.0 }
 0x342   :  { %296 = vadd.xlane.f32.xlu0 %v295_v9 }
 0x343   :  { %v288_v10 = vpop.xlane.xlu1 %287 }
 0x344   :  { %v290_v11 = vsub.f32 %v281_v36, %v288_v10 }
 0x346   :  { %v293_v12 = vmul.f32 1.442695, %v290_v11 }
 0x348   :  { %1165 = vpow2.f32 %v293_v12  ;;  %v331_v13 = vpop.permute.xlu0 %330 }
 0x349   :  { %v336_v14 = vsel %vm313_vm7, %v331_v13, 0 }
 0x34a   :  { %345 = vmatpush.bf16.msrb.mxu3 %v336_v14 }
 0x34e   :  { %v1514_v15 = vpop.eup %1165 }
 0x34f   :  { %v298_v16 = vsel %vm282_vm6, %v1514_v15, 0.0 }
 0x350   :  { %299 = vadd.xlane.f32.xlu1 %v298_v16  ;;  %v445_v23 = vpop.permute.xlu0 %444 }
 0x351   :  { %v450_v51 = vsel %vm313_vm7, %v445_v23, 0 }
 0x356   :  { %558 = vrot.lane.b32.xlu0 %v1460_v2, %s1295_s28 }
 0x35b   :  { %v424_v18 = vpop.permute.xlu1 %423 }
 0x35c   :  { %v429_v19 = vsel %vm313_vm7, %v424_v18, 0 }
 0x35d   :  { %438 = vmatpush.bf16.msrb.mxu2 %v429_v19 }
 0x36d   :  { %v515_v20 = vpop.xlane.xlu2 %514 }
 0x36e   :  { %v519_v21 = vsub.f32 %v511_v47, %v515_v20 }
 0x370   :  { %v521_v22 = vmul.f32 1.442695, %v519_v21 }
 0x372   :  { %1167 = vpow2.f32 %v521_v22 }
 0x378   :  { %v1521_v25 = vpop.eup %1167 }
 0x379   :  { %v525_v28 = vsel %vm282_vm6, %v1521_v25, 0.0 }
 0x37b   :  { %v404_v24 = vpop.xlane.xlu0 %403 }
 0x37c   :  { %v406_v26 = vsub.f32 %v398_v50, %v404_v24 }
 0x37e   :  { %v409_v27 = vmul.f32 1.442695, %v406_v26 }
 0x380   :  { %1169 = vpow2.f32 %v409_v27  ;;  %526 = vadd.xlane.f32.xlu0 %v525_v28 }
 0x383   :  { %v632_v30 = vpop.xlane.xlu0 %631 }
 0x384   :  { %v634_v34 = vsub.f32 %v1498_v54, %v632_v30 }
 0x386   :  { %v1170_v29 = vpop.eup %1169  ;;  %v518_v31 = vpop.xlane.xlu1 %517  ;;  %v637_v36 = vmul.f32 1.442695, %v634_v34 }
 0x387   :  { %v520_v32 = vsub.f32 %v512_v55, %v518_v31  ;;  %v414_v33 = vsel %vm282_vm6, %v1170_v29, 0.0 }
 0x388   :  { %415 = vadd.xlane.f32.xlu2 %v414_v33 }
 0x389   :  { %v523_v35 = vmul.f32 1.442695, %v520_v32 }
 0x38b   :  { %1171 = vpow2.f32 %v523_v35 }
 0x38c   :  { %1173 = vpow2.f32 %v637_v36 }
 0x38e   :  { %v629_v41 = vpop.xlane.xlu1 %628 }
 0x38f   :  { %v633_v46 = vsub.f32 %v1503_v58, %v629_v41 }
 0x391   :  { %v1527_v37 = vpop.eup %1171  ;;  %v635_v47 = vmul.f32 1.442695, %v633_v46 }
 0x392   :  { %v528_v38 = vsel %vm282_vm6, %v1527_v37, 0.0  ;;  %v1532_v39 = vpop.eup %1173 }
 0x393   :  { %529 = vadd.xlane.f32.xlu1 %v528_v38  ;;  %v642_v40 = vsel %vm282_vm6, %v1532_v39, 0.0 }
 0x394   :  { %672 = vrot.lane.b32.xlu0 %v1460_v2, %s1296_s29 }
 0x39b   :  { %643 = vadd.xlane.f32.xlu1 %v642_v40 }
 0x3a0   :  { %537 = vrot.lane.b32.xlu2 %v1455_v63, %s1295_s28 }
 0x3ac   :  { %v413_v42 = vpop.xlane.xlu1 %412 }
 0x3ad   :  { %1175 = vrcp.f32 %v413_v42  ;;  %v1119_v42 = vld [vmem:[%s1695_s5 + $0x8] sm:$0xff] }
 0x3ae   :  { %757 = vmatpush.bf16.msra.mxu0 %v1119_v42 }
 0x3b3   :  { %v1176_v43 = vpop.eup %1175 }
 0x3b4   :  { %v419_v44 = vmul.f32 %v1176_v43, %v1162_v5  ;;  %651 = vrot.lane.b32.xlu1 %v1455_v63, %s1296_s29  ;;  %v1118_v43 = vld [vmem:[%s1695_s5] sm:$0xff] }
 0x3b5   :  { %v297_v45 = vpop.xlane.xlu0 %296  ;;  %758 = vmatpush.bf16.msra.mxu0 %v1118_v43  ;;  %v1153_v43 = vld [vmem:[%s1669_s13] ss:$0 sm:$0xff] }
 0x3b6   :  { %1177 = vrcp.f32 %v297_v45  ;;  %v421_v2 = vpack.c.bf16 %v419_v44, %v419_v44 }
 0x3b7   :  { %1179 = vpow2.f32 %v635_v47 }
 0x3b8   :  { %1070 = vmatmul.msk.bf16.vlgmr.msrb.gmra.mxu2 %vm309_vm8, %v421_v2 }
 0x3bc   :  { %v1178_v48 = vpop.eup %1177 }
 0x3bd   :  { %v303_v49 = vmul.f32 %v1178_v48, %v1509_v8  ;;  %v1180_v54 = vpop.eup %1179 }
 0x3be   :  { %v639_v55 = vsel %vm282_vm6, %v1180_v54, 0.0 }
 0x3bf   :  { %v305_v50 = vpack.c.bf16 %v303_v49, %v303_v49 }
 0x3c1   :  { %1066 = vmatmul.msk.bf16.vlgmr.msra.gmra.mxu3 %vm309_vm8, %v305_v50 }
 0x3c2   :  { %459 = vmatpush.bf16.msra.mxu3 %v450_v51 }
 0x3c3   :  { %v300_v63 = vpop.xlane.xlu1 %299 }
 0x3c4   :  { %1181 = vrcp.f32 %v300_v63 }
 0x3c8   :  { %v559_v58 = vpop.permute.xlu0 %558 }
 0x3c9   :  { %640 = vadd.xlane.f32.xlu2 %v639_v55  ;;  %v564_v60 = vsel %vm313_vm7, %v559_v58, 0  ;;  %v1149_v58 = vld [vmem:[%s1663_s7] ss:$0 sm:$0xff] }
 0x3ca   :  { %v1182_v56 = vpop.eup %1181 }
 0x3cb   :  { %v304_v57 = vmul.f32 %v1182_v56, %v1514_v15 }
 0x3cd   :  { %v306_v59 = vpack.c.bf16 %v304_v57, %v304_v57 }
 0x3d1   :  { %1067 = vmatmul.msk.bf16.vlgmr.msrb.gmra.mxu3 %vm309_vm8, %v306_v59 }
 0x3d2   :  { %573 = vmatpush.bf16.msrb.mxu3 %v564_v60 }
 0x3f3   :  { %v527_v61 = vpop.xlane.xlu0 %526 }
 0x3f4   :  { %1183 = vrcp.f32 %v527_v61 }
 0x3fa   :  { %v1184_v0 = vpop.eup %1183 }
 0x3fb   :  { %v416_v62 = vpop.xlane.xlu2 %415  ;;  %v533_v3 = vmul.f32 %v1184_v0, %v1521_v25 }
 0x3fc   :  { %1185 = vrcp.f32 %v416_v62 }
 0x3fd   :  { %v535_v8 = vpack.c.bf16 %v533_v3, %v533_v3 }
 0x402   :  { %v1186_v1 = vpop.eup %1185 }
 0x403   :  { %v420_v4 = vmul.f32 %v1186_v1, %v1170_v29  ;;  %v538_v5 = vpop.permute.xlu2 %537 }
 0x404   :  { %v543_v6 = vsel %vm313_vm7, %v538_v5, 0 }
 0x405   :  { %v422_v7 = vpack.c.bf16 %v420_v4, %v420_v4  ;;  %552 = vmatpush.bf16.msra.mxu2 %v543_v6  ;;  %v1121_v6 = vld [vmem:[%s1666_s10 + $0x8] sm:$0xff] }
 0x406   :  { %v673_v9 = vpop.permute.xlu0 %672  ;;  %v530_v10 = vpop.xlane.xlu1 %529  ;;  %825 = vmatpush.bf16.msra.mxu1 %v1121_v6 }
 0x407   :  { %v678_v11 = vsel %vm313_vm7, %v673_v9, 0  ;;  %1071 = vmatmul.msk.bf16.vlgmr.msra.gmra.mxu3 %vm309_vm8, %v422_v7  ;;  %1187 = vrcp.f32 %v530_v10  ;;  %v1120_v7 = vld [vmem:[%s1666_s10] sm:$0xff] }
 0x408   :  { %1074 = vmatmul.msk.bf16.vlgmr.msra.gmra.mxu2 %vm309_vm8, %v535_v8  ;;  %687 = vmatpush.bf16.msra.mxu3 %v678_v11 }
 0x40a   :  { %826 = vmatpush.bf16.msra.mxu1 %v1120_v7 }
 0x40d   :  { %v1188_v12 = vpop.eup %1187 }
 0x40e   :  { %v534_v13 = vmul.f32 %v1188_v12, %v1527_v37  ;;  %v644_v15 = vpop.xlane.xlu1 %643 }
 0x40f   :  { %1189 = vrcp.f32 %v644_v15 }
 0x410   :  { %v536_v14 = vpack.c.bf16 %v534_v13, %v534_v13 }
 0x415   :  { %v1190_v16 = vpop.eup %1189 }
 0x416   :  { %v648_v18 = vmul.f32 %v1190_v16, %v1532_v39 }
 0x417   :  { %1075 = vmatmul.msk.bf16.vlgmr.msrb.gmra.mxu3 %vm309_vm8, %v536_v14 }
 0x418   :  { %v650_v19 = vpack.c.bf16 %v648_v18, %v648_v18  ;;  %v1150_v18 = vld [vmem:[%s1664_s8] ss:$0 sm:$0xff]  ;;  %s1022_s8 = sshll.u32 %s1676_s20, 4  ;;  %s1302_s20 = smov [#allocation6]   ;;  %s1023_s8 = int_to_ptr.hbm [resolvable:$true] %s1022_s8 }
 0x426   :  { %v652_v20 = vpop.permute.xlu1 %651 }
 0x427   :  { %v657_v21 = vsel %vm313_vm7, %v652_v20, 0  ;;  %1079 = vmatmul.msk.bf16.vlgmr.msra.gmra.mxu3 %vm309_vm8, %v650_v19  ;;  %v1151_v20 = vld [vmem:[%s1665_s9] ss:$0 sm:$0xff] }
 0x428   :  { %666 = vmatpush.bf16.msrb.mxu2 %v657_v21 }
 0x43b   :  { %v440_v22 = vpop.f32.mrf.mxu2 }
 0x43c   :  { %v641_v23 = vpop.xlane.xlu2 %640  ;;  %695 = vrot.lane.b32.xlu0 %v440_v22, %s1297_s30 }
 0x43d   :  { %1191 = vrcp.f32 %v641_v23 }
 0x443   :  { %v1192_v24 = vpop.eup %1191  ;;  %v442_v25 = vpop.f32.mrf.mxu2 }
 0x444   :  { %v647_v26 = vmul.f32 %v1192_v24, %v1180_v54  ;;  %v326_v27 = vpop.f32.mrf.mxu3  ;;  %v1125_v25 = vld [vmem:[%s1668_s12 + $0x18] sm:$0xff] }
 0x445   :  { %877 = vmatpush.bf16.msra.mxu2 %v1125_v25 }
 0x446   :  { %v649_v28 = vpack.c.bf16 %v647_v26, %v647_v26  ;;  %v1124_v26 = vld [vmem:[%s1668_s12 + $0x10] sm:$0xff] }
 0x448   :  { %1078 = vmatmul.msk.bf16.vlgmr.msrb.gmra.mxu2 %vm309_vm8, %v649_v28  ;;  %v1122_v28 = vld [vmem:[%s1668_s12] sm:$0xff] }
 0x449   :  { %878 = vmatpush.bf16.msra.mxu2 %v1124_v26 }
 0x44c   :  { %v328_v29 = vpop.f32.mrf.mxu3 }
 0x44d   :  { %v1152_v29 = vld [vmem:[%s1667_s11] ss:$0 sm:$0xff]  ;;  %s1031_s11 = sshll.u32 %s1302_s20, 4  ;;  %s1032_s11 = int_to_ptr.vmem [resolvable:$true] %s1031_s11 }
 0x454   :  { %v347_v30 = vpop.f32.mrf.mxu3 }
 0x45c   :  { %v349_v31 = vpop.f32.mrf.mxu3 }
 0x48a   :  { %v461_v32 = vpop.f32.mrf.mxu3 }
 0x48b   :  { %v554_v33 = vpop.f32.mrf.mxu2  ;;  %697 = vrot.lane.b32.xlu0 %v461_v32, %s1297_s30 }
 0x48c   :  { %703 = vrot.lane.b32.xlu1 %v554_v33, %s1298_s4 }
 0x492   :  { %v463_v34 = vpop.f32.mrf.mxu3 }
 0x493   :  { %v556_v35 = vpop.f32.mrf.mxu2 }
 0x49a   :  { %v575_v36 = vpop.f32.mrf.mxu3 }
 0x49b   :  { %705 = vrot.lane.b32.xlu0 %v575_v36, %s1298_s4 }
 0x4a2   :  { %v577_v37 = vpop.f32.mrf.mxu3 }
 0x4aa   :  { %v689_v38 = vpop.f32.mrf.mxu3 }
 0x4ab   :  { %713 = vrot.lane.b32.xlu1 %v689_v38, %s1299_s0 }
 0x4ae   :  { %v696_v44 = vpop.permute.xlu0 %695 }
 0x4af   :  { %v717_v51 = vsel %vm236_vm5, %v326_v27, %v696_v44  ;;  %v1123_v27 = vld [vmem:[%s1668_s12 + $0x8] sm:$0xff] }
 0x4b0   :  { %879 = vmatpush.bf16.msra.mxu2 %v1123_v27 }
 0x4b2   :  { %v691_v39 = vpop.f32.mrf.mxu3 }
 0x4b4   :  { %880 = vmatpush.bf16.msra.mxu2 %v1122_v28 }
 0x4cb   :  { %v668_v40 = vpop.f32.mrf.mxu2 }
 0x4cc   :  { %711 = vrot.lane.b32.xlu2 %v668_v40, %s1299_s0 }
 0x4d3   :  { %v670_v41 = vpop.f32.mrf.mxu2 }
 0x4fd   :  { %v698_v45 = vpop.permute.xlu0 %697 }
 0x4fe   :  { %v704_v2 = vpop.permute.xlu1 %703  ;;  %v718_v47 = vsel %vm236_vm5, %v347_v30, %v698_v45  ;;  %vm956_vm5 = vcmask 9216  }
 0x4ff   :  { %v720_v63 = vsel %vm719_vm10, %v717_v51, %v704_v2 }
 0x50d   :  { %v706_v46 = vpop.permute.xlu0 %705 }
 0x50e   :  { %v721_v48 = vsel %vm719_vm10, %v718_v47, %v706_v46 }
 0x51d   :  { %v714_v49 = vpop.permute.xlu1 %713 }
 0x51e   :  { %v724_v50 = vsel %vm722_vm9, %v721_v48, %v714_v49 }
 0x51f   :  { %729 = vst [vmem:[#allocation1 + $0x1] ss:$2 sm:$0xff] %v724_v50 }
 0x526   :  { %v712_v54 = vpop.permute.xlu2 %711 }
 0x527   :  { %v723_v55 = vsel %vm722_vm9, %v720_v63, %v712_v54  ;;  %v929_v54 = vld [vmem:[%s1672_s16 + $0x18] sm:$0xff]  ;;  %vm1002_vm9 = vcmask 1024  }
 0x528   :  { %727 = vst [vmem:[#allocation1] ss:$2 sm:$0xff] %v723_v55  ;;  %v928_v55 = vld [vmem:[%s1672_s16 + $0x10] sm:$0xff]  ;;  %948 = vmatpush.msrb.mxu3 %v929_v54 }
 0x52a   :  { %949 = vmatpush.msrb.mxu3 %v928_v55 }
 0x52f   :  { %v730_v56 = vld.sshfl [vmem:[#allocation1] sm:$0xff pattern:$0x75316420] }
 0x530   :  { %v732_v57 = vpack.c.bf16 %v730_v56, %v730_v56  ;;  %764 = vst [vmem:[#allocation1] ss:$2 sm:$0xff] %v1445_v52  ;;  %v927_v56 = vld [vmem:[%s1672_s16 + $0x8] sm:$0xff] }
 0x531   :  { %766 = vst [vmem:[#allocation1 + $0x1] ss:$2 sm:$0xff] %v1447_v53  ;;  %950 = vmatpush.msrb.mxu3 %v927_v56 }
 0x532   :  { %1088 = vmatmul.msk.bf16.vlgmr.msra.gmra.mxu0 %vm83_vm0, %v732_v57  ;;  %v926_v57 = vld [vmem:[%s1672_s16] sm:$0xff] }
 0x533   :  { %951 = vmatpush.msrb.mxu3 %v926_v57 }
 0x538   :  { %v767_v61 = vld.sshfl [vmem:[#allocation1] sm:$0xff pattern:$0x75316420] }
 0x5af   :  { %v760_v59 = vpop.f32.mrf.mxu0 }
 0x5b0   :  { %v761_v60 = vadd.f32 %v1149_v58, %v760_v59 }
 0x5b2   :  { %v769_v62 = vadd.f32 %v767_v61, %v761_v60 }
 0x5b4   :  { %v770_v0 = vsel %vm83_vm0, %v769_v62, 0.0 }
 0x5b5   :  { %771 = vadd.xlane.f32.xlu0 %v770_v0 }
 0x5b7   :  { %v762_v1 = vpop.f32.mrf.mxu0 }
 0x628   :  { %v772_v3 = vpop.xlane.xlu0 %771 }
 0x629   :  { %v773_v4 = vmul.f32 %v772_v3, %v1428_v17 }
 0x62b   :  { %v774_v52 = vsub.f32 %v769_v62, %v773_v4 }
 0x62d   :  { %v775_v5 = vmul.f32 %v774_v52, %v774_v52 }
 0x62f   :  { %v776_v53 = vsel %vm83_vm0, %v775_v5, 0.0 }
 0x630   :  { %777 = vadd.xlane.f32.xlu1 %v776_v53 }
 0x6a3   :  { %v778_v8 = vpop.xlane.xlu1 %777 }
 0x6a4   :  { %v779_v9 = vmul.f32 %v778_v8, %v1428_v17 }
 0x6a6   :  { %v780_v10 = vadd.f32 1e-05, %v779_v9 }
 0x6a8   :  { %1193 = vrsqrt.f32 %v780_v10  ;;  %vm787_vm12 = vweird.f32 %v780_v10 }
 0x6ae   :  { %v1194_v11 = vpop.eup %1193 }
 0x6af   :  { %v782_v12 = vmul.f32 %v1194_v11, %v780_v10  ;;  %vm788_vm11 = vweird.f32 %v1194_v11 }
 0x6b0   :  { %vm789_vm13 = vmor %vm787_vm12, %vm788_vm11 }
 0x6b1   :  { %v783_v13 = vmul.f32 %v1194_v11, %v782_v12  ;;  %v1156_v12 = vld [vmem:[%s1673_s17] ss:$0 sm:$0xff] }
 0x6b3   :  { %v784_v14 = vmul.f32 0.5, %v783_v13 }
 0x6b5   :  { %v785_v15 = vsub.f32 1.5, %v784_v14 }
 0x6b7   :  { %v786_v16 = vmul.f32 %v1194_v11, %v785_v15 }
 0x6b9   :  { %v790_v19 = vsel %vm789_vm13, %v1194_v11, %v786_v16 }
 0x6ba   :  { %v791_v21 = vmul.f32 %v790_v19, %v774_v52  ;;  %v1154_v52 = vld [vmem:[%s1670_s14] ss:$0 sm:$0xff] }
 0x6bc   :  { %v795_v22 = vmul.f32 %v1150_v18, %v791_v21 }
 0x6be   :  { %v799_v23 = vadd.f32 %v1151_v20, %v795_v22 }
 0x6c0   :  { %v800_v24 = vpack.c.bf16 %v799_v23, %v799_v23 }
 0x6c2   :  { %1097 = vmatmul.msk.bf16.vlgmr.msra.gmra.mxu1 %vm83_vm0, %v800_v24 }
 0x73f   :  { %v828_v30 = vpop.f32.mrf.mxu1 }
 0x740   :  { %v829_v31 = vadd.f32 %v1152_v29, %v828_v30 }
 0x742   :  { %v832_v32 = vmul.f32 %v829_v31, %v829_v31 }
 0x744   :  { %v833_v33 = vmul.f32 %v832_v32, %v829_v31 }
 0x746   :  { %v834_v34 = vmul.f32 0.044715, %v833_v33 }
 0x747   :  { %v830_v35 = vpop.f32.mrf.mxu1 }
 0x748   :  { %v835_v36 = vadd.f32 %v834_v34, %v829_v31 }
 0x74a   :  { %v836_v37 = vmul.f32 0.7978846, %v835_v36 }
 0x74c   :  { %1195 = vtanh.f32 %v836_v37 }
 0x752   :  { %v1196_v38 = vpop.eup %1195 }
 0x753   :  { %v838_v39 = vadd.f32 1.0, %v1196_v38 }
 0x755   :  { %v839_v40 = vmul.f32 0.5, %v838_v39 }
 0x757   :  { %v840_v41 = vmul.f32 %v839_v40, %v829_v31 }
 0x759   :  { %v841_v42 = vpack.c.bf16 %v840_v41, %v840_v41 }
 0x75b   :  { %1114 = vmatmul.msk.bf16.vlgmr.msra.gmra.mxu2 %vm869_vm14, %v841_v42 }
 0x7de   :  { %v882_v44 = vpop.f32.mrf.mxu2 }
 0x7df   :  { %v883_v45 = vadd.f32 %v1153_v43, %v882_v44  ;;  %v996_v44 = vld [vmem:[%s1674_s18] sm:$0x3] }
 0x7e1   :  { %v886_v2 = vadd.f32 %v883_v45, %v799_v23 }
 0x7e3   :  { %v887_v46 = vsel %vm83_vm0, %v886_v2, 0.0 }
 0x7e4   :  { %888 = vadd.xlane.f32.xlu2 %v887_v46 }
 0x7e6   :  { %v884_v47 = vpop.f32.mrf.mxu2 }
 0x857   :  { %v889_v48 = vpop.xlane.xlu2 %888 }
 0x858   :  { %v890_v49 = vmul.f32 %v889_v48, %v1428_v17 }
 0x85a   :  { %v891_v50 = vsub.f32 %v886_v2, %v890_v49 }
 0x85c   :  { %v892_v51 = vmul.f32 %v891_v50, %v891_v50 }
 0x85e   :  { %v893_v63 = vsel %vm83_vm0, %v892_v51, 0.0 }
 0x85f   :  { %894 = vadd.xlane.f32.xlu0 %v893_v63 }
 0x8d2   :  { %v895_v58 = vpop.xlane.xlu0 %894 }
 0x8d3   :  { %v896_v59 = vmul.f32 %v895_v58, %v1428_v17  ;;  %v1155_v17 = vld [vmem:[%s1671_s15] ss:$0 sm:$0xff]  ;;  %s1300_s15 = smov [#allocation4]  }
 0x8d4   :  { %s1020_s17 = sshll.u32 %s1300_s15, 4  ;;  %s1021_s17 = int_to_ptr.vmem [resolvable:$true] %s1020_s17 }
 0x8d5   :  { %v897_v60 = vadd.f32 1e-05, %v896_v59 }
 0x8d7   :  { %1197 = vrsqrt.f32 %v897_v60  ;;  %vm904_vm1 = vweird.f32 %v897_v60 }
 0x8dd   :  { %v1198_v61 = vpop.eup %1197 }
 0x8de   :  { %v899_v62 = vmul.f32 %v1198_v61, %v897_v60  ;;  %vm905_vm15 = vweird.f32 %v1198_v61 }
 0x8df   :  { %vm906_vm2 = vmor %vm904_vm1, %vm905_vm15 }
 0x8e0   :  { %v900_v0 = vmul.f32 %v1198_v61, %v899_v62 }
 0x8e2   :  { %v901_v1 = vmul.f32 0.5, %v900_v0 }
 0x8e4   :  { %v902_v3 = vsub.f32 1.5, %v901_v1 }
 0x8e6   :  { %v903_v4 = vmul.f32 %v1198_v61, %v902_v3 }
 0x8e8   :  { %v907_v5 = vsel %vm906_vm2, %v1198_v61, %v903_v4 }
 0x8e9   :  { %v908_v53 = vmul.f32 %v907_v5, %v891_v50 }
 0x8eb   :  { %v912_v6 = vmul.f32 %v1154_v52, %v908_v53 }
 0x8ed   :  { %v916_v7 = vadd.f32 %v1155_v17, %v912_v6 }
 0x8ef   :  { %v918_v8 = vrot.slane %v916_v7, 4  ;;  %v919_v9 = vperm.slane %v916_v7, 0 }
 0x8f1   :  { %v920_v10 = vperm.slane %v918_v8, 0 }
 0x8f3   :  { %v922_v11 = vsel %vm921_vm3, %v920_v10, %v919_v9 }
 0x8f4   :  { %1115 = vmatmul.msk.f32.vlgmr.msrb.gmra.mxu3 %vm83_vm0, %v922_v11  ;;  %925 = vst.msk [vmem:[#allocation6] sm:$0x3] %vm924_vm4, %v922_v11 }
 0x977   :  { %v953_v13 = vpop.f32.mrf.mxu3 }
 0x978   :  { %v954_v14 = vadd.f32 %v1156_v12, %v953_v13 }
 0x97a   :  { %v958_v15 = vsel %vm956_vm5, %v954_v14, -inf  ;;  %957 = vst.msk [vmem:[#allocation2] sm:$0x3] %vm956_vm5, %v954_v14 }
 0x97b   :  { %959 = vmax.xlane.f32.xlu1 %v958_v15  ;;  %1014 = dma.vmem_to_hbm [thread:$0]  %s1010_s25, 32, %s1012_s24, [#allocation3]  }
 0x9ee   :  { %v960_v16 = vpop.xlane.xlu1 %959 }
 0x9ef   :  { %v961_v18 = vsub.f32 %v954_v14, %v960_v16 }
 0x9f1   :  { %v962_v19 = vmul.f32 1.442695, %v961_v18 }
 0x9f3   :  { %1199 = vpow2.f32 %v962_v19 }
 0x9f9   :  { %v1200_v20 = vpop.eup %1199 }
 0x9fa   :  { %v964_v21 = vsel %vm956_vm5, %v1200_v20, 0.0 }
 0x9fb   :  { %965 = vadd.xlane.f32.xlu0 %v964_v21 }
 0xa6e   :  { %v966_v22 = vpop.xlane.xlu0 %965 }
 0xa6f   :  { %1201 = vrcp.f32 %v966_v22  ;;  %v978_v26 = vand.u32 2147483648, %v966_v22  ;;  %v976_v28 = vand.u32 2147483647, %v966_v22  ;;  %vm972_vm6 = vweird.f32 %v966_v22 }
 0xa71   :  { %v979_v30 = vor.u32 1.1754944e-38, %v978_v26  ;;  %vm977_vm8 = vcmp.eq.f32.partialorder %v976_v28, 8.507059e+37 }
 0xa75   :  { %v1202_v23 = vpop.eup %1201 }
 0xa76   :  { %v968_v24 = vmul.f32 %v1202_v23, %v966_v22  ;;  %vm973_vm0 = vweird.f32 %v1202_v23 }
 0xa77   :  { %vm974_vm7 = vmor %vm972_vm6, %vm973_vm0 }
 0xa78   :  { %v969_v25 = vsub.f32 1.0, %v968_v24 }
 0xa7a   :  { %v970_v27 = vmul.f32 %v1202_v23, %v969_v25 }
 0xa7c   :  { %v971_v29 = vadd.f32 %v1202_v23, %v970_v27 }
 0xa7e   :  { %v975_v31 = vsel %vm974_vm7, %v1202_v23, %v971_v29 }
 0xa7f   :  { %v980_v32 = vsel %vm977_vm8, %v979_v30, %v975_v31 }
 0xa80   :  { %v981_v33 = vmul.f32 %v1200_v20, %v980_v32 }
 0xa82   :  { %v983_v34 = vsel %vm956_vm5, %v981_v33, -inf  ;;  %982 = vst.msk [vmem:[#allocation4] sm:$0x3] %vm956_vm5, %v981_v33 }
 0xa83   :  { %984 = vmax.xlane.f32.xlu1 %v983_v34  ;;  %1025 = dma.vmem_to_hbm [thread:$0]  %s1021_s17, 32, %s1023_s8, [#allocation5]  }
 0xa84   :  { %1036 = dma.vmem_to_hbm [thread:$0]  %s1032_s11, 32, %s1034_s27, [#allocation5]  }
 0xaf6   :  { %v985_v35 = vpop.xlane.xlu1 %984 }
 0xaf7   :  { %v986_v36 = vsub.f32 %v981_v33, %v985_v35 }
 0xaf9   :  { %v987_v37 = vmul.f32 1.442695, %v986_v36 }
 0xafb   :  { %1203 = vpow2.f32 %v987_v37 }
 0xb01   :  { %v1204_v38 = vpop.eup %1203 }
 0xb02   :  { %v989_v39 = vsel %vm956_vm5, %v1204_v38, 0.0 }
 0xb03   :  { %990 = vadd.xlane.f32.xlu0 %v989_v39 }
 0xb76   :  { %v991_v40 = vpop.xlane.xlu0 %990 }
 0xb77   :  { %1205 = vlog2.f32 %v991_v40 }
 0xb7d   :  { %v1206_v41 = vpop.eup %1205 }
 0xb7e   :  { %v993_v42 = vmul.f32 0.6931472, %v1206_v41 }
 0xb80   :  { %v994_v43 = vadd.f32 %v993_v42, %v985_v35 }
 0xb82   :  { %v995_v45 = vsub.f32 %v981_v33, %v994_v43 }
 0xb84   :  { %v997_v2 = vmul.f32 %v996_v44, %v995_v45 }
 0xb86   :  { %v998_v46 = vsel %vm956_vm5, %v997_v2, 0.0 }
 0xb87   :  { %999 = vadd.xlane.f32.xlu2 %v998_v46 }
 0xbfa   :  { %v1000_v47 = vpop.xlane.xlu2 %999 }
 0xbfb   :  { %v1001_v48 = vsub.f32 0.0, %v1000_v47 }
 0xbfd   :  { %1003 = vst.msk [vmem:[%s1678_s22] sm:$0x3] %vm1002_vm9, %v1001_v48 }
 0xbfe   :  { %1279 = dma.done.wait [#allocation3], 32  }
 0xbff   :  { %1280 = vsyncadd [#allocation3], 4294967264 }
 0xc00   :  { %1281 = dma.done.wait [#allocation5], 64  }
 0xc01   :  { %1282 = vsyncadd [#allocation5], 4294967232 }
 0xc02   :  { %1053 = vsyncpa [#allocation3], 1 }
 0xc03   :  { %1054 = vsyncpa [#allocation5], 1 }

// kernel: hierarchical_bert_forward.2
= control target key start
LH: loop header
LB: loop body
LE: loop exit
PB: predicated region body
PF: predicated region fallthrough
CT: control target
= control target key end

     0   :  { %s2613_s24 = smov 0   ;;  %s3106_s0 = inlined_call_operand.vmem [shape: f32[8,8,32], index: 0, kind: input, shape index: {}]   ;;  %s3107_s1 = inlined_call_operand.vmem [shape: f32[8,1,8], index: 1, kind: input, shape index: {}]   ;;  %s3108_s2 = inlined_call_operand.vmem [shape: f32[8,32], index: 2, kind: input, shape index: {}]   ;;  %s3109_s3 = inlined_call_operand.vmem [shape: f32[1,32], index: 3, kind: input, shape index: {}]   ;;  %s3110_s4 = inlined_call_operand.vmem [shape: f32[1,32], index: 4, kind: input, shape index: {}]   ;;  %s3111_s5 = inlined_call_operand.vmem [shape: bf16[32,96], index: 5, kind: input, shape index: {}]   ;;  %s3112_s6 = inlined_call_operand.vmem [shape: f32[1,96], index: 6, kind: input, shape index: {}]   ;;  %s3113_s7 = inlined_call_operand.vmem [shape: bf16[32,32], index: 7, kind: input, shape index: {}]   ;;  %s3114_s8 = inlined_call_operand.vmem [shape: f32[1,32], index: 8, kind: input, shape index: {}]   ;;  %s3115_s9 = inlined_call_operand.vmem [shape: f32[1,32], index: 9, kind: input, shape index: {}]   ;;  %s3116_s10 = inlined_call_operand.vmem [shape: f32[1,32], index: 10, kind: input, shape index: {}]   ;;  %s3117_s11 = inlined_call_operand.vmem [shape: bf16[32,64], index: 11, kind: input, shape index: {}]   ;;  %s3118_s12 = inlined_call_operand.vmem [shape: f32[1,64], index: 12, kind: input, shape index: {}]   ;;  %s3119_s13 = inlined_call_operand.vmem [shape: bf16[64,32], index: 13, kind: input, shape index: {}]   ;;  %s3120_s14 = inlined_call_operand.vmem [shape: f32[1,32], index: 14, kind: input, shape index: {}]   ;;  %s3121_s15 = inlined_call_operand.vmem [shape: f32[1,32], index: 15, kind: input, shape index: {}]   ;;  %s3122_s16 = inlined_call_operand.vmem [shape: f32[1,32], index: 16, kind: input, shape index: {}]   ;;  %s3123_s17 = inlined_call_operand.vmem [shape: f32[8,1,32], index: 17, kind: output, shape index: {}]  }
   0x1   :  { %3124 = sst [smem:[#allocation2_spill]] %s3106_s0 }
   0x2   :  { %3125 = sst [smem:[#allocation3_spill]] %s3107_s1 }
   0x3 LB: > { %s2236_s25 = sadd.s32 4294967295, %s2506_s24   ;;  %p2240_p0 = scmp.ge.s32.totalorder %s2506_s24, 1  ;;  %s2506_s24 = sphi %s2613_s24, %s27_s24  }
   0x4   : > { %p498_p1 = scmp.lt.s32.totalorder %s2506_s24, 3 }
   0x6   : > { %p499_p2 = pnand %p2240_p0, %p498_p1 }
   0x7   : > { %s2241_s26 = sshll.u32 (!%p499_p2), %s2236_s25, 2  ;;  %s3126_s18 = sld [smem:[#allocation2_spill]] (!%p499_p2) }
   0x8   : > { %502 = sbr.rel (%p499_p2) target bundleno = 3556 (0xde4), region = 88  ;;  %p554_p3 = scmp.lt.s32.totalorder (!%p499_p2), %s2241_s26, 7 }
   0x9   : > { %s2509_s30 = smov (!%p499_p2), 96   ;;  %s3127_s1 = sld [smem:[#allocation3_spill]] (!%p499_p2) }
   0xa   : > { %s2510_s21 = smov (!%p499_p2), 64   ;;  %s2511_s22 = smov (!%p499_p2), 88  }
   0xb   : > { %s2512_s23 = smov (!%p499_p2), 120   ;;  %s2513_s25 = smov (!%p499_p2), 56  }
   0xc   : > { %s2515_s28 = smov (!%p499_p2), 80   ;;  %s2516_s29 = smov (!%p499_p2), 48  }
   0xd   : > { %s3129_s26 = smov (!%p554_p3, %s2241_s26), 7  ;;  %v574_v0 = vld [vmem:[%s3108_s2] sm:$0xff]  ;;  %vm581_vm0 = vcmask 261120   ;;  %v2508_v13 = vmov 32.0   ;;  %v2328_v40 = vld [vmem:[%s3111_s5 + $0x8] sm:$0xff]  ;;  %vm782_vm14 = vcmask 64512  }
   0xe   : > { %s2242_s27 = sshll.u32 %s3129_s26, 3  ;;  %2402 = vrcp.f32 %v2508_v13  ;;  %760 = vmatpush.bf16.msra.mxu0 %v2328_v40  ;;  %2337 = vmatpush.bf16.msra.mxu1 %v2328_v40  ;;  %v2327_v45 = vld [vmem:[%s3111_s5] sm:$0xff]  ;;  %vm947_vm15 = vcmask 1043456   ;;  %s2517_s0 = smov 72  }
   0xf   : > { %s557_s19 = scalar_lea.vmem %s3126_s18, %s2242_s27  ;;  %s2721_s20 = scalar_lea.vmem %s3127_s1, %s3129_s26 }
  0x10   : > { %v572_v1 = vld [vmem:[%s557_s19 + $0x10] sm:$0xff]  ;;  %v570_v2 = vld [vmem:[%s557_s19] sm:$0xff]  ;;  %v573_v5 = vld [vmem:[%s557_s19 + $0x18] sm:$0xff]  ;;  %s2514_s27 = smov 112   ;;  %s2519_s18 = smov 40  }
  0x11   : > { %v577_v3 = vadd.f32 %v574_v0, %v572_v1  ;;  %v575_v4 = vadd.f32 %v574_v0, %v570_v2  ;;  %v571_v6 = vld [vmem:[%s557_s19 + $0x8] sm:$0xff]  ;;  %v578_v9 = vadd.f32 %v574_v0, %v573_v5  ;;  %s2520_s19 = smov 8   ;;  %s2521_s1 = smov 16  }
  0x12   : > { %v576_v10 = vadd.f32 %v574_v0, %v571_v6  ;;  %761 = vmatpush.bf16.msra.mxu0 %v2327_v45  ;;  %2338 = vmatpush.bf16.msra.mxu1 %v2327_v45 }
  0x13   : > { %v588_v7 = vsel %vm581_vm0, %v577_v3, 0.0  ;;  %v582_v8 = vsel %vm581_vm0, %v575_v4, 0.0  ;;  %v591_v11 = vsel %vm581_vm0, %v578_v9, 0.0 }
  0x14   : > { %589 = vadd.xlane.f32.xlu1 %v588_v7  ;;  %583 = vadd.xlane.f32.xlu0 %v582_v8  ;;  %v585_v12 = vsel %vm581_vm0, %v576_v10, 0.0  ;;  %v2403_v14 = vpop.eup %2402 }
  0x15   : > { %v595_v15 = vmul.f32 32.0, %v2403_v14  ;;  %vm599_vm1 = vweird.f32 %v2403_v14 }
  0x17   : > { %v596_v16 = vsub.f32 1.0, %v595_v15  ;;  %v2392_v15 = vld [vmem:[%s3109_s3] ss:$0 sm:$0xff] }
  0x19   : > { %v597_v17 = vmul.f32 %v2403_v14, %v596_v16 }
  0x1b   : > { %v598_v18 = vadd.f32 %v2403_v14, %v597_v17 }
  0x1c   : > { %592 = vadd.xlane.f32.xlu1 %v591_v11  ;;  %586 = vadd.xlane.f32.xlu0 %v585_v12 }
  0x1d   : > { %v2634_v19 = vsel %vm599_vm1, %v2403_v14, %v598_v18  ;;  %vm1775_vm1 = vcmask 130048  }
  0x87   : > { %v590_v20 = vpop.xlane.xlu1 %589  ;;  %v584_v21 = vpop.xlane.xlu0 %583 }
  0x88   : > { %v603_v22 = vmul.f32 %v2634_v19, %v590_v20  ;;  %v601_v23 = vmul.f32 %v2634_v19, %v584_v21 }
  0x8a   : > { %v2638_v24 = vsub.f32 %v577_v3, %v603_v22  ;;  %v2640_v25 = vsub.f32 %v575_v4, %v601_v23  ;;  %v2393_v23 = vld [vmem:[%s3110_s4] ss:$0 sm:$0xff] }
  0x8c   : > { %v611_v26 = vmul.f32 %v2638_v24, %v2638_v24  ;;  %v609_v27 = vmul.f32 %v2640_v25, %v2640_v25 }
  0x8e   : > { %v619_v28 = vsel %vm581_vm0, %v611_v26, 0.0  ;;  %v613_v29 = vsel %vm581_vm0, %v609_v27, 0.0 }
  0x8f   : > { %v593_v30 = vpop.xlane.xlu1 %592  ;;  %620 = vadd.xlane.f32.xlu0 %v619_v28  ;;  %614 = vadd.xlane.f32.xlu2 %v613_v29  ;;  %v587_v31 = vpop.xlane.xlu0 %586 }
  0x90   : > { %v604_v32 = vmul.f32 %v2634_v19, %v593_v30  ;;  %v602_v33 = vmul.f32 %v2634_v19, %v587_v31 }
  0x92   : > { %v2650_v34 = vsub.f32 %v578_v9, %v604_v32  ;;  %v2652_v35 = vsub.f32 %v576_v10, %v602_v33 }
  0x94   : > { %v612_v36 = vmul.f32 %v2650_v34, %v2650_v34  ;;  %v610_v37 = vmul.f32 %v2652_v35, %v2652_v35 }
  0x96   : > { %v622_v38 = vsel %vm581_vm0, %v612_v36, 0.0  ;;  %v616_v39 = vsel %vm581_vm0, %v610_v37, 0.0 }
  0x97   : > { %623 = vadd.xlane.f32.xlu1 %v622_v38  ;;  %617 = vadd.xlane.f32.xlu2 %v616_v39 }
 0x102   : > { %v615_v41 = vpop.xlane.xlu2 %614  ;;  %v621_v42 = vpop.xlane.xlu0 %620 }
 0x103   : > { %v625_v43 = vmul.f32 %v615_v41, %v2634_v19  ;;  %v627_v44 = vmul.f32 %v621_v42, %v2634_v19 }
 0x105   : > { %v629_v46 = vadd.f32 1e-05, %v625_v43  ;;  %v631_v47 = vadd.f32 1e-05, %v627_v44 }
 0x107   : > { %2404 = vrsqrt.f32 %v629_v46  ;;  %vm659_vm2 = vweird.f32 %v631_v47  ;;  %vm639_vm6 = vweird.f32 %v629_v46 }
 0x108   : > { %2406 = vrsqrt.f32 %v631_v47 }
 0x10a   : > { %v624_v48 = vpop.xlane.xlu1 %623  ;;  %v618_v49 = vpop.xlane.xlu2 %617 }
 0x10b   : > { %v628_v50 = vmul.f32 %v624_v48, %v2634_v19  ;;  %v626_v51 = vmul.f32 %v618_v49, %v2634_v19 }
 0x10d   : > { %v2405_v52 = vpop.eup %2404  ;;  %v632_v53 = vadd.f32 1e-05, %v628_v50  ;;  %v630_v54 = vadd.f32 1e-05, %v626_v51 }
 0x10e   : > { %v2407_v55 = vpop.eup %2406  ;;  %v634_v56 = vmul.f32 %v2405_v52, %v629_v46  ;;  %vm640_vm4 = vweird.f32 %v2405_v52 }
 0x10f   : > { %v654_v57 = vmul.f32 %v2407_v55, %v631_v47  ;;  %2408 = vrsqrt.f32 %v632_v53  ;;  %vm660_vm3 = vweird.f32 %v2407_v55  ;;  %vm641_vm7 = vmor %vm639_vm6, %vm640_vm4  ;;  %vm669_vm8 = vweird.f32 %v632_v53 }
 0x110   : > { %v635_v58 = vmul.f32 %v2405_v52, %v634_v56  ;;  %2410 = vrsqrt.f32 %v630_v54  ;;  %vm661_vm5 = vmor %vm659_vm2, %vm660_vm3  ;;  %vm649_vm12 = vweird.f32 %v630_v54  ;;  %vm1780_vm2 = vcmask 195584  }
 0x111   : > { %v655_v59 = vmul.f32 %v2407_v55, %v654_v57 }
 0x112   : > { %v636_v60 = vmul.f32 0.5, %v635_v58 }
 0x113   : > { %v656_v61 = vmul.f32 0.5, %v655_v59 }
 0x114   : > { %v637_v62 = vsub.f32 1.5, %v636_v60 }
 0x115   : > { %v2409_v63 = vpop.eup %2408  ;;  %v657_v0 = vsub.f32 1.5, %v656_v61 }
 0x116   : > { %v2411_v1 = vpop.eup %2410  ;;  %v664_v2 = vmul.f32 %v2409_v63, %v632_v53  ;;  %v638_v3 = vmul.f32 %v2405_v52, %v637_v62  ;;  %vm670_vm9 = vweird.f32 %v2409_v63 }
 0x117   : > { %v658_v4 = vmul.f32 %v2407_v55, %v657_v0  ;;  %v644_v5 = vmul.f32 %v2411_v1, %v630_v54  ;;  %vm671_vm10 = vmor %vm669_vm8, %vm670_vm9  ;;  %vm650_vm11 = vweird.f32 %v2411_v1  ;;  %v692_v0 = vld [vmem:[%s2721_s20 + $0x1] sm:$0x1] }
 0x118   : > { %v665_v6 = vmul.f32 %v2409_v63, %v664_v2  ;;  %v642_v10 = vsel %vm641_vm7, %v2405_v52, %v638_v3  ;;  %vm651_vm13 = vmor %vm649_vm12, %vm650_vm11  ;;  %v691_v3 = vld [vmem:[%s2721_s20] sm:$0x1] }
 0x119   : > { %v645_v7 = vmul.f32 %v2411_v1, %v644_v5  ;;  %v662_v8 = vsel %vm661_vm5, %v2407_v55, %v658_v4  ;;  %v673_v16 = vmul.f32 %v642_v10, %v2640_v25 }
 0x11a   : > { %v666_v9 = vmul.f32 0.5, %v665_v6  ;;  %v675_v13 = vmul.f32 %v662_v8, %v2638_v24 }
 0x11b   : > { %v646_v11 = vmul.f32 0.5, %v645_v7  ;;  %v680_v27 = vmul.f32 %v2392_v15, %v673_v16  ;;  %v695_v7 = vsub.f32 1.0, %v691_v3 }
 0x11c   : > { %v667_v12 = vsub.f32 1.5, %v666_v9  ;;  %v682_v24 = vmul.f32 %v2392_v15, %v675_v13  ;;  %v693_v9 = vld [vmem:[%s2721_s20 + $0x2] sm:$0x1] }
 0x11d   : > { %v647_v14 = vsub.f32 1.5, %v646_v11  ;;  %v2684_v31 = vadd.f32 %v2393_v23, %v680_v27  ;;  %v699_v11 = vmul.f32 -1e+09, %v695_v7 }
 0x11e   : > { %v668_v17 = vmul.f32 %v2409_v63, %v667_v12  ;;  %v2680_v30 = vadd.f32 %v2393_v23, %v682_v24  ;;  %v697_v12 = vsub.f32 1.0, %v693_v9 }
 0x11f   : > { %v648_v18 = vmul.f32 %v2411_v1, %v647_v14  ;;  %v2730_v14 = vperm.slane %v699_v11, 0 }
 0x120   : > { %v672_v20 = vsel %vm671_vm10, %v2409_v63, %v668_v17  ;;  %v701_v16 = vmul.f32 -1e+09, %v697_v12 }
 0x121   : > { %v676_v21 = vmul.f32 %v672_v20, %v2650_v34  ;;  %v652_v22 = vsel %vm651_vm13, %v2411_v1, %v648_v18  ;;  %v696_v1 = vsub.f32 1.0, %v692_v0 }
 0x122   : > { %v674_v26 = vmul.f32 %v652_v22, %v2652_v35  ;;  %v2394_v35 = vld [vmem:[%s3112_s6] ss:$0 sm:$0xff]  ;;  %v2733_v20 = vperm.slane %v701_v16, 0 }
 0x123   : > { %v683_v28 = vmul.f32 %v2392_v15, %v676_v21  ;;  %v700_v2 = vmul.f32 -1e+09, %v696_v1 }
 0x124   : > { %v681_v29 = vmul.f32 %v2392_v15, %v674_v26 }
 0x125   : > { %v2682_v25 = vadd.f32 %v2393_v23, %v683_v28  ;;  %v2725_v4 = vperm.slane %v700_v2, 0 }
 0x126   : > { %v2686_v32 = vadd.f32 %v2393_v23, %v681_v29 }
 0x127   : > { %v732_v33 = vpack.c.bf16 %v2682_v25, %v2680_v30 }
 0x128   : > { %v731_v34 = vpack.c.bf16 %v2686_v32, %v2684_v31 }
 0x129   : > { %2254 = vmatmul.msk.bf16.vlgmr.msra.gmra.mxu1 %vm581_vm0, %v732_v33 }
 0x12a   : > { %2253 = vmatmul.msk.bf16.vlgmr.msra.gmra.mxu0 %vm581_vm0, %v731_v34  ;;  %v694_v34 = vld [vmem:[%s2721_s20 + $0x3] sm:$0x1]  ;;  %s2522_s20 = smov 24  }
 0x1a6   : > { %v768_v36 = vpop.f32.mrf.mxu1 }
 0x1a7   : > { %v763_v37 = vpop.f32.mrf.mxu0  ;;  %v769_v38 = vadd.f32 %v2394_v35, %v768_v36 }
 0x1a8   : > { %v764_v39 = vadd.f32 %v2394_v35, %v763_v37 }
 0x1a9   : > { %v775_v40 = vpack.c.bf16 %v769_v38, %v769_v38 }
 0x1aa   : > { %v773_v41 = vpack.c.bf16 %v764_v39, %v764_v39 }
 0x1ab   : > { %v827_v42 = vunpack.c.l.b16 %v775_v40 }
 0x1ac   : > { %v778_v43 = vunpack.c.l.b16 %v773_v41 }
 0x1ad   : > { %v2697_v44 = vpack.c.b16 %v827_v42, %v827_v42 }
 0x1ae   : > { %v2699_v45 = vpack.c.b16 %v778_v43, %v778_v43  ;;  %v770_v47 = vpop.f32.mrf.mxu1 }
 0x1af   : > { %v765_v46 = vpop.f32.mrf.mxu0  ;;  %829 = vrot.lane.b32.xlu1 %v2697_v44, %s2509_s30  ;;  %v771_v50 = vadd.f32 %v2394_v35, %v770_v47 }
 0x1b0   : > { %v766_v48 = vadd.f32 %v2394_v35, %v765_v46  ;;  %780 = vrot.lane.b32.xlu0 %v2699_v45, %s2509_s30  ;;  %v698_v35 = vsub.f32 1.0, %v694_v34 }
 0x1b1   : > { %v776_v53 = vpack.c.bf16 %v771_v50, %v771_v50 }
 0x1b2   : > { %v774_v49 = vpack.c.bf16 %v766_v48, %v766_v48  ;;  %v702_v36 = vmul.f32 -1e+09, %v698_v35 }
 0x1b3   : > { %v851_v54 = vunpack.c.l.b16 %v776_v53 }
 0x1b4   : > { %v803_v51 = vunpack.c.l.b16 %v774_v49  ;;  %v2741_v38 = vperm.slane %v702_v36, 0 }
 0x1b5   : > { %v2706_v55 = vpack.c.b16 %v851_v54, %v851_v54 }
 0x1b6   : > { %v2703_v52 = vpack.c.b16 %v803_v51, %v803_v51 }
 0x1b8   : > { %805 = vrot.lane.b32.xlu2 %v2703_v52, %s2509_s30 }
 0x1c0   : > { %853 = vrot.lane.b32.xlu2 %v2706_v55, %s2509_s30  ;;  %s2518_s30 = smov 104  }
 0x212   : > { %v806_v56 = vpop.permute.xlu2 %805 }
 0x213   : > { %v811_v57 = vsel %vm782_vm14, %v806_v56, 0 }
 0x214   : > { %820 = vmatpush.bf16.xpose.msra.mxu2 %v811_v57 }
 0x21a   : > { %v854_v58 = vpop.permute.xlu2 %853 }
 0x21b   : > { %2256 = vmatmul.msk.bf16.vlgmr.msra.gmra.mxu2 %vm782_vm14, %v774_v49  ;;  %v859_v63 = vsel %vm782_vm14, %v854_v58, 0 }
 0x221   : > { %v830_v59 = vpop.permute.xlu1 %829 }
 0x222   : > { %v781_v60 = vpop.permute.xlu0 %780  ;;  %v835_v61 = vsel %vm782_vm14, %v830_v59, 0 }
 0x223   : > { %v787_v62 = vsel %vm782_vm14, %v781_v60, 0  ;;  %844 = vmatpush.bf16.xpose.msra.mxu3 %v835_v61 }
 0x224   : > { %796 = vmatpush.bf16.xpose.msrb.mxu1 %v787_v62 }
 0x22a   : > { %2257 = vmatmul.msk.bf16.vlgmr.msra.gmra.mxu3 %vm782_vm14, %v775_v40 }
 0x22b   : > { %2255 = vmatmul.msk.bf16.vlgmr.msrb.gmra.mxu1 %vm782_vm14, %v773_v41 }
 0x22c   : > { %868 = vmatpush.bf16.xpose.msra.mxu1 %v859_v63 }
 0x23b   : > { %2258 = vmatmul.msk.bf16.vlgmr.msra.gmra.mxu1 %vm782_vm14, %v776_v53 }
 0x29e   : > { %v822_v5 = vpop.f32.mrf.mxu2 }
 0x29f   : > { %v875_v6 = vmul.f32 0.35355338, %v822_v5 }
 0x2a1   : > { %v891_v8 = vadd.f32 %v2725_v4, %v875_v6 }
 0x2a3   : > { %v897_v10 = vsel %vm782_vm14, %v891_v8, -inf }
 0x2a4   : > { %898 = vmax.xlane.f32.xlu2 %v897_v10 }
 0x2a6   : > { %v824_v13 = vpop.f32.mrf.mxu2 }
 0x2a8   : > { %v798_v15 = vpop.f32.mrf.mxu1 }
 0x2a9   : > { %v874_v17 = vmul.f32 0.35355338, %v798_v15 }
 0x2ab   : > { %v890_v18 = vadd.f32 %v2730_v14, %v874_v17 }
 0x2ad   : > { %v846_v21 = vpop.f32.mrf.mxu3  ;;  %v894_v22 = vsel %vm782_vm14, %v890_v18, -inf }
 0x2ae   : > { %v876_v23 = vmul.f32 0.35355338, %v846_v21  ;;  %895 = vmax.xlane.f32.xlu0 %v894_v22 }
 0x2b0   : > { %v800_v24 = vpop.f32.mrf.mxu1  ;;  %v892_v26 = vadd.f32 %v2733_v20, %v876_v23 }
 0x2b2   : > { %v900_v27 = vsel %vm782_vm14, %v892_v26, -inf }
 0x2b3   : > { %901 = vmax.xlane.f32.xlu1 %v900_v27 }
 0x2b5   : > { %v848_v28 = vpop.f32.mrf.mxu3 }
 0x2b8   : > { %v870_v29 = vpop.f32.mrf.mxu1 }
 0x2b9   : > { %v877_v37 = vmul.f32 0.35355338, %v870_v29 }
 0x2bb   : > { %v893_v39 = vadd.f32 %v2741_v38, %v877_v37 }
 0x2bc   : > { %964 = vrot.lane.b32.xlu2 %v2703_v52, %s2510_s21 }
 0x2bd   : > { %v903_v40 = vsel %vm782_vm14, %v893_v39, -inf }
 0x2c0   : > { %v872_v33 = vpop.f32.mrf.mxu1 }
 0x2c2   : > { %942 = vrot.lane.b32.xlu0 %v2699_v45, %s2510_s21 }
 0x2ec   : > { %904 = vmax.xlane.f32.xlu0 %v903_v40 }
 0x300   : > { %1052 = vrot.lane.b32.xlu0 %v2703_v52, %s2511_s22 }
 0x308   : > { %1050 = vrot.lane.b32.xlu0 %v2703_v52, %s2512_s23 }
 0x310   : > { %985 = vrot.lane.b32.xlu0 %v2697_v44, %s2510_s21 }
 0x317   : > { %v899_v41 = vpop.xlane.xlu2 %898 }
 0x318   : > { %v907_v42 = vsub.f32 %v891_v8, %v899_v41  ;;  %1006 = vrot.lane.b32.xlu0 %v2706_v55, %s2510_s21 }
 0x31a   : > { %v912_v43 = vmul.f32 1.442695, %v907_v42 }
 0x31c   : > { %2412 = vpow2.f32 %v912_v43 }
 0x31f   : > { %v965_v46 = vpop.permute.xlu2 %964 }
 0x320   : > { %1075 = vrot.lane.b32.xlu0 %v2697_v44, %s2511_s22  ;;  %v970_v47 = vsel %vm947_vm15, %v965_v46, 0 }
 0x321   : > { %979 = vmatpush.bf16.msrb.mxu3 %v970_v47  ;;  %v896_v48 = vpop.xlane.xlu0 %895 }
 0x322   : > { %v2413_v49 = vpop.eup %2412  ;;  %v906_v50 = vsub.f32 %v890_v18, %v896_v48 }
 0x323   : > { %v921_v51 = vsel %vm782_vm14, %v2413_v49, 0.0 }
 0x324   : > { %v910_v53 = vmul.f32 1.442695, %v906_v50  ;;  %922 = vadd.xlane.f32.xlu1 %v921_v51 }
 0x326   : > { %2414 = vpow2.f32 %v910_v53  ;;  %v902_v59 = vpop.xlane.xlu1 %901 }
 0x327   : > { %v908_v60 = vsub.f32 %v892_v26, %v902_v59 }
 0x328   : > { %1098 = vrot.lane.b32.xlu0 %v2706_v55, %s2511_s22 }
 0x329   : > { %v914_v61 = vmul.f32 1.442695, %v908_v60 }
 0x32b   : > { %2416 = vpow2.f32 %v914_v61 }
 0x32c   : > { %v2415_v54 = vpop.eup %2414 }
 0x32d   : > { %v918_v56 = vsel %vm782_vm14, %v2415_v54, 0.0 }
 0x32e   : > { %919 = vadd.xlane.f32.xlu2 %v918_v56 }
 0x330   : > { %1073 = vrot.lane.b32.xlu0 %v2697_v44, %s2512_s23 }
 0x331   : > { %v2417_v1 = vpop.eup %2416 }
 0x332   : > { %v924_v2 = vsel %vm782_vm14, %v2417_v1, 0.0 }
 0x334   : > { %v943_v57 = vpop.permute.xlu0 %942 }
 0x335   : > { %v949_v58 = vsel %vm947_vm15, %v943_v57, 0 }
 0x336   : > { %958 = vmatpush.bf16.msrb.mxu2 %v949_v58 }
 0x33d   : > { %1029 = vrot.lane.b32.xlu1 %v2699_v45, %s2511_s22 }
 0x346   : > { %1027 = vrot.lane.b32.xlu2 %v2699_v45, %s2512_s23 }
 0x35f   : > { %v905_v62 = vpop.xlane.xlu0 %904 }
 0x360   : > { %v909_v63 = vsub.f32 %v893_v39, %v905_v62 }
 0x362   : > { %v916_v0 = vmul.f32 1.442695, %v909_v63 }
 0x364   : > { %2418 = vpow2.f32 %v916_v0 }
 0x367   : > { %925 = vadd.xlane.f32.xlu1 %v924_v2 }
 0x36a   : > { %v2419_v3 = vpop.eup %2418 }
 0x36b   : > { %v927_v5 = vsel %vm782_vm14, %v2419_v3, 0.0 }
 0x36f   : > { %928 = vadd.xlane.f32.xlu2 %v927_v5 }
 0x372   : > { %v1053_v6 = vpop.permute.xlu0 %1052 }
 0x373   : > { %v1058_v7 = vsel %vm782_vm14, %v1053_v6, 0 }
 0x374   : > { %1067 = vmatpush.bf16.xpose.msra.mxu3 %v1058_v7 }
 0x37a   : > { %v1051_v8 = vpop.permute.xlu0 %1050 }
 0x380   : > { %1096 = vrot.lane.b32.xlu1 %v2706_v55, %s2512_s23 }
 0x382   : > { %v986_v9 = vpop.permute.xlu0 %985 }
 0x383   : > { %v991_v10 = vsel %vm947_vm15, %v986_v9, 0 }
 0x384   : > { %1000 = vmatpush.bf16.msrb.mxu0 %v991_v10 }
 0x387   : > { %1175 = vrot.lane.b32.xlu2 %v2699_v45, %s2513_s25 }
 0x388   : > { %1259 = vrot.lane.b32.xlu1 %v2699_v45, %s2514_s27 }
 0x38a   : > { %v1007_v11 = vpop.permute.xlu0 %1006 }
 0x38b   : > { %v1012_v12 = vsel %vm947_vm15, %v1007_v11, 0 }
 0x38c   : > { %1021 = vmatpush.bf16.msrb.mxu1 %v1012_v12 }
 0x38f   : > { %1261 = vrot.lane.b32.xlu2 %v2699_v45, %s2515_s28 }
 0x392   : > { %v1076_v13 = vpop.permute.xlu0 %1075 }
 0x393   : > { %v1081_v15 = vsel %vm782_vm14, %v1076_v13, 0 }
 0x394   : > { %1090 = vmatpush.bf16.xpose.msra.mxu0 %v1081_v15 }
 0x397   : > { %v923_v16 = vpop.xlane.xlu1 %922 }
 0x398   : > { %2420 = vrcp.f32 %v923_v16 }
 0x39a   : > { %v1099_v17 = vpop.permute.xlu0 %1098 }
 0x39b   : > { %v1104_v18 = vsel %vm782_vm14, %v1099_v17, 0 }
 0x39c   : > { %1113 = vmatpush.bf16.xpose.msra.mxu1 %v1104_v18 }
 0x39e   : > { %v2421_v21 = vpop.eup %2420 }
 0x39f   : > { %v935_v22 = vmul.f32 %v2421_v21, %v2413_v49 }
 0x3a1   : > { %v920_v23 = vpop.xlane.xlu2 %919  ;;  %v939_v24 = vpack.c.bf16 %v935_v22, %v935_v22 }
 0x3a2   : > { %2422 = vrcp.f32 %v920_v23  ;;  %v1074_v50 = vpop.permute.xlu0 %1073 }
 0x3a3   : > { %2260 = vmatmul.msk.bf16.vlgmr.msrb.gmra.mxu3 %vm782_vm14, %v939_v24 }
 0x3a8   : > { %v2423_v26 = vpop.eup %2422 }
 0x3a9   : > { %v934_v27 = vmul.f32 %v2423_v26, %v2415_v54  ;;  %v1028_v34 = vpop.permute.xlu2 %1027 }
 0x3ab   : > { %v938_v28 = vpack.c.bf16 %v934_v27, %v934_v27 }
 0x3ad   : > { %2259 = vmatmul.msk.bf16.vlgmr.msrb.gmra.mxu2 %vm782_vm14, %v938_v28 }
 0x3af   : > { %v1030_v29 = vpop.permute.xlu1 %1029 }
 0x3b0   : > { %v1035_v33 = vsel %vm782_vm14, %v1030_v29, 0 }
 0x3b1   : > { %1044 = vmatpush.bf16.xpose.msra.mxu2 %v1035_v33 }
 0x3b3   : > { %2264 = vmatmul.msk.bf16.vlgmr.msra.gmra.mxu3 %vm782_vm14, %v1051_v8 }
 0x3bd   : > { %2263 = vmatmul.msk.bf16.vlgmr.msra.gmra.mxu2 %vm782_vm14, %v1028_v34 }
 0x3da   : > { %v926_v35 = vpop.xlane.xlu1 %925 }
 0x3db   : > { %2424 = vrcp.f32 %v926_v35 }
 0x3e1   : > { %v2425_v36 = vpop.eup %2424 }
 0x3e2   : > { %v936_v37 = vmul.f32 %v2425_v36, %v2417_v1  ;;  %v929_v39 = vpop.xlane.xlu2 %928 }
 0x3e3   : > { %2426 = vrcp.f32 %v929_v39 }
 0x3e4   : > { %v940_v40 = vpack.c.bf16 %v936_v37, %v936_v37 }
 0x3e6   : > { %2261 = vmatmul.msk.bf16.vlgmr.msrb.gmra.mxu0 %vm782_vm14, %v940_v40 }
 0x3e9   : > { %v2427_v41 = vpop.eup %2426 }
 0x3ea   : > { %v937_v42 = vmul.f32 %v2427_v41, %v2419_v3  ;;  %v1176_v43 = vpop.permute.xlu2 %1175 }
 0x3eb   : > { %v1181_v46 = vsel %vm947_vm15, %v1176_v43, 0 }
 0x3ec   : > { %v941_v47 = vpack.c.bf16 %v937_v42, %v937_v42  ;;  %1190 = vmatpush.bf16.msrb.mxu2 %v1181_v46 }
 0x3ee   : > { %2262 = vmatmul.msk.bf16.vlgmr.msrb.gmra.mxu1 %vm782_vm14, %v941_v47 }
 0x3f2   : > { %v1262_v48 = vpop.permute.xlu2 %1261  ;;  %v1097_v51 = vpop.permute.xlu1 %1096 }
 0x3f3   : > { %v1267_v49 = vsel %vm782_vm14, %v1262_v48, 0 }
 0x3f4   : > { %1276 = vmatpush.bf16.xpose.msra.mxu2 %v1267_v49 }
 0x3f6   : > { %2265 = vmatmul.msk.bf16.vlgmr.msra.gmra.mxu0 %vm782_vm14, %v1074_v50 }
 0x3fa   : > { %v1260_v49 = vpop.permute.xlu1 %1259 }
 0x3fe   : > { %2266 = vmatmul.msk.bf16.vlgmr.msra.gmra.mxu1 %vm782_vm14, %v1097_v51 }
 0x426   : > { %v2787_v53 = vpop.f32.mrf.mxu3 }
 0x42e   : > { %v983_v54 = vpop.f32.mrf.mxu3 }
 0x430   : > { %v2789_v56 = vpop.f32.mrf.mxu2 }
 0x436   : > { %v1069_v57 = vpop.f32.mrf.mxu3 }
 0x437   : > { %v1120_v15 = vmul.f32 0.35355338, %v1069_v57 }
 0x438   : > { %v962_v58 = vpop.f32.mrf.mxu2 }
 0x439   : > { %v1124_v18 = vadd.f32 %v1120_v15, %v2725_v4 }
 0x43b   : > { %v1130_v21 = vsel %vm782_vm14, %v1124_v18, -inf }
 0x43e   : > { %v1071_v59 = vpop.f32.mrf.mxu3 }
 0x440   : > { %v1046_v60 = vpop.f32.mrf.mxu2 }
 0x441   : > { %v1119_v61 = vmul.f32 0.35355338, %v1046_v60 }
 0x443   : > { %v1123_v62 = vadd.f32 %v1119_v61, %v2730_v14 }
 0x445   : > { %v1127_v63 = vsel %vm782_vm14, %v1123_v62, -inf }
 0x446   : > { %1128 = vmax.xlane.f32.xlu0 %v1127_v63 }
 0x448   : > { %v1048_v0 = vpop.f32.mrf.mxu2 }
 0x45a   : > { %1196 = vrot.lane.b32.xlu0 %v2703_v52, %s2513_s25 }
 0x462   : > { %1284 = vrot.lane.b32.xlu0 %v2703_v52, %s2515_s28 }
 0x463   : > { %v2797_v1 = vpop.f32.mrf.mxu0 }
 0x46b   : > { %v1004_v2 = vpop.f32.mrf.mxu0  ;;  %v2799_v3 = vpop.f32.mrf.mxu1 }
 0x473   : > { %v1025_v5 = vpop.f32.mrf.mxu1  ;;  %v1092_v6 = vpop.f32.mrf.mxu0 }
 0x474   : > { %v1121_v7 = vmul.f32 0.35355338, %v1092_v6 }
 0x476   : > { %v1125_v8 = vadd.f32 %v1121_v7, %v2733_v20 }
 0x478   : > { %v1133_v9 = vsel %vm782_vm14, %v1125_v8, -inf }
 0x479   : > { %1134 = vmax.xlane.f32.xlu2 %v1133_v9 }
 0x47b   : > { %v1094_v10 = vpop.f32.mrf.mxu0  ;;  %v1115_v11 = vpop.f32.mrf.mxu1 }
 0x47c   : > { %v1122_v12 = vmul.f32 0.35355338, %v1115_v11 }
 0x47e   : > { %v1126_v13 = vadd.f32 %v1122_v12, %v2741_v38 }
 0x480   : > { %v1136_v16 = vsel %vm782_vm14, %v1126_v13, -inf }
 0x481   : > { %1137 = vmax.xlane.f32.xlu2 %v1136_v16 }
 0x483   : > { %v1117_v17 = vpop.f32.mrf.mxu1 }
 0x489   : > { %1131 = vmax.xlane.f32.xlu2 %v1130_v21 }
 0x4b9   : > { %v1129_v22 = vpop.xlane.xlu0 %1128 }
 0x4ba   : > { %v1139_v23 = vsub.f32 %v1123_v62, %v1129_v22 }
 0x4bc   : > { %v1143_v24 = vmul.f32 1.442695, %v1139_v23 }
 0x4be   : > { %2428 = vpow2.f32 %v1143_v24 }
 0x4c4   : > { %v2429_v26 = vpop.eup %2428 }
 0x4c5   : > { %v1151_v27 = vsel %vm782_vm14, %v2429_v26, 0.0 }
 0x4c6   : > { %1152 = vadd.xlane.f32.xlu1 %v1151_v27 }
 0x4cc   : > { %v1197_v28 = vpop.permute.xlu0 %1196 }
 0x4cd   : > { %v1202_v29 = vsel %vm947_vm15, %v1197_v28, 0 }
 0x4ce   : > { %1211 = vmatpush.bf16.msrb.mxu3 %v1202_v29 }
 0x4d4   : > { %v1285_v33 = vpop.permute.xlu0 %1284 }
 0x4d5   : > { %v1290_v34 = vsel %vm782_vm14, %v1285_v33, 0 }
 0x4d6   : > { %1299 = vmatpush.bf16.xpose.msra.mxu3 %v1290_v34 }
 0x4df   : > { %1217 = vrot.lane.b32.xlu1 %v2697_v44, %s2513_s25 }
 0x4e7   : > { %1238 = vrot.lane.b32.xlu1 %v2706_v55, %s2513_s25 }
 0x4ec   : > { %v1135_v35 = vpop.xlane.xlu2 %1134 }
 0x4ed   : > { %v1141_v36 = vsub.f32 %v1125_v8, %v1135_v35 }
 0x4ef   : > { %v1147_v37 = vmul.f32 1.442695, %v1141_v36  ;;  %1307 = vrot.lane.b32.xlu1 %v2697_v44, %s2515_s28 }
 0x4f1   : > { %2430 = vpow2.f32 %v1147_v37 }
 0x4f4   : > { %v1138_v39 = vpop.xlane.xlu2 %1137 }
 0x4f5   : > { %v1142_v50 = vsub.f32 %v1126_v13, %v1138_v39 }
 0x4f7   : > { %v2431_v40 = vpop.eup %2430  ;;  %1305 = vrot.lane.b32.xlu1 %v2697_v44, %s2514_s27  ;;  %v1149_v54 = vmul.f32 1.442695, %v1142_v50 }
 0x4f8   : > { %v1157_v41 = vsel %vm782_vm14, %v2431_v40, 0.0 }
 0x4f9   : > { %1158 = vadd.xlane.f32.xlu0 %v1157_v41 }
 0x4fc   : > { %v1132_v42 = vpop.xlane.xlu2 %1131 }
 0x4fd   : > { %v1140_v43 = vsub.f32 %v1124_v18, %v1132_v42 }
 0x4ff   : > { %v1145_v46 = vmul.f32 1.442695, %v1140_v43 }
 0x501   : > { %2432 = vpow2.f32 %v1145_v46 }
 0x507   : > { %v2433_v47 = vpop.eup %2432 }
 0x508   : > { %v1154_v48 = vsel %vm782_vm14, %v2433_v47, 0.0 }
 0x509   : > { %1155 = vadd.xlane.f32.xlu2 %v1154_v48 }
 0x50d   : > { %1330 = vrot.lane.b32.xlu0 %v2706_v55, %s2515_s28 }
 0x521   : > { %1282 = vrot.lane.b32.xlu2 %v2703_v52, %s2514_s27 }
 0x539   : > { %v1153_v51 = vpop.xlane.xlu1 %1152 }
 0x53a   : > { %2434 = vrcp.f32 %v1153_v51 }
 0x53b   : > { %2436 = vpow2.f32 %v1149_v54 }
 0x540   : > { %v2435_v57 = vpop.eup %2434 }
 0x541   : > { %v1167_v58 = vmul.f32 %v2435_v57, %v2429_v26  ;;  %v2437_v60 = vpop.eup %2436 }
 0x542   : > { %v1160_v61 = vsel %vm782_vm14, %v2437_v60, 0.0 }
 0x543   : > { %v1171_v59 = vpack.c.bf16 %v1167_v58, %v1167_v58 }
 0x545   : > { %2267 = vmatmul.msk.bf16.vlgmr.msrb.gmra.mxu2 %vm782_vm14, %v1171_v59 }
 0x54a   : > { %1161 = vadd.xlane.f32.xlu2 %v1160_v61 }
 0x551   : > { %v1218_v62 = vpop.permute.xlu1 %1217 }
 0x552   : > { %v1223_v63 = vsel %vm947_vm15, %v1218_v62, 0 }
 0x553   : > { %1232 = vmatpush.bf16.msrb.mxu0 %v1223_v63 }
 0x555   : > { %2271 = vmatmul.msk.bf16.vlgmr.msra.gmra.mxu2 %vm782_vm14, %v1260_v49 }
 0x559   : > { %v1239_v0 = vpop.permute.xlu1 %1238 }
 0x55a   : > { %v1244_v2 = vsel %vm947_vm15, %v1239_v0, 0 }
 0x55b   : > { %1253 = vmatpush.bf16.msrb.mxu1 %v1244_v2 }
 0x561   : > { %v1308_v5 = vpop.permute.xlu1 %1307 }
 0x562   : > { %v1313_v6 = vsel %vm782_vm14, %v1308_v5, 0  ;;  %1328 = vrot.lane.b32.xlu2 %v2706_v55, %s2514_s27 }
 0x563   : > { %1322 = vmatpush.bf16.xpose.msra.mxu0 %v1313_v6 }
 0x569   : > { %v1306_v18 = vpop.permute.xlu1 %1305 }
 0x56c   : > { %v1159_v7 = vpop.xlane.xlu0 %1158 }
 0x56d   : > { %2438 = vrcp.f32 %v1159_v7 }
 0x573   : > { %v2439_v8 = vpop.eup %2438 }
 0x574   : > { %v1169_v9 = vmul.f32 %v2439_v8, %v2431_v40 }
 0x576   : > { %v1173_v10 = vpack.c.bf16 %v1169_v9, %v1169_v9 }
 0x578   : > { %2269 = vmatmul.msk.bf16.vlgmr.msrb.gmra.mxu0 %vm782_vm14, %v1173_v10 }
 0x57c   : > { %v1156_v11 = vpop.xlane.xlu2 %1155 }
 0x57d   : > { %2440 = vrcp.f32 %v1156_v11 }
 0x57f   : > { %v1331_v12 = vpop.permute.xlu0 %1330 }
 0x580   : > { %v1336_v13 = vsel %vm782_vm14, %v1331_v12, 0 }
 0x581   : > { %1345 = vmatpush.bf16.xpose.msra.mxu1 %v1336_v13 }
 0x583   : > { %v2441_v15 = vpop.eup %2440 }
 0x584   : > { %v1168_v16 = vmul.f32 %v2441_v15, %v2433_v47  ;;  %v1283_v21 = vpop.permute.xlu2 %1282 }
 0x586   : > { %v1172_v17 = vpack.c.bf16 %v1168_v16, %v1168_v16 }
 0x588   : > { %2268 = vmatmul.msk.bf16.vlgmr.msrb.gmra.mxu3 %vm782_vm14, %v1172_v17  ;;  %2273 = vmatmul.msk.bf16.vlgmr.msra.gmra.mxu0 %vm782_vm14, %v1306_v18 }
 0x598   : > { %2272 = vmatmul.msk.bf16.vlgmr.msra.gmra.mxu3 %vm782_vm14, %v1283_v21 }
 0x5bd   : > { %v1162_v22 = vpop.xlane.xlu2 %1161 }
 0x5be   : > { %2442 = vrcp.f32 %v1162_v22 }
 0x5c4   : > { %v2443_v23 = vpop.eup %2442 }
 0x5c5   : > { %v1170_v24 = vmul.f32 %v2443_v23, %v2437_v60  ;;  %v1329_v29 = vpop.permute.xlu2 %1328 }
 0x5c7   : > { %v1174_v26 = vpack.c.bf16 %v1170_v24, %v1170_v24 }
 0x5c8   : > { %v2837_v27 = vpop.f32.mrf.mxu2 }
 0x5c9   : > { %2270 = vmatmul.msk.bf16.vlgmr.msrb.gmra.mxu1 %vm782_vm14, %v1174_v26 }
 0x5d0   : > { %v1194_v28 = vpop.f32.mrf.mxu2 }
 0x5d8   : > { %v1278_v33 = vpop.f32.mrf.mxu2 }
 0x5d9   : > { %v1351_v34 = vmul.f32 0.35355338, %v1278_v33  ;;  %2274 = vmatmul.msk.bf16.vlgmr.msra.gmra.mxu1 %vm782_vm14, %v1329_v29 }
 0x5db   : > { %v1355_v35 = vadd.f32 %v1351_v34, %v2730_v14 }
 0x5dd   : > { %v1359_v36 = vsel %vm782_vm14, %v1355_v35, -inf }
 0x5de   : > { %1360 = vmax.xlane.f32.xlu1 %v1359_v36 }
 0x5e0   : > { %v1280_v37 = vpop.f32.mrf.mxu2 }
 0x5f5   : > { %v2843_v39 = vpop.f32.mrf.mxu0 }
 0x5fd   : > { %v1236_v40 = vpop.f32.mrf.mxu0 }
 0x605   : > { %v1324_v41 = vpop.f32.mrf.mxu0 }
 0x606   : > { %v1353_v42 = vmul.f32 0.35355338, %v1324_v41 }
 0x608   : > { %v1357_v43 = vadd.f32 %v1353_v42, %v2733_v20 }
 0x60a   : > { %v1365_v46 = vsel %vm782_vm14, %v1357_v43, -inf }
 0x60b   : > { %1366 = vmax.xlane.f32.xlu2 %v1365_v46  ;;  %v2847_v47 = vpop.f32.mrf.mxu3 }
 0x60c   : > { %v2362_v48 = vpack.i.bf16 %v2847_v47, %v2837_v27 }
 0x60d   : > { %v1326_v49 = vpop.f32.mrf.mxu0 }
 0x613   : > { %v1215_v50 = vpop.f32.mrf.mxu3 }
 0x61b   : > { %v1301_v51 = vpop.f32.mrf.mxu3 }
 0x61c   : > { %v1352_v54 = vmul.f32 0.35355338, %v1301_v51 }
 0x61e   : > { %v1356_v57 = vadd.f32 %v1352_v54, %v2725_v4 }
 0x620   : > { %v1362_v58 = vsel %vm782_vm14, %v1356_v57, -inf }
 0x621   : > { %1363 = vmax.xlane.f32.xlu0 %v1362_v58 }
 0x623   : > { %1428 = vrot.lane.b32.xlu2 %v2703_v52, %s2516_s29  ;;  %v1303_v59 = vpop.f32.mrf.mxu3 }
 0x635   : > { %1493 = vrot.lane.b32.xlu0 %v2699_v45, %s2517_s0 }
 0x63d   : > { %1516 = vrot.lane.b32.xlu0 %v2703_v52, %s2517_s0 }
 0x645   : > { %1491 = vrot.lane.b32.xlu0 %v2699_v45, %s2518_s30 }
 0x646   : > { %v2861_v60 = vpop.f32.mrf.mxu1 }
 0x64d   : > { %1514 = vrot.lane.b32.xlu0 %v2703_v52, %s2518_s30 }
 0x64e   : > { %v1257_v61 = vpop.f32.mrf.mxu1 }
 0x651   : > { %v1361_v62 = vpop.xlane.xlu1 %1360 }
 0x652   : > { %v1371_v63 = vsub.f32 %v1355_v35, %v1361_v62 }
 0x654   : > { %v1375_v0 = vmul.f32 1.442695, %v1371_v63 }
 0x655   : > { %1449 = vrot.lane.b32.xlu0 %v2697_v44, %s2516_s29 }
 0x656   : > { %v1347_v2 = vpop.f32.mrf.mxu1  ;;  %2444 = vpow2.f32 %v1375_v0 }
 0x657   : > { %v1354_v5 = vmul.f32 0.35355338, %v1347_v2 }
 0x659   : > { %v1358_v6 = vadd.f32 %v1354_v5, %v2741_v38 }
 0x65b   : > { %v1368_v7 = vsel %vm782_vm14, %v1358_v6, -inf }
 0x65c   : > { %1369 = vmax.xlane.f32.xlu1 %v1368_v7  ;;  %v2445_v9 = vpop.eup %2444 }
 0x65d   : > { %v1383_v10 = vsel %vm782_vm14, %v2445_v9, 0.0 }
 0x65e   : > { %v1349_v8 = vpop.f32.mrf.mxu1 }
 0x664   : > { %1384 = vadd.xlane.f32.xlu1 %v1383_v10 }
 0x67d   : > { %1407 = vrot.lane.b32.xlu1 %v2699_v45, %s2516_s29 }
 0x67e   : > { %v1367_v11 = vpop.xlane.xlu2 %1366 }
 0x67f   : > { %v1373_v12 = vsub.f32 %v1357_v43, %v1367_v11 }
 0x681   : > { %v1379_v13 = vmul.f32 1.442695, %v1373_v12 }
 0x683   : > { %2446 = vpow2.f32 %v1379_v13 }
 0x686   : > { %v1429_v15 = vpop.permute.xlu2 %1428 }
 0x687   : > { %v1434_v16 = vsel %vm947_vm15, %v1429_v15, 0 }
 0x688   : > { %1443 = vmatpush.bf16.msrb.mxu3 %v1434_v16 }
 0x689   : > { %v2447_v17 = vpop.eup %2446 }
 0x68a   : > { %v1389_v18 = vsel %vm782_vm14, %v2447_v17, 0.0 }
 0x68b   : > { %1390 = vadd.xlane.f32.xlu2 %v1389_v18 }
 0x694   : > { %v1364_v21 = vpop.xlane.xlu0 %1363 }
 0x695   : > { %v1372_v22 = vsub.f32 %v1356_v57, %v1364_v21 }
 0x697   : > { %v1377_v23 = vmul.f32 1.442695, %v1372_v22 }
 0x699   : > { %2448 = vpow2.f32 %v1377_v23 }
 0x69f   : > { %v2449_v24 = vpop.eup %2448 }
 0x6a0   : > { %v1386_v26 = vsel %vm782_vm14, %v2449_v24, 0.0 }
 0x6a1   : > { %1387 = vadd.xlane.f32.xlu0 %v1386_v26 }
 0x6a3   : > { %1562 = vrot.lane.b32.xlu2 %v2706_v55, %s2517_s0 }
 0x6a7   : > { %v1494_v28 = vpop.permute.xlu0 %1493 }
 0x6a8   : > { %v1499_v58 = vsel %vm782_vm14, %v1494_v28, 0 }
 0x6af   : > { %v1517_v29 = vpop.permute.xlu0 %1516 }
 0x6b0   : > { %v1522_v33 = vsel %vm782_vm14, %v1517_v29, 0 }
 0x6b1   : > { %1531 = vmatpush.bf16.xpose.msra.mxu3 %v1522_v33 }
 0x6b5   : > { %1470 = vrot.lane.b32.xlu0 %v2706_v55, %s2516_s29  ;;  %s3090_s29 = scalar_lea.vmem %s3123_s17, %s3129_s26 }
 0x6b7   : > { %v1492_v34 = vpop.permute.xlu0 %1491 }
 0x6bd   : > { %1539 = vrot.lane.b32.xlu0 %v2697_v44, %s2517_s0 }
 0x6bf   : > { %v1515_v35 = vpop.permute.xlu0 %1514 }
 0x6c5   : > { %1560 = vrot.lane.b32.xlu0 %v2706_v55, %s2518_s30 }
 0x6c7   : > { %v1450_v36 = vpop.permute.xlu0 %1449 }
 0x6c8   : > { %v1455_v37 = vsel %vm947_vm15, %v1450_v36, 0 }
 0x6c9   : > { %1464 = vmatpush.bf16.msrb.mxu0 %v1455_v37 }
 0x6cf   : > { %v1370_v40 = vpop.xlane.xlu1 %1369 }
 0x6d0   : > { %v1374_v41 = vsub.f32 %v1358_v6, %v1370_v40 }
 0x6d2   : > { %v1381_v42 = vmul.f32 1.442695, %v1374_v41 }
 0x6d4   : > { %2450 = vpow2.f32 %v1381_v42 }
 0x6d7   : > { %v1385_v49 = vpop.xlane.xlu1 %1384 }
 0x6d8   : > { %2452 = vrcp.f32 %v1385_v49 }
 0x6da   : > { %v2451_v43 = vpop.eup %2450 }
 0x6db   : > { %v1392_v46 = vsel %vm782_vm14, %v2451_v43, 0.0 }
 0x6dc   : > { %1393 = vadd.xlane.f32.xlu1 %v1392_v46 }
 0x6de   : > { %v2453_v50 = vpop.eup %2452 }
 0x6df   : > { %v1399_v51 = vmul.f32 %v2453_v50, %v2445_v9 }
 0x6e1   : > { %v1403_v59 = vpack.c.bf16 %v1399_v51, %v1399_v51 }
 0x6ef   : > { %v1408_v54 = vpop.permute.xlu1 %1407 }
 0x6f0   : > { %v1413_v57 = vsel %vm947_vm15, %v1408_v54, 0 }
 0x6f1   : > { %1422 = vmatpush.bf16.msrb.mxu2 %v1413_v57 }
 0x6f4   : > { %2275 = vmatmul.msk.bf16.vlgmr.msrb.gmra.mxu2 %vm782_vm14, %v1403_v59 }
 0x6f5   : > { %1508 = vmatpush.bf16.xpose.msra.mxu2 %v1499_v58  ;;  %1537 = vrot.lane.b32.xlu1 %v2697_v44, %s2518_s30 }
 0x6fe   : > { %v1391_v61 = vpop.xlane.xlu2 %1390 }
 0x6ff   : > { %2454 = vrcp.f32 %v1391_v61 }
 0x704   : > { %2279 = vmatmul.msk.bf16.vlgmr.msra.gmra.mxu2 %vm782_vm14, %v1492_v34 }
 0x705   : > { %v2455_v62 = vpop.eup %2454 }
 0x706   : > { %v1401_v63 = vmul.f32 %v2455_v62, %v2447_v17  ;;  %v1563_v8 = vpop.permute.xlu2 %1562 }
 0x707   : > { %v1568_v11 = vsel %vm782_vm14, %v1563_v8, 0 }
 0x708   : > { %v1405_v0 = vpack.c.bf16 %v1401_v63, %v1401_v63 }
 0x70a   : > { %2277 = vmatmul.msk.bf16.vlgmr.msrb.gmra.mxu0 %vm782_vm14, %v1405_v0 }
 0x714   : > { %v1388_v2 = vpop.xlane.xlu0 %1387 }
 0x715   : > { %2456 = vrcp.f32 %v1388_v2 }
 0x71b   : > { %v2457_v5 = vpop.eup %2456 }
 0x71c   : > { %v1400_v6 = vmul.f32 %v2457_v5, %v2449_v24 }
 0x71e   : > { %v1404_v7 = vpack.c.bf16 %v1400_v6, %v1400_v6 }
 0x720   : > { %2276 = vmatmul.msk.bf16.vlgmr.msrb.gmra.mxu3 %vm782_vm14, %v1404_v7 }
 0x727   : > { %v1471_v9 = vpop.permute.xlu0 %1470 }
 0x728   : > { %v1476_v10 = vsel %vm947_vm15, %v1471_v9, 0 }
 0x729   : > { %1485 = vmatpush.bf16.msrb.mxu1 %v1476_v10 }
 0x72d   : > { %1577 = vmatpush.bf16.xpose.msra.mxu1 %v1568_v11 }
 0x72f   : > { %v1540_v12 = vpop.permute.xlu0 %1539 }
 0x730   : > { %v1545_v13 = vsel %vm782_vm14, %v1540_v12, 0  ;;  %2280 = vmatmul.msk.bf16.vlgmr.msra.gmra.mxu3 %vm782_vm14, %v1515_v35 }
 0x731   : > { %1554 = vmatpush.bf16.xpose.msra.mxu0 %v1545_v13 }
 0x737   : > { %v1561_v22 = vpop.permute.xlu0 %1560 }
 0x74f   : > { %v1394_v15 = vpop.xlane.xlu1 %1393 }
 0x750   : > { %2458 = vrcp.f32 %v1394_v15 }
 0x756   : > { %v2459_v16 = vpop.eup %2458 }
 0x757   : > { %v1402_v17 = vmul.f32 %v2459_v16, %v2451_v43 }
 0x759   : > { %v1406_v18 = vpack.c.bf16 %v1402_v17, %v1402_v17 }
 0x75b   : > { %2278 = vmatmul.msk.bf16.vlgmr.msrb.gmra.mxu1 %vm782_vm14, %v1406_v18 }
 0x767   : > { %v1538_v21 = vpop.permute.xlu1 %1537 }
 0x768   : > { %2281 = vmatmul.msk.bf16.vlgmr.msra.gmra.mxu0 %vm782_vm14, %v1538_v21 }
 0x76b   : > { %2282 = vmatmul.msk.bf16.vlgmr.msra.gmra.mxu1 %vm782_vm14, %v1561_v22 }
 0x777   : > { %v1424_v23 = vpop.f32.mrf.mxu2 }
 0x77f   : > { %v1426_v24 = vpop.f32.mrf.mxu2 }
 0x787   : > { %v2901_v26 = vpop.f32.mrf.mxu0  ;;  %v1510_v28 = vpop.f32.mrf.mxu2 }
 0x788   : > { %v1583_v29 = vmul.f32 0.35355338, %v1510_v28 }
 0x78a   : > { %v1587_v33 = vadd.f32 %v1583_v29, %v2730_v14 }
 0x78c   : > { %v1591_v34 = vsel %vm782_vm14, %v1587_v33, -inf }
 0x78d   : > { %1592 = vmax.xlane.f32.xlu0 %v1591_v34 }
 0x78f   : > { %v1468_v35 = vpop.f32.mrf.mxu0  ;;  %v1512_v36 = vpop.f32.mrf.mxu2 }
 0x7a3   : > { %v1445_v37 = vpop.f32.mrf.mxu3 }
 0x7a4   : > { %v2367_v40 = vpack.i.bf16 %v1445_v37, %v1424_v23 }
 0x7ab   : > { %v1447_v41 = vpop.f32.mrf.mxu3 }
 0x7b3   : > { %v1533_v42 = vpop.f32.mrf.mxu3 }
 0x7b4   : > { %v1584_v43 = vmul.f32 0.35355338, %v1533_v42 }
 0x7b6   : > { %v1588_v46 = vadd.f32 %v1584_v43, %v2725_v4 }
 0x7b8   : > { %v1594_v49 = vsel %vm782_vm14, %v1588_v46, -inf }
 0x7b9   : > { %1595 = vmax.xlane.f32.xlu2 %v1594_v49 }
 0x7bb   : > { %v1535_v50 = vpop.f32.mrf.mxu3 }
 0x7d8   : > { %v2907_v51 = vpop.f32.mrf.mxu1 }
 0x7e0   : > { %v1489_v54 = vpop.f32.mrf.mxu1 }
 0x7e5   : > { %v1556_v14 = vpop.f32.mrf.mxu0 }
 0x7e6   : > { %v1585_v57 = vmul.f32 0.35355338, %v1556_v14 }
 0x7e8   : > { %v1579_v58 = vpop.f32.mrf.mxu1  ;;  %v1589_v59 = vadd.f32 %v1585_v57, %v2733_v20 }
 0x7e9   : > { %v1586_v61 = vmul.f32 0.35355338, %v1579_v58 }
 0x7ea   : > { %v1597_v62 = vsel %vm782_vm14, %v1589_v59, -inf }
 0x7eb   : > { %1598 = vmax.xlane.f32.xlu1 %v1597_v62  ;;  %v1590_v63 = vadd.f32 %v1586_v61, %v2741_v38 }
 0x7ed   : > { %v1558_v0 = vpop.f32.mrf.mxu0  ;;  %v1600_v4 = vsel %vm782_vm14, %v1590_v63, -inf }
 0x7ee   : > { %1601 = vmax.xlane.f32.xlu0 %v1600_v4 }
 0x7f0   : > { %v1581_v2 = vpop.f32.mrf.mxu1 }
 0x800   : > { %v1593_v20 = vpop.xlane.xlu0 %1592 }
 0x801   : > { %v1603_v5 = vsub.f32 %v1587_v33, %v1593_v20 }
 0x802   : > { %1660 = vrot.lane.b32.xlu0 %v2703_v52, %s2519_s18 }
 0x803   : > { %v1607_v38 = vmul.f32 1.442695, %v1603_v5 }
 0x804   : > { %1639 = vrot.lane.b32.xlu1 %v2699_v45, %s2519_s18  ;;  %v2377_v45 = vpack.i.bf16 %v2861_v60, %v2843_v39 }
 0x805   : > { %2460 = vpow2.f32 %v1607_v38  ;;  %v2382_v38 = vpack.i.bf16 %v2907_v51, %v2901_v26 }
 0x80b   : > { %v2461_v6 = vpop.eup %2460 }
 0x80c   : > { %2363 = vrot.lane.b32.xlu1 %v2362_v48, %s2520_s19  ;;  %v1615_v7 = vsel %vm782_vm14, %v2461_v6, 0.0 }
 0x82c   : > { %1616 = vadd.xlane.f32.xlu0 %v1615_v7  ;;  %v1596_v10 = vpop.xlane.xlu2 %1595  ;;  %v2329_v7 = vld [vmem:[%s3113_s7] sm:$0xff] }
 0x82d   : > { %v1604_v12 = vsub.f32 %v1588_v46, %v1596_v10 }
 0x82f   : > { %v1609_v13 = vmul.f32 1.442695, %v1604_v12 }
 0x840   : > { %1702 = vrot.lane.b32.xlu0 %v2706_v55, %s2519_s18 }
 0x848   : > { %2368 = vrot.lane.b32.xlu0 %v2367_v40, %s2521_s1 }
 0x850   : > { %2378 = vrot.lane.b32.xlu0 %v2377_v45, %s2520_s19 }
 0x85e   : > { %v1599_v52 = vpop.xlane.xlu1 %1598 }
 0x85f   : > { %v1605_v27 = vsub.f32 %v1589_v59, %v1599_v52 }
 0x861   : > { %v1611_v47 = vmul.f32 1.442695, %v1605_v27  ;;  %v1602_v48 = vpop.xlane.xlu0 %1601 }
 0x862   : > { %v1606_v8 = vsub.f32 %v1590_v63, %v1602_v48 }
 0x863   : > { %2462 = vpow2.f32 %v1611_v47 }
 0x864   : > { %v1613_v9 = vmul.f32 1.442695, %v1606_v8 }
 0x866   : > { %2464 = vpow2.f32 %v1613_v9 }
 0x867   : > { %2466 = vpow2.f32 %v1609_v13 }
 0x869   : > { %v2463_v11 = vpop.eup %2462 }
 0x86a   : > { %v1621_v55 = vsel %vm782_vm14, %v2463_v11, 0.0 }
 0x86b   : > { %1622 = vadd.xlane.f32.xlu2 %v1621_v55 }
 0x86c   : > { %v2465_v15 = vpop.eup %2464 }
 0x86d   : > { %v1624_v39 = vsel %vm782_vm14, %v2465_v15, 0.0  ;;  %v2467_v18 = vpop.eup %2466 }
 0x86e   : > { %v1618_v22 = vsel %vm782_vm14, %v2467_v18, 0.0 }
 0x873   : > { %1625 = vadd.xlane.f32.xlu2 %v1624_v39 }
 0x874   : > { %v1661_v60 = vpop.permute.xlu0 %1660 }
 0x875   : > { %v1666_v16 = vsel %vm947_vm15, %v1661_v60, 0 }
 0x876   : > { %v1640_v17 = vpop.permute.xlu1 %1639  ;;  %1675 = vmatpush.bf16.msrb.mxu3 %v1666_v16 }
 0x877   : > { %v1645_v21 = vsel %vm947_vm15, %v1640_v17, 0 }
 0x878   : > { %1654 = vmatpush.bf16.msrb.mxu2 %v1645_v21 }
 0x87b   : > { %1619 = vadd.xlane.f32.xlu2 %v1618_v22 }
 0x87e   : > { %v2364_v45 = vpop.permute.xlu1 %2363 }
 0x87f   : > { %v2366_v27 = vunpack.i.h.bf16 %v2364_v45  ;;  %v2365_v47 = vunpack.i.l.bf16 %v2364_v45 }
 0x881   : > { %v1772_v51 = vsel %vm782_vm14, %v2787_v53, %v2366_v27  ;;  %v1771_v9 = vsel %vm782_vm14, %v2789_v56, %v2365_v47 }
 0x893   : > { %1681 = vrot.lane.b32.xlu2 %v2697_v44, %s2519_s18 }
 0x89f   : > { %v1617_v23 = vpop.xlane.xlu0 %1616 }
 0x8a0   : > { %2468 = vrcp.f32 %v1617_v23 }
 0x8a6   : > { %v2469_v24 = vpop.eup %2468 }
 0x8a7   : > { %v1631_v28 = vmul.f32 %v2469_v24, %v2461_v6  ;;  %v2330_v6 = vld [vmem:[%s3113_s7 + $0x8] sm:$0xff] }
 0x8a8   : > { %1814 = vmatpush.bf16.msra.mxu2 %v2330_v6 }
 0x8a9   : > { %v1635_v29 = vpack.c.bf16 %v1631_v28, %v1631_v28 }
 0x8ab   : > { %2283 = vmatmul.msk.bf16.vlgmr.msrb.gmra.mxu2 %vm782_vm14, %v1635_v29 }
 0x8ac   : > { %1815 = vmatpush.bf16.msra.mxu2 %v2329_v7 }
 0x8b2   : > { %v1703_v33 = vpop.permute.xlu0 %1702 }
 0x8b3   : > { %v1708_v34 = vsel %vm947_vm15, %v1703_v33, 0 }
 0x8b4   : > { %1717 = vmatpush.bf16.msrb.mxu1 %v1708_v34 }
 0x8ba   : > { %v2369_v52 = vpop.permute.xlu0 %2368 }
 0x8bb   : > { %v2371_v48 = vunpack.i.h.bf16 %v2369_v52  ;;  %v2370_v8 = vunpack.i.l.bf16 %v2369_v52 }
 0x8bd   : > { %v1777_v12 = vsel %vm1775_vm1, %v1772_v51, %v2371_v48  ;;  %v1776_v55 = vsel %vm1775_vm1, %v1771_v9, %v2370_v8 }
 0x8c2   : > { %v2379_v60 = vpop.permute.xlu0 %2378 }
 0x8c3   : > { %v2381_v17 = vunpack.i.h.bf16 %v2379_v60  ;;  %v2380_v53 = vunpack.i.l.bf16 %v2379_v60 }
 0x8c5   : > { %v1774_v22 = vsel %vm782_vm14, %v2799_v3, %v2381_v17  ;;  %v1773_v23 = vsel %vm782_vm14, %v2797_v1, %v2380_v53  ;;  %v2395_v3 = vld [vmem:[%s3114_s8] ss:$0 sm:$0xff] }
 0x8de   : > { %v1623_v35 = vpop.xlane.xlu2 %1622 }
 0x8e6   : > { %v1626_v36 = vpop.xlane.xlu2 %1625 }
 0x8e7   : > { %2470 = vrcp.f32 %v1626_v36 }
 0x8e8   : > { %2472 = vrcp.f32 %v1623_v35 }
 0x8ed   : > { %v2471_v37 = vpop.eup %2470 }
 0x8ee   : > { %v1634_v40 = vmul.f32 %v2471_v37, %v2465_v15  ;;  %v1620_v41 = vpop.xlane.xlu2 %1619  ;;  %v2473_v42 = vpop.eup %2472 }
 0x8ef   : > { %2474 = vrcp.f32 %v1620_v41  ;;  %v1633_v46 = vmul.f32 %v2473_v42, %v2463_v11 }
 0x8f0   : > { %v1638_v44 = vpack.c.bf16 %v1634_v40, %v1634_v40 }
 0x8f1   : > { %v1637_v57 = vpack.c.bf16 %v1633_v46, %v1633_v46 }
 0x8f2   : > { %2286 = vmatmul.msk.bf16.vlgmr.msrb.gmra.mxu1 %vm782_vm14, %v1638_v44 }
 0x8f5   : > { %v2475_v43 = vpop.eup %2474 }
 0x8f6   : > { %v1632_v49 = vmul.f32 %v2475_v43, %v2467_v18  ;;  %v1682_v50 = vpop.permute.xlu2 %1681 }
 0x8f7   : > { %v1687_v54 = vsel %vm947_vm15, %v1682_v50, 0  ;;  %vm2040_vm15 = vcmask 523264  }
 0x8f8   : > { %v1636_v14 = vpack.c.bf16 %v1632_v49, %v1632_v49  ;;  %1696 = vmatpush.bf16.msrb.mxu0 %v1687_v54 }
 0x8fa   : > { %2284 = vmatmul.msk.bf16.vlgmr.msrb.gmra.mxu3 %vm782_vm14, %v1636_v14 }
 0x8fb   : > { %2285 = vmatmul.msk.bf16.vlgmr.msrb.gmra.mxu0 %vm782_vm14, %v1637_v57 }
 0x92e   : > { %v1656_v58 = vpop.f32.mrf.mxu2 }
 0x936   : > { %v1658_v59 = vpop.f32.mrf.mxu2 }
 0x96f   : > { %v1719_v61 = vpop.f32.mrf.mxu1 }
 0x977   : > { %v1721_v62 = vpop.f32.mrf.mxu1 }
 0x978   : > { %v1698_v63 = vpop.f32.mrf.mxu0 }
 0x979   : > { %v2387_v0 = vpack.i.bf16 %v1719_v61, %v1698_v63 }
 0x97b   : > { %2388 = vrot.lane.b32.xlu2 %v2387_v0, %s2522_s20 }
 0x97d   : > { %v1677_v4 = vpop.f32.mrf.mxu3 }
 0x97e   : > { %v2372_v2 = vpack.i.bf16 %v1677_v4, %v1656_v58 }
 0x980   : > { %v1700_v20 = vpop.f32.mrf.mxu0  ;;  %2373 = vrot.lane.b32.xlu1 %v2372_v2, %s2522_s20 }
 0x985   : > { %v1679_v5 = vpop.f32.mrf.mxu3 }
 0x988   : > { %2383 = vrot.lane.b32.xlu1 %v2382_v38, %s2521_s1 }
 0x9d5   : > { %v2389_v56 = vpop.permute.xlu2 %2388 }
 0x9d6   : > { %v2391_v29 = vunpack.i.h.bf16 %v2389_v56  ;;  %v2390_v33 = vunpack.i.l.bf16 %v2389_v56 }
 0x9f2   : > { %v2374_v26 = vpop.permute.xlu1 %2373 }
 0x9f3   : > { %v2376_v10 = vunpack.i.h.bf16 %v2374_v26  ;;  %v2375_v11 = vunpack.i.l.bf16 %v2374_v26  ;;  %v2332_v26 = vld [vmem:[%s3117_s11 + $0x8] sm:$0xff] }
 0x9f4   : > { %1962 = vmatpush.bf16.msra.mxu3 %v2332_v26 }
 0x9f5   : > { %v1781_v13 = vsel %vm1780_vm2, %v1776_v55, %v2375_v11  ;;  %v1782_v15 = vsel %vm1780_vm2, %v1777_v12, %v2376_v10  ;;  %v2331_v10 = vld [vmem:[%s3117_s11] sm:$0xff] }
 0x9f6   : > { %v1785_v39 = vpack.c.bf16 %v1782_v15, %v1781_v13 }
 0x9f8   : > { %2295 = vmatmul.msk.bf16.vlgmr.msra.gmra.mxu2 %vm581_vm0, %v1785_v39  ;;  %1963 = vmatpush.bf16.msra.mxu3 %v2331_v10 }
 0x9fa   : > { %v2384_v16 = vpop.permute.xlu1 %2383 }
 0x9fb   : > { %v2386_v18 = vunpack.i.h.bf16 %v2384_v16  ;;  %v2385_v21 = vunpack.i.l.bf16 %v2384_v16 }
 0x9fd   : > { %v1778_v24 = vsel %vm1775_vm1, %v1773_v23, %v2385_v21  ;;  %v1779_v28 = vsel %vm1775_vm1, %v1774_v22, %v2386_v18 }
 0x9fe   : > { %v1783_v34 = vsel %vm1780_vm2, %v1778_v24, %v2390_v33  ;;  %v1784_v35 = vsel %vm1780_vm2, %v1779_v28, %v2391_v29 }
 0x9ff   : > { %v1786_v36 = vpack.c.bf16 %v1784_v35, %v1783_v34 }
 0xa08   : > { %2296 = vmatmul.msk.bf16.gmra.mxu2 %vm581_vm0, %v1786_v36 }
 0xa7b   : > { %v1817_v37 = vpop.f32.mrf.mxu2 }
 0xa7c   : > { %v1818_v40 = vadd.f32 %v2395_v3, %v1817_v37 }
 0xa7e   : > { %v1827_v1 = vadd.f32 %v1818_v40, %v2684_v31 }
 0xa80   : > { %v1831_v41 = vsel %vm581_vm0, %v1827_v1, 0.0 }
 0xa81   : > { %1832 = vadd.xlane.f32.xlu0 %v1831_v41 }
 0xa83   : > { %v1819_v44 = vpop.f32.mrf.mxu2 }
 0xa84   : > { %v1820_v42 = vadd.f32 %v2395_v3, %v1819_v44 }
 0xa86   : > { %v1828_v43 = vadd.f32 %v1820_v42, %v2686_v32 }
 0xa88   : > { %v1834_v46 = vsel %vm581_vm0, %v1828_v43, 0.0 }
 0xa89   : > { %1835 = vadd.xlane.f32.xlu1 %v1834_v46 }
 0xa8b   : > { %v1822_v49 = vpop.f32.mrf.mxu2 }
 0xa8c   : > { %v1823_v50 = vadd.f32 %v2395_v3, %v1822_v49 }
 0xa8e   : > { %v1829_v54 = vadd.f32 %v1823_v50, %v2680_v30 }
 0xa90   : > { %v1837_v14 = vsel %vm581_vm0, %v1829_v54, 0.0 }
 0xa91   : > { %1838 = vadd.xlane.f32.xlu2 %v1837_v14 }
 0xa93   : > { %v1824_v57 = vpop.f32.mrf.mxu2 }
 0xa94   : > { %v1825_v58 = vadd.f32 %v2395_v3, %v1824_v57  ;;  %v2396_v3 = vld [vmem:[%s3115_s9] ss:$0 sm:$0xff] }
 0xa96   : > { %v1830_v31 = vadd.f32 %v1825_v58, %v2682_v25 }
 0xa98   : > { %v1840_v59 = vsel %vm581_vm0, %v1830_v31, 0.0 }
 0xa99   : > { %1841 = vadd.xlane.f32.xlu0 %v1840_v59 }
 0xaf4   : > { %v1833_v61 = vpop.xlane.xlu0 %1832 }
 0xaf5   : > { %v1843_v32 = vmul.f32 %v1833_v61, %v2634_v19 }
 0xaf7   : > { %v1847_v62 = vsub.f32 %v1827_v1, %v1843_v32 }
 0xaf9   : > { %v1851_v63 = vmul.f32 %v1847_v62, %v1847_v62 }
 0xafb   : > { %v1855_v0 = vsel %vm581_vm0, %v1851_v63, 0.0 }
 0xafc   : > { %v1836_v4 = vpop.xlane.xlu1 %1835  ;;  %1856 = vadd.xlane.f32.xlu1 %v1855_v0 }
 0xafd   : > { %v1844_v30 = vmul.f32 %v1836_v4, %v2634_v19 }
 0xaff   : > { %v2980_v2 = vsub.f32 %v1828_v43, %v1844_v30  ;;  %v2397_v43 = vld [vmem:[%s3116_s10] ss:$0 sm:$0xff] }
 0xb01   : > { %v1852_v20 = vmul.f32 %v2980_v2, %v2980_v2 }
 0xb03   : > { %v1858_v25 = vsel %vm581_vm0, %v1852_v20, 0.0 }
 0xb04   : > { %1859 = vadd.xlane.f32.xlu2 %v1858_v25  ;;  %v1839_v5 = vpop.xlane.xlu2 %1838 }
 0xb05   : > { %v1845_v38 = vmul.f32 %v1839_v5, %v2634_v19 }
 0xb07   : > { %v2986_v6 = vsub.f32 %v1829_v54, %v1845_v38 }
 0xb09   : > { %v1853_v7 = vmul.f32 %v2986_v6, %v2986_v6 }
 0xb0b   : > { %v1861_v45 = vsel %vm581_vm0, %v1853_v7, 0.0 }
 0xb0c   : > { %v1842_v52 = vpop.xlane.xlu0 %1841  ;;  %1862 = vadd.xlane.f32.xlu0 %v1861_v45 }
 0xb0d   : > { %v1846_v27 = vmul.f32 %v1842_v52, %v2634_v19 }
 0xb0f   : > { %v2992_v47 = vsub.f32 %v1830_v31, %v1846_v27  ;;  %v2335_v27 = vld [vmem:[%s3119_s13 + $0x10] sm:$0xff] }
 0xb11   : > { %v1854_v48 = vmul.f32 %v2992_v47, %v2992_v47 }
 0xb13   : > { %v1864_v8 = vsel %vm581_vm0, %v1854_v48, 0.0  ;;  %v2398_v48 = vld [vmem:[%s3118_s12] ss:$0 sm:$0xff] }
 0xb14   : > { %1865 = vadd.xlane.f32.xlu1 %v1864_v8  ;;  %v2333_v8 = vld [vmem:[%s3119_s13] sm:$0xff] }
 0xb6f   : > { %v1857_v51 = vpop.xlane.xlu1 %1856 }
 0xb70   : > { %v1867_v9 = vmul.f32 %v1857_v51, %v2634_v19 }
 0xb72   : > { %v1871_v11 = vadd.f32 1e-05, %v1867_v9 }
 0xb74   : > { %2476 = vrsqrt.f32 %v1871_v11  ;;  %vm1881_vm4 = vweird.f32 %v1871_v11 }
 0xb77   : > { %v1860_v12 = vpop.xlane.xlu2 %1859 }
 0xb78   : > { %v1868_v55 = vmul.f32 %v1860_v12, %v2634_v19 }
 0xb7a   : > { %v2477_v13 = vpop.eup %2476  ;;  %v1872_v15 = vadd.f32 1e-05, %v1868_v55 }
 0xb7b   : > { %v1876_v39 = vmul.f32 %v2477_v13, %v1871_v11  ;;  %vm1882_vm3 = vweird.f32 %v2477_v13 }
 0xb7c   : > { %2478 = vrsqrt.f32 %v1872_v15  ;;  %vm1883_vm5 = vmor %vm1881_vm4, %vm1882_vm3  ;;  %vm1891_vm7 = vweird.f32 %v1872_v15  ;;  %vm2172_vm3 = vcmask 253952  }
 0xb7d   : > { %v1877_v60 = vmul.f32 %v2477_v13, %v1876_v39 }
 0xb7f   : > { %v1878_v16 = vmul.f32 0.5, %v1877_v60  ;;  %v1863_v17 = vpop.xlane.xlu0 %1862 }
 0xb80   : > { %v1869_v53 = vmul.f32 %v1863_v17, %v2634_v19 }
 0xb81   : > { %v1879_v18 = vsub.f32 1.5, %v1878_v16 }
 0xb82   : > { %v2479_v21 = vpop.eup %2478  ;;  %v1873_v56 = vadd.f32 1e-05, %v1869_v53 }
 0xb83   : > { %v1880_v22 = vmul.f32 %v2477_v13, %v1879_v18  ;;  %v1886_v23 = vmul.f32 %v2479_v21, %v1872_v15  ;;  %vm1892_vm6 = vweird.f32 %v2479_v21 }
 0xb84   : > { %2480 = vrsqrt.f32 %v1873_v56  ;;  %vm1893_vm8 = vmor %vm1891_vm7, %vm1892_vm6  ;;  %vm1901_vm10 = vweird.f32 %v1873_v56 }
 0xb85   : > { %v1887_v24 = vmul.f32 %v2479_v21, %v1886_v23  ;;  %v1884_v28 = vsel %vm1883_vm5, %v2477_v13, %v1880_v22 }
 0xb86   : > { %v1915_v37 = vmul.f32 %v1884_v28, %v1847_v62 }
 0xb87   : > { %v1888_v29 = vmul.f32 0.5, %v1887_v24  ;;  %v1866_v33 = vpop.xlane.xlu1 %1865 }
 0xb88   : > { %v1870_v34 = vmul.f32 %v1866_v33, %v2634_v19  ;;  %v1922_v46 = vmul.f32 %v2396_v3, %v1915_v37 }
 0xb89   : > { %v1889_v35 = vsub.f32 1.5, %v1888_v29 }
 0xb8a   : > { %v2481_v36 = vpop.eup %2480  ;;  %v1874_v40 = vadd.f32 1e-05, %v1870_v34  ;;  %v3014_v58 = vadd.f32 %v2397_v43, %v1922_v46 }
 0xb8b   : > { %v1890_v1 = vmul.f32 %v2479_v21, %v1889_v35  ;;  %v1896_v41 = vmul.f32 %v2481_v36, %v1873_v56  ;;  %vm1902_vm9 = vweird.f32 %v2481_v36 }
 0xb8c   : > { %2482 = vrsqrt.f32 %v1874_v40  ;;  %vm1903_vm11 = vmor %vm1901_vm10, %vm1902_vm9  ;;  %vm1911_vm13 = vweird.f32 %v1874_v40 }
 0xb8d   : > { %v1894_v44 = vsel %vm1893_vm8, %v2479_v21, %v1890_v1  ;;  %v1897_v42 = vmul.f32 %v2481_v36, %v1896_v41 }
 0xb8e   : > { %v1916_v49 = vmul.f32 %v1894_v44, %v2980_v2 }
 0xb8f   : > { %v1898_v50 = vmul.f32 0.5, %v1897_v42 }
 0xb90   : > { %v1923_v54 = vmul.f32 %v2396_v3, %v1916_v49 }
 0xb91   : > { %v1899_v14 = vsub.f32 1.5, %v1898_v50 }
 0xb92   : > { %v2483_v57 = vpop.eup %2482  ;;  %v3016_v31 = vadd.f32 %v2397_v43, %v1923_v54 }
 0xb93   : > { %v1900_v59 = vmul.f32 %v2481_v36, %v1899_v14  ;;  %v1906_v61 = vmul.f32 %v2483_v57, %v1874_v40  ;;  %vm1912_vm12 = vweird.f32 %v2483_v57 }
 0xb94   : > { %v1933_v32 = vpack.c.bf16 %v3016_v31, %v3014_v58  ;;  %vm1913_vm14 = vmor %vm1911_vm13, %vm1912_vm12 }
 0xb95   : > { %v1907_v62 = vmul.f32 %v2483_v57, %v1906_v61  ;;  %v1904_v63 = vsel %vm1903_vm11, %v2481_v36, %v1900_v59 }
 0xb96   : > { %2305 = vmatmul.msk.bf16.vlgmr.msra.gmra.mxu3 %vm581_vm0, %v1933_v32  ;;  %v1917_v30 = vmul.f32 %v1904_v63, %v2986_v6  ;;  %v2336_v6 = vld [vmem:[%s3119_s13 + $0x18] sm:$0xff] }
 0xb97   : > { %v1908_v0 = vmul.f32 0.5, %v1907_v62  ;;  %2051 = vmatpush.bf16.msra.mxu0 %v2336_v6 }
 0xb98   : > { %v1924_v5 = vmul.f32 %v2396_v3, %v1917_v30 }
 0xb99   : > { %v1909_v4 = vsub.f32 1.5, %v1908_v0 }
 0xb9a   : > { %v3023_v7 = vadd.f32 %v2397_v43, %v1924_v5 }
 0xb9b   : > { %v1910_v2 = vmul.f32 %v2483_v57, %v1909_v4  ;;  %2052 = vmatpush.bf16.msra.mxu0 %v2335_v27  ;;  %v2399_v4 = vld [vmem:[%s3120_s14] ss:$0 sm:$0xff] }
 0xb9d   : > { %v1914_v20 = vsel %vm1913_vm14, %v2483_v57, %v1910_v2 }
 0xb9e   : > { %v1918_v25 = vmul.f32 %v1914_v20, %v2992_v47  ;;  %v2334_v47 = vld [vmem:[%s3119_s13 + $0x8] sm:$0xff] }
 0xb9f   : > { %2053 = vmatpush.bf16.msra.mxu0 %v2334_v47 }
 0xba0   : > { %v1925_v38 = vmul.f32 %v2396_v3, %v1918_v25 }
 0xba2   : > { %v3025_v45 = vadd.f32 %v2397_v43, %v1925_v38 }
 0xba3   : > { %2054 = vmatpush.bf16.msra.mxu0 %v2333_v8 }
 0xba4   : > { %v1934_v52 = vpack.c.bf16 %v3025_v45, %v3023_v7 }
 0xba6   : > { %2306 = vmatmul.msk.bf16.gmra.mxu3 %vm581_vm0, %v1934_v52 }
 0xc19   : > { %v1965_v26 = vpop.f32.mrf.mxu3 }
 0xc1a   : > { %v1966_v51 = vadd.f32 %v2398_v48, %v1965_v26 }
 0xc1c   : > { %v1975_v9 = vmul.f32 %v1966_v51, %v1966_v51 }
 0xc1e   : > { %v1979_v10 = vmul.f32 %v1975_v9, %v1966_v51 }
 0xc20   : > { %v1983_v11 = vmul.f32 0.044715, %v1979_v10 }
 0xc21   : > { %v1967_v12 = vpop.f32.mrf.mxu3 }
 0xc22   : > { %v1987_v55 = vadd.f32 %v1983_v11, %v1966_v51  ;;  %v1968_v13 = vadd.f32 %v2398_v48, %v1967_v12 }
 0xc24   : > { %v1991_v15 = vmul.f32 0.7978846, %v1987_v55  ;;  %v1976_v39 = vmul.f32 %v1968_v13, %v1968_v13 }
 0xc26   : > { %v1980_v60 = vmul.f32 %v1976_v39, %v1968_v13  ;;  %2484 = vtanh.f32 %v1991_v15 }
 0xc28   : > { %v1984_v16 = vmul.f32 0.044715, %v1980_v60 }
 0xc29   : > { %v1970_v17 = vpop.f32.mrf.mxu3 }
 0xc2a   : > { %v1988_v53 = vadd.f32 %v1984_v16, %v1968_v13  ;;  %v1971_v18 = vadd.f32 %v2398_v48, %v1970_v17 }
 0xc2c   : > { %v1992_v21 = vmul.f32 0.7978846, %v1988_v53  ;;  %v1977_v56 = vmul.f32 %v1971_v18, %v1971_v18  ;;  %v2485_v22 = vpop.eup %2484 }
 0xc2d   : > { %v1999_v28 = vadd.f32 1.0, %v2485_v22 }
 0xc2e   : > { %2486 = vtanh.f32 %v1992_v21  ;;  %v1981_v23 = vmul.f32 %v1977_v56, %v1971_v18 }
 0xc2f   : > { %v2003_v37 = vmul.f32 0.5, %v1999_v28 }
 0xc30   : > { %v1985_v24 = vmul.f32 0.044715, %v1981_v23 }
 0xc31   : > { %v1972_v29 = vpop.f32.mrf.mxu3  ;;  %v2007_v42 = vmul.f32 %v2003_v37, %v1966_v51 }
 0xc32   : > { %v1989_v33 = vadd.f32 %v1985_v24, %v1971_v18  ;;  %v1973_v34 = vadd.f32 %v2398_v48, %v1972_v29 }
 0xc34   : > { %v2487_v35 = vpop.eup %2486  ;;  %v1993_v36 = vmul.f32 0.7978846, %v1989_v33  ;;  %v1978_v3 = vmul.f32 %v1973_v34, %v1973_v34 }
 0xc35   : > { %v2000_v40 = vadd.f32 1.0, %v2487_v35 }
 0xc36   : > { %v1982_v1 = vmul.f32 %v1978_v3, %v1973_v34  ;;  %2488 = vtanh.f32 %v1993_v36 }
 0xc37   : > { %v2004_v41 = vmul.f32 0.5, %v2000_v40 }
 0xc38   : > { %v1986_v44 = vmul.f32 0.044715, %v1982_v1 }
 0xc39   : > { %v2008_v43 = vmul.f32 %v2004_v41, %v1968_v13 }
 0xc3a   : > { %v1990_v46 = vadd.f32 %v1986_v44, %v1973_v34 }
 0xc3b   : > { %v2011_v49 = vpack.c.bf16 %v2008_v43, %v2007_v42 }
 0xc3c   : > { %v1994_v50 = vmul.f32 0.7978846, %v1990_v46  ;;  %v2489_v54 = vpop.eup %2488 }
 0xc3d   : > { %2323 = vmatmul.msk.bf16.vlgmr.msra.gmra.mxu0 %vm2040_vm15, %v2011_v49  ;;  %v2001_v14 = vadd.f32 1.0, %v2489_v54  ;;  %v2400_v54 = vld [vmem:[%s3121_s15] ss:$0 sm:$0xff] }
 0xc3e   : > { %2490 = vtanh.f32 %v1994_v50 }
 0xc3f   : > { %v2005_v61 = vmul.f32 0.5, %v2001_v14 }
 0xc41   : > { %v2009_v62 = vmul.f32 %v2005_v61, %v1971_v18 }
 0xc44   : > { %v2491_v57 = vpop.eup %2490 }
 0xc45   : > { %v2002_v59 = vadd.f32 1.0, %v2491_v57 }
 0xc47   : > { %v2006_v32 = vmul.f32 0.5, %v2002_v59  ;;  %v2401_v59 = vld [vmem:[%s3122_s16] ss:$0 sm:$0xff] }
 0xc49   : > { %v2010_v63 = vmul.f32 %v2006_v32, %v1973_v34 }
 0xc4b   : > { %v2012_v0 = vpack.c.bf16 %v2010_v63, %v2009_v62 }
 0xc4d   : > { %2324 = vmatmul.msk.bf16.gmra.mxu0 %vm2040_vm15, %v2012_v0 }
 0xcba   : > { %v2056_v30 = vpop.f32.mrf.mxu0 }
 0xcbb   : > { %v2057_v2 = vadd.f32 %v2399_v4, %v2056_v30 }
 0xcbd   : > { %v2066_v20 = vadd.f32 %v2057_v2, %v3014_v58 }
 0xcbf   : > { %v2070_v25 = vsel %vm581_vm0, %v2066_v20, 0.0 }
 0xcc0   : > { %2071 = vadd.xlane.f32.xlu2 %v2070_v25 }
 0xcc2   : > { %v2058_v5 = vpop.f32.mrf.mxu0 }
 0xcc3   : > { %v2059_v38 = vadd.f32 %v2399_v4, %v2058_v5 }
 0xcc5   : > { %v2067_v52 = vadd.f32 %v2059_v38, %v3016_v31 }
 0xcc7   : > { %v2073_v6 = vsel %vm581_vm0, %v2067_v52, 0.0 }
 0xcc8   : > { %2074 = vadd.xlane.f32.xlu0 %v2073_v6 }
 0xcca   : > { %v2061_v27 = vpop.f32.mrf.mxu0 }
 0xccb   : > { %v2062_v47 = vadd.f32 %v2399_v4, %v2061_v27 }
 0xccd   : > { %v2068_v48 = vadd.f32 %v2062_v47, %v3023_v7 }
 0xccf   : > { %v2076_v8 = vsel %vm581_vm0, %v2068_v48, 0.0 }
 0xcd0   : > { %2077 = vadd.xlane.f32.xlu1 %v2076_v8 }
 0xcd2   : > { %v2063_v26 = vpop.f32.mrf.mxu0 }
 0xcd3   : > { %v2064_v51 = vadd.f32 %v2399_v4, %v2063_v26 }
 0xcd5   : > { %v2069_v58 = vadd.f32 %v2064_v51, %v3025_v45 }
 0xcd7   : > { %v2079_v9 = vsel %vm581_vm0, %v2069_v58, 0.0 }
 0xcd8   : > { %2080 = vadd.xlane.f32.xlu2 %v2079_v9 }
 0xd33   : > { %v2072_v10 = vpop.xlane.xlu2 %2071 }
 0xd34   : > { %v2082_v31 = vmul.f32 %v2072_v10, %v2634_v19 }
 0xd36   : > { %v2086_v11 = vsub.f32 %v2066_v20, %v2082_v31 }
 0xd38   : > { %v2090_v12 = vmul.f32 %v2086_v11, %v2086_v11 }
 0xd3a   : > { %v2094_v55 = vsel %vm581_vm0, %v2090_v12, 0.0 }
 0xd3b   : > { %v2075_v13 = vpop.xlane.xlu0 %2074  ;;  %2095 = vadd.xlane.f32.xlu0 %v2094_v55 }
 0xd3c   : > { %v2083_v7 = vmul.f32 %v2075_v13, %v2634_v19 }
 0xd3e   : > { %v3059_v15 = vsub.f32 %v2067_v52, %v2083_v7 }
 0xd40   : > { %v2091_v39 = vmul.f32 %v3059_v15, %v3059_v15 }
 0xd42   : > { %v2097_v45 = vsel %vm581_vm0, %v2091_v39, 0.0 }
 0xd43   : > { %v2078_v60 = vpop.xlane.xlu1 %2077  ;;  %2098 = vadd.xlane.f32.xlu1 %v2097_v45 }
 0xd44   : > { %v2084_v16 = vmul.f32 %v2078_v60, %v2634_v19 }
 0xd46   : > { %v3065_v17 = vsub.f32 %v2068_v48, %v2084_v16 }
 0xd48   : > { %v2092_v53 = vmul.f32 %v3065_v17, %v3065_v17 }
 0xd4a   : > { %v2100_v18 = vsel %vm581_vm0, %v2092_v53, 0.0 }
 0xd4b   : > { %2101 = vadd.xlane.f32.xlu2 %v2100_v18  ;;  %v2081_v21 = vpop.xlane.xlu2 %2080 }
 0xd4c   : > { %v2085_v56 = vmul.f32 %v2081_v21, %v2634_v19 }
 0xd4e   : > { %v3071_v22 = vsub.f32 %v2069_v58, %v2085_v56 }
 0xd50   : > { %v2093_v23 = vmul.f32 %v3071_v22, %v3071_v22 }
 0xd52   : > { %v2103_v24 = vsel %vm581_vm0, %v2093_v23, 0.0 }
 0xd53   : > { %2104 = vadd.xlane.f32.xlu0 %v2103_v24 }
 0xdae   : > { %v2096_v28 = vpop.xlane.xlu0 %2095 }
 0xdaf   : > { %v2106_v29 = vmul.f32 %v2096_v28, %v2634_v19 }
 0xdb1   : > { %v2110_v33 = vadd.f32 1e-05, %v2106_v29 }
 0xdb3   : > { %2492 = vrsqrt.f32 %v2110_v33  ;;  %vm2120_vm1 = vweird.f32 %v2110_v33 }
 0xdb6   : > { %v2099_v34 = vpop.xlane.xlu1 %2098 }
 0xdb7   : > { %v2107_v35 = vmul.f32 %v2099_v34, %v2634_v19 }
 0xdb9   : > { %v2493_v36 = vpop.eup %2492  ;;  %v2111_v3 = vadd.f32 1e-05, %v2107_v35 }
 0xdba   : > { %v2115_v37 = vmul.f32 %v2493_v36, %v2110_v33  ;;  %vm2121_vm0 = vweird.f32 %v2493_v36 }
 0xdbb   : > { %2494 = vrsqrt.f32 %v2111_v3  ;;  %vm2122_vm2 = vmor %vm2120_vm1, %vm2121_vm0  ;;  %vm2130_vm5 = vweird.f32 %v2111_v3 }
 0xdbc   : > { %v2116_v40 = vmul.f32 %v2493_v36, %v2115_v37 }
 0xdbe   : > { %v2117_v1 = vmul.f32 0.5, %v2116_v40  ;;  %v2102_v41 = vpop.xlane.xlu2 %2101 }
 0xdbf   : > { %v2108_v44 = vmul.f32 %v2102_v41, %v2634_v19 }
 0xdc0   : > { %v2118_v42 = vsub.f32 1.5, %v2117_v1 }
 0xdc1   : > { %v2495_v43 = vpop.eup %2494  ;;  %v2112_v46 = vadd.f32 1e-05, %v2108_v44 }
 0xdc2   : > { %v2119_v49 = vmul.f32 %v2493_v36, %v2118_v42  ;;  %v2125_v50 = vmul.f32 %v2495_v43, %v2111_v3  ;;  %vm2131_vm4 = vweird.f32 %v2495_v43 }
 0xdc3   : > { %2496 = vrsqrt.f32 %v2112_v46  ;;  %vm2132_vm6 = vmor %vm2130_vm5, %vm2131_vm4  ;;  %vm2140_vm8 = vweird.f32 %v2112_v46 }
 0xdc4   : > { %v2123_v14 = vsel %vm2122_vm2, %v2493_v36, %v2119_v49  ;;  %v2126_v57 = vmul.f32 %v2495_v43, %v2125_v50 }
 0xdc5   : > { %v2154_v61 = vmul.f32 %v2123_v14, %v2086_v11 }
 0xdc6   : > { %v2127_v32 = vmul.f32 0.5, %v2126_v57  ;;  %v2105_v62 = vpop.xlane.xlu0 %2104 }
 0xdc7   : > { %v2161_v63 = vmul.f32 %v2400_v54, %v2154_v61  ;;  %v2109_v0 = vmul.f32 %v2105_v62, %v2634_v19 }
 0xdc8   : > { %v2128_v4 = vsub.f32 1.5, %v2127_v32 }
 0xdc9   : > { %v2497_v30 = vpop.eup %2496  ;;  %v2168_v2 = vadd.f32 %v2401_v59, %v2161_v63  ;;  %v2113_v20 = vadd.f32 1e-05, %v2109_v0 }
 0xdca   : > { %v2129_v25 = vmul.f32 %v2495_v43, %v2128_v4  ;;  %v2135_v5 = vmul.f32 %v2497_v30, %v2112_v46  ;;  %vm2141_vm7 = vweird.f32 %v2497_v30 }
 0xdcb   : > { %2173 = vst.msk [vmem:[%s3090_s29] sm:$0x1] %vm2172_vm3, %v2168_v2  ;;  %2498 = vrsqrt.f32 %v2113_v20  ;;  %vm2142_vm9 = vmor %vm2140_vm8, %vm2141_vm7  ;;  %vm2150_vm11 = vweird.f32 %v2113_v20 }
 0xdcc   : > { %v2133_v19 = vsel %vm2132_vm6, %v2495_v43, %v2129_v25  ;;  %v2136_v38 = vmul.f32 %v2497_v30, %v2135_v5 }
 0xdcd   : > { %v2155_v52 = vmul.f32 %v2133_v19, %v3059_v15 }
 0xdce   : > { %v2137_v6 = vmul.f32 0.5, %v2136_v38 }
 0xdcf   : > { %v2162_v27 = vmul.f32 %v2400_v54, %v2155_v52 }
 0xdd0   : > { %v2138_v47 = vsub.f32 1.5, %v2137_v6 }
 0xdd1   : > { %v2499_v48 = vpop.eup %2498  ;;  %v2169_v8 = vadd.f32 %v2401_v59, %v2162_v27 }
 0xdd2   : > { %v2139_v26 = vmul.f32 %v2497_v30, %v2138_v47  ;;  %v2145_v51 = vmul.f32 %v2499_v48, %v2113_v20  ;;  %vm2151_vm10 = vweird.f32 %v2499_v48 }
 0xdd3   : > { %2174 = vst.msk [vmem:[%s3090_s29 + $0x1] sm:$0x1] %vm2172_vm3, %v2169_v8  ;;  %vm2152_vm12 = vmor %vm2150_vm11, %vm2151_vm10 }
 0xdd4   : > { %v2143_v58 = vsel %vm2142_vm9, %v2497_v30, %v2139_v26  ;;  %v2146_v9 = vmul.f32 %v2499_v48, %v2145_v51 }
 0xdd5   : > { %v2156_v10 = vmul.f32 %v2143_v58, %v3065_v17 }
 0xdd6   : > { %v2147_v31 = vmul.f32 0.5, %v2146_v9 }
 0xdd7   : > { %v2163_v11 = vmul.f32 %v2400_v54, %v2156_v10 }
 0xdd8   : > { %v2148_v12 = vsub.f32 1.5, %v2147_v31 }
 0xdd9   : > { %v2170_v55 = vadd.f32 %v2401_v59, %v2163_v11 }
 0xdda   : > { %v2149_v13 = vmul.f32 %v2499_v48, %v2148_v12 }
 0xddb   : > { %2175 = vst.msk [vmem:[%s3090_s29 + $0x2] sm:$0x1] %vm2172_vm3, %v2170_v55 }
 0xddc   : > { %v2153_v7 = vsel %vm2152_vm12, %v2499_v48, %v2149_v13 }
 0xddd   : > { %v2157_v15 = vmul.f32 %v2153_v7, %v3071_v22 }
 0xddf   : > { %v2164_v39 = vmul.f32 %v2400_v54, %v2157_v15 }
 0xde1   : > { %v2171_v45 = vadd.f32 %v2401_v59, %v2164_v39 }
 0xde3   : > { %2176 = vst.msk [vmem:[%s3090_s29 + $0x3] sm:$0x1] %vm2172_vm3, %v2171_v45 }
 0xde4 PF: > { %s27_s24 = sadd.s32 1, %s2506_s24  }
 0xde5   : > { %p24_p4 = scmp.ge.s32.totalorder %s27_s24, 4  }
 0xde7   :  { %26 = sbr.rel (!%p24_p4) target bundleno = 3 (0x3), region = 121 }

</bundles_post_ra>
